<compile_context>
chip_gen: v7x
topology: tpu7x:2x2x1
jax: 0.10.0
libtpu: 0.0.40
codegen_flags: <defaults>
</compile_context>

<pallas_src>
import jax
import jax.numpy as jnp
from jax.experimental import pallas as pl
from jax.experimental.pallas import tpu as pltpu

# ---- model hyper-parameters (small, consistent with the module) -------------
NTOKEN  = 128         # vocabulary size (chosen = 128 so the decoder output is lane-dense)
NINP    = 32          # emsize; ninp == nhid so layer-0 / layer-k weights stack
NHID    = 32
NLAYERS = 2
B       = 8           # batch
T       = 8           # max sequence length (lengths sorted descending, max == T)


# ======================= fused LSTM + decoder kernel =========================
def fused_rnn_kernel(len_ref, x_ref, wih_ref, whh_ref, b_ref, dw_ref, db_ref,
                     out_ref, hbuf_ref):
    H = NHID
    lens = len_ref[...]                                        # (B, 1) int32, loaded once

    # ---- layer-0 input projection, hoisted out of the recurrence ------------
    # One well-shaped (T*B, NINP) x (NINP, 4H) MXU matmul instead of T skinny ones.
    xg0 = jnp.dot(x_ref[...].reshape(T * B, NINP), wih_ref[0],
                  preferred_element_type=jnp.float32)          # (T*B, 4H)

    h = [jnp.zeros((B, H), jnp.float32) for _ in range(NLAYERS)]
    c = [jnp.zeros((B, H), jnp.float32) for _ in range(NLAYERS)]

    for t in range(T):                                         # static unroll (T small)
        valid = lens > t                                       # (B, 1) packed-seq mask
        xin = None
        for l in range(NLAYERS):
            if l == 0:
                gates = xg0[t * B:(t + 1) * B, :]              # hoisted x @ W_ih[0]
            else:
                gates = jnp.dot(xin, wih_ref[l],
                                preferred_element_type=jnp.float32)
            gates = gates + jnp.dot(h[l], whh_ref[l],
                                    preferred_element_type=jnp.float32) + b_ref[l]
            # one sigmoid + one tanh over the full 128-lane gates vreg (EUP),
            # then static lane slices: PyTorch LSTM gate order i, f, g, o.
            sg = jax.nn.sigmoid(gates)
            tg = jnp.tanh(gates)
            i_g = sg[:, 0 * H:1 * H]
            f_g = sg[:, 1 * H:2 * H]
            g_g = tg[:, 2 * H:3 * H]
            o_g = sg[:, 3 * H:4 * H]
            c_new = f_g * c[l] + i_g * g_g
            h_new = o_g * jnp.tanh(c_new)
            h[l] = jnp.where(valid, h_new, h[l])               # freeze state when padded
            c[l] = jnp.where(valid, c_new, c[l])
            xin = h_new                                        # input to next layer
        # pad_packed_sequence pads with zeros for t >= length[b]; store batch-major
        # so the decoder input / final output need no transpose.
        hbuf_ref[:, t, :] = jnp.where(valid, h[-1], jnp.float32(0.0))

    # ---- fused decoder: single (B*T, NHID) x (NHID, NTOKEN) matmul ----------
    hflat = hbuf_ref[...].reshape(B * T, H)                    # free leading-dim collapse
    out_ref[...] = (jnp.dot(hflat, dw_ref[...],
                            preferred_element_type=jnp.float32) + db_ref[...])


def run_fused_rnn(lengths2d, x_tm, wih, whh, bias, dec_w_t, dec_b):
    """x_tm: (T, B, NINP) f32 time-major; lengths2d: (B, 1) i32 -> (B*T, NTOKEN) f32."""
    return pl.pallas_call(
        fused_rnn_kernel,
        out_shape=jax.ShapeDtypeStruct((B * T, NTOKEN), jnp.float32),
        grid=(1,),
        in_specs=[
            pl.BlockSpec((B, 1), lambda i: (0, 0)),                        # lengths
            pl.BlockSpec((T, B, NINP), lambda i: (0, 0, 0)),               # x (time-major)
            pl.BlockSpec((NLAYERS, NHID, 4 * NHID), lambda i: (0, 0, 0)),  # W_ih
            pl.BlockSpec((NLAYERS, NHID, 4 * NHID), lambda i: (0, 0, 0)),  # W_hh
            pl.BlockSpec((NLAYERS, 1, 4 * NHID), lambda i: (0, 0, 0)),     # bias (ih+hh)
            pl.BlockSpec((NHID, NTOKEN), lambda i: (0, 0)),                # decoder W^T
            pl.BlockSpec((1, NTOKEN), lambda i: (0, 0)),                   # decoder b
        ],
        out_specs=pl.BlockSpec((B * T, NTOKEN), lambda i: (0, 0)),
        scratch_shapes=[pltpu.VMEM((B, T, NHID), jnp.float32)],            # hidden outputs
        compiler_params=pltpu.CompilerParams(
            dimension_semantics=("arbitrary",)),
    )(lengths2d, x_tm, wih, whh, bias, dec_w_t, dec_b)


# ============================ full forward pass ===============================
@jax.jit
def rnn_model_forward(tokens, words_lengths, params):
    # Embedding gather directly in time-major order (no transpose of the embedded
    # activations).  Dropout: eval-mode identity.
    emb_tm = jnp.take(params["enc_w"], tokens.T, axis=0)        # (T, B, NINP)
    lengths2d = words_lengths.astype(jnp.int32).reshape(B, 1)
    decoded = run_fused_rnn(lengths2d, emb_tm.astype(jnp.float32),
                            params["wih"], params["whh"], params["bias"],
                            params["dec_w_t"], params["dec_b"])  # (B*T, NTOKEN) b-major rows
    return decoded.reshape(B, T, NTOKEN)


# ============================ pure-JAX reference ==============================
def reference_forward(tokens, words_lengths, params):
    emb = jnp.take(params["enc_w"], tokens, axis=0)             # (B, T, NINP)
    x_tbd = jnp.transpose(emb, (1, 0, 2))
    h = jnp.zeros((NLAYERS, B, NHID), jnp.float32)
    c = jnp.zeros((NLAYERS, B, NHID), jnp.float32)
    outs = []
    for t in range(T):
        valid = (words_lengths[:, None] > t)
        xin = x_tbd[t]
        for l in range(NLAYERS):
            gates = xin @ params["wih"][l] + h[l] @ params["whh"][l] + params["bias"][l]
            i_g = jax.nn.sigmoid(gates[:, 0 * NHID:1 * NHID])
            f_g = jax.nn.sigmoid(gates[:, 1 * NHID:2 * NHID])
            g_g = jnp.tanh(gates[:, 2 * NHID:3 * NHID])
            o_g = jax.nn.sigmoid(gates[:, 3 * NHID:4 * NHID])
            c_new = f_g * c[l] + i_g * g_g
            h_new = o_g * jnp.tanh(c_new)
            h = h.at[l].set(jnp.where(valid, h_new, h[l]))
            c = c.at[l].set(jnp.where(valid, c_new, c[l]))
            xin = h_new
        outs.append(jnp.where(valid, h[-1], 0.0))
    out_btd = jnp.transpose(jnp.stack(outs), (1, 0, 2))         # (B, T, NHID)
    decoded = out_btd.reshape(B * T, NHID) @ params["dec_w_t"] + params["dec_b"]
    return decoded.reshape(B, T, NTOKEN)


# ============================== parameter init ================================
def init_params(key):
    k = 1.0 / jnp.sqrt(NHID)
    keys = jax.random.split(key, 6)
    enc_w = jax.random.uniform(keys[0], (NTOKEN, NINP), jnp.float32, -0.1, 0.1)
    # stacked LSTM weights, stored pre-transposed: (layer, in_dim, 4*NHID)
    wih = jax.random.uniform(keys[1], (NLAYERS, NINP, 4 * NHID), jnp.float32, -k, k)
    whh = jax.random.uniform(keys[2], (NLAYERS, NHID, 4 * NHID), jnp.float32, -k, k)
    b_ih = jax.random.uniform(keys[3], (NLAYERS, 1, 4 * NHID), jnp.float32, -k, k)
    b_hh = jax.random.uniform(keys[4], (NLAYERS, 1, 4 * NHID), jnp.float32, -k, k)
    dec_w = jax.random.uniform(keys[5], (NTOKEN, NHID), jnp.float32, -0.1, 0.1)
    return {
        "enc_w": enc_w,
        "wih": wih,
        "whh": whh,
        "bias": b_ih + b_hh,                       # fold b_ih + b_hh (PyTorch LSTM)
        "dec_w_t": dec_w.T,                        # (NHID, NTOKEN)
        "dec_b": jnp.zeros((1, NTOKEN), jnp.float32),
    }


if __name__ == "__main__":
    key = jax.random.PRNGKey(0)
    pkey, tkey = jax.random.split(key)
    params = init_params(pkey)

    tokens = jax.random.randint(tkey, (B, T), 0, NTOKEN, dtype=jnp.int32)
    # sorted descending lengths (pack_padded_sequence requirement), max == T
    words_lengths = jnp.array([8, 8, 7, 6, 5, 4, 3, 2], dtype=jnp.int32)

    out = rnn_model_forward(tokens, words_lengths, params)
    out = jax.block_until_ready(out)

    ref = reference_forward(tokens, words_lengths, params)
    assert out.shape == (B, T, NTOKEN), out.shape
    assert jnp.allclose(out, ref, atol=1e-4, rtol=1e-4), \
        float(jnp.max(jnp.abs(out - ref)))

    print("KERNEL_OK")
</pallas_src>

<mosaic_0001>
module attributes {stable_mosaic.version = 11 : i64} {
  func.func @fused_rnn_kernel(%arg0: i32, %arg1: memref<8x1xi32, #tpu.memory_space<vmem>>, %arg2: memref<8x8x32xf32, #tpu.memory_space<vmem>>, %arg3: memref<2x32x128xf32, #tpu.memory_space<vmem>>, %arg4: memref<2x32x128xf32, #tpu.memory_space<vmem>>, %arg5: memref<2x1x128xf32, #tpu.memory_space<vmem>>, %arg6: memref<32x128xf32, #tpu.memory_space<vmem>>, %arg7: memref<1x128xf32, #tpu.memory_space<vmem>>, %arg8: memref<64x128xf32, #tpu.memory_space<vmem>>, %arg9: memref<8x8x32xf32, #tpu.memory_space<vmem>>) attributes {dimension_semantics = [#tpu.dimension_semantics<arbitrary>], iteration_bounds = array<i64: 1>, scalar_prefetch = 0 : i64, scratch_operands = 1 : i64, tpu.core_type = #tpu.core_type<tc>, window_params = [{pipeline_mode = #tpu.pipeline_mode<synchronous>, transform_indices = @transform_0, window_bounds = array<i64: 8, 1>}, {pipeline_mode = #tpu.pipeline_mode<synchronous>, transform_indices = @transform_1, window_bounds = array<i64: 8, 8, 32>}, {pipeline_mode = #tpu.pipeline_mode<synchronous>, transform_indices = @transform_2, window_bounds = array<i64: 2, 32, 128>}, {pipeline_mode = #tpu.pipeline_mode<synchronous>, transform_indices = @transform_3, window_bounds = array<i64: 2, 32, 128>}, {pipeline_mode = #tpu.pipeline_mode<synchronous>, transform_indices = @transform_4, window_bounds = array<i64: 2, 1, 128>}, {pipeline_mode = #tpu.pipeline_mode<synchronous>, transform_indices = @transform_5, window_bounds = array<i64: 32, 128>}, {pipeline_mode = #tpu.pipeline_mode<synchronous>, transform_indices = @transform_6, window_bounds = array<i64: 1, 128>}, {pipeline_mode = #tpu.pipeline_mode<synchronous>, transform_indices = @transform_7, window_bounds = array<i64: 64, 128>}]} {
    %c0 = arith.constant 0 : index
    %c0_0 = arith.constant 0 : index
    %0 = vector.load %arg1[%c0, %c0_0] : memref<8x1xi32, #tpu.memory_space<vmem>>, vector<8x1xi32>
    %c0_1 = arith.constant 0 : index
    %c0_2 = arith.constant 0 : index
    %c0_3 = arith.constant 0 : index
    %1 = vector.load %arg2[%c0_1, %c0_2, %c0_3] : memref<8x8x32xf32, #tpu.memory_space<vmem>>, vector<8x8x32xf32>
    %2 = vector.shape_cast %1 : vector<8x8x32xf32> to vector<64x32xf32>
    %c0_4 = arith.constant 0 : index
    %c0_5 = arith.constant 0 : index
    %c0_6 = arith.constant 0 : index
    %3 = vector.load %arg3[%c0_4, %c0_5, %c0_6] : memref<2x32x128xf32, #tpu.memory_space<vmem>>, vector<1x32x128xf32>
    %4 = vector.shape_cast %3 : vector<1x32x128xf32> to vector<32x128xf32>
    %cst = arith.constant dense<0.000000e+00> : vector<64x128xf32>
    %5 = tpu.matmul %2, %4, %cst {dimension_numbers = #tpu.dot_dimension_numbers<[1], [0], [0], [1], [0, 0, 1, 1], [], []>} : vector<64x32xf32>, vector<32x128xf32>, vector<64x128xf32> -> vector<64x128xf32>
    %cst_7 = arith.constant 0.000000e+00 : f32
    %6 = vector.broadcast %cst_7 : f32 to vector<8x32xf32>
    %cst_8 = arith.constant 0.000000e+00 : f32
    %7 = vector.broadcast %cst_8 : f32 to vector<8x32xf32>
    %cst_9 = arith.constant 0.000000e+00 : f32
    %8 = vector.broadcast %cst_9 : f32 to vector<8x32xf32>
    %cst_10 = arith.constant 0.000000e+00 : f32
    %9 = vector.broadcast %cst_10 : f32 to vector<8x32xf32>
    %c0_i32 = arith.constant 0 : i32
    %10 = vector.broadcast %c0_i32 : i32 to vector<8x1xi32>
    %11 = arith.cmpi sgt, %0, %10 : vector<8x1xi32>
    %12 = vector.extract_strided_slice %5 {offsets = [0, 0], sizes = [8, 128], strides = [1, 1]} : vector<64x128xf32> to vector<8x128xf32>
    %c0_11 = arith.constant 0 : index
    %c0_12 = arith.constant 0 : index
    %c0_13 = arith.constant 0 : index
    %13 = vector.load %arg4[%c0_11, %c0_12, %c0_13] : memref<2x32x128xf32, #tpu.memory_space<vmem>>, vector<1x32x128xf32>
    %14 = vector.shape_cast %13 : vector<1x32x128xf32> to vector<32x128xf32>
    %cst_14 = arith.constant dense<0.000000e+00> : vector<8x128xf32>
    %15 = tpu.matmul %6, %14, %cst_14 {dimension_numbers = #tpu.dot_dimension_numbers<[1], [0], [0], [1], [0, 0, 1, 1], [], []>} : vector<8x32xf32>, vector<32x128xf32>, vector<8x128xf32> -> vector<8x128xf32>
    %16 = arith.addf %12, %15 : vector<8x128xf32>
    %c0_15 = arith.constant 0 : index
    %c0_16 = arith.constant 0 : index
    %c0_17 = arith.constant 0 : index
    %17 = vector.load %arg5[%c0_15, %c0_16, %c0_17] : memref<2x1x128xf32, #tpu.memory_space<vmem>>, vector<1x1x128xf32>
    %18 = vector.shape_cast %17 : vector<1x1x128xf32> to vector<1x128xf32>
    %19 = vector.broadcast %18 : vector<1x128xf32> to vector<8x128xf32>
    %20 = arith.addf %16, %19 : vector<8x128xf32>
    %21 = arith.negf %20 : vector<8x128xf32>
    %22 = math.exp %21 : vector<8x128xf32>
    %cst_18 = arith.constant 1.000000e+00 : f32
    %23 = vector.broadcast %cst_18 : f32 to vector<8x128xf32>
    %24 = arith.addf %23, %22 : vector<8x128xf32>
    %25 = arith.divf %23, %24 : vector<8x128xf32>
    %26 = math.tanh %20 : vector<8x128xf32>
    %27 = vector.extract_strided_slice %25 {offsets = [0, 0], sizes = [8, 32], strides = [1, 1]} : vector<8x128xf32> to vector<8x32xf32>
    %28 = vector.extract_strided_slice %25 {offsets = [0, 32], sizes = [8, 32], strides = [1, 1]} : vector<8x128xf32> to vector<8x32xf32>
    %29 = vector.extract_strided_slice %26 {offsets = [0, 64], sizes = [8, 32], strides = [1, 1]} : vector<8x128xf32> to vector<8x32xf32>
    %30 = vector.extract_strided_slice %25 {offsets = [0, 96], sizes = [8, 32], strides = [1, 1]} : vector<8x128xf32> to vector<8x32xf32>
    %31 = arith.mulf %28, %8 : vector<8x32xf32>
    %32 = arith.mulf %27, %29 : vector<8x32xf32>
    %33 = arith.addf %31, %32 : vector<8x32xf32>
    %34 = math.tanh %33 : vector<8x32xf32>
    %35 = arith.mulf %30, %34 : vector<8x32xf32>
    %36 = vector.shape_cast %11 : vector<8x1xi1> to vector<8x1xi1>
    %37 = vector.broadcast %36 : vector<8x1xi1> to vector<8x32xi1>
    %38 = arith.select %37, %35, %6 : vector<8x32xi1>, vector<8x32xf32>
    %39 = vector.shape_cast %11 : vector<8x1xi1> to vector<8x1xi1>
    %40 = vector.broadcast %39 : vector<8x1xi1> to vector<8x32xi1>
    %41 = arith.select %40, %33, %8 : vector<8x32xi1>, vector<8x32xf32>
    %c1 = arith.constant 1 : index
    %c0_19 = arith.constant 0 : index
    %c0_20 = arith.constant 0 : index
    %42 = vector.load %arg3[%c1, %c0_19, %c0_20] : memref<2x32x128xf32, #tpu.memory_space<vmem>>, vector<1x32x128xf32>
    %43 = vector.shape_cast %42 : vector<1x32x128xf32> to vector<32x128xf32>
    %cst_21 = arith.constant dense<0.000000e+00> : vector<8x128xf32>
    %44 = tpu.matmul %35, %43, %cst_21 {dimension_numbers = #tpu.dot_dimension_numbers<[1], [0], [0], [1], [0, 0, 1, 1], [], []>} : vector<8x32xf32>, vector<32x128xf32>, vector<8x128xf32> -> vector<8x128xf32>
    %c1_22 = arith.constant 1 : index
    %c0_23 = arith.constant 0 : index
    %c0_24 = arith.constant 0 : index
    %45 = vector.load %arg4[%c1_22, %c0_23, %c0_24] : memref<2x32x128xf32, #tpu.memory_space<vmem>>, vector<1x32x128xf32>
    %46 = vector.shape_cast %45 : vector<1x32x128xf32> to vector<32x128xf32>
    %cst_25 = arith.constant dense<0.000000e+00> : vector<8x128xf32>
    %47 = tpu.matmul %7, %46, %cst_25 {dimension_numbers = #tpu.dot_dimension_numbers<[1], [0], [0], [1], [0, 0, 1, 1], [], []>} : vector<8x32xf32>, vector<32x128xf32>, vector<8x128xf32> -> vector<8x128xf32>
    %48 = arith.addf %44, %47 : vector<8x128xf32>
    %c1_26 = arith.constant 1 : index
    %c0_27 = arith.constant 0 : index
    %c0_28 = arith.constant 0 : index
    %49 = vector.load %arg5[%c1_26, %c0_27, %c0_28] : memref<2x1x128xf32, #tpu.memory_space<vmem>>, vector<1x1x128xf32>
    %50 = vector.shape_cast %49 : vector<1x1x128xf32> to vector<1x128xf32>
    %51 = vector.broadcast %50 : vector<1x128xf32> to vector<8x128xf32>
    %52 = arith.addf %48, %51 : vector<8x128xf32>
    %53 = arith.negf %52 : vector<8x128xf32>
    %54 = math.exp %53 : vector<8x128xf32>
    %cst_29 = arith.constant 1.000000e+00 : f32
    %55 = vector.broadcast %cst_29 : f32 to vector<8x128xf32>
    %56 = arith.addf %55, %54 : vector<8x128xf32>
    %57 = arith.divf %55, %56 : vector<8x128xf32>
    %58 = math.tanh %52 : vector<8x128xf32>
    %59 = vector.extract_strided_slice %57 {offsets = [0, 0], sizes = [8, 32], strides = [1, 1]} : vector<8x128xf32> to vector<8x32xf32>
    %60 = vector.extract_strided_slice %57 {offsets = [0, 32], sizes = [8, 32], strides = [1, 1]} : vector<8x128xf32> to vector<8x32xf32>
    %61 = vector.extract_strided_slice %58 {offsets = [0, 64], sizes = [8, 32], strides = [1, 1]} : vector<8x128xf32> to vector<8x32xf32>
    %62 = vector.extract_strided_slice %57 {offsets = [0, 96], sizes = [8, 32], strides = [1, 1]} : vector<8x128xf32> to vector<8x32xf32>
    %63 = arith.mulf %60, %9 : vector<8x32xf32>
    %64 = arith.mulf %59, %61 : vector<8x32xf32>
    %65 = arith.addf %63, %64 : vector<8x32xf32>
    %66 = math.tanh %65 : vector<8x32xf32>
    %67 = arith.mulf %62, %66 : vector<8x32xf32>
    %68 = vector.shape_cast %11 : vector<8x1xi1> to vector<8x1xi1>
    %69 = vector.broadcast %68 : vector<8x1xi1> to vector<8x32xi1>
    %70 = arith.select %69, %67, %7 : vector<8x32xi1>, vector<8x32xf32>
    %71 = vector.shape_cast %11 : vector<8x1xi1> to vector<8x1xi1>
    %72 = vector.broadcast %71 : vector<8x1xi1> to vector<8x32xi1>
    %73 = arith.select %72, %65, %9 : vector<8x32xi1>, vector<8x32xf32>
    %cst_30 = arith.constant 0.000000e+00 : f32
    %74 = vector.shape_cast %11 : vector<8x1xi1> to vector<8x1xi1>
    %75 = vector.broadcast %74 : vector<8x1xi1> to vector<8x32xi1>
    %76 = vector.broadcast %cst_30 : f32 to vector<8x32xf32>
    %77 = arith.select %75, %70, %76 : vector<8x32xi1>, vector<8x32xf32>
    %c0_31 = arith.constant 0 : index
    %c0_32 = arith.constant 0 : index
    %c0_33 = arith.constant 0 : index
    %78 = vector.load %arg9[%c0_31, %c0_32, %c0_33] : memref<8x8x32xf32, #tpu.memory_space<vmem>>, vector<8x1x32xf32>
    %79 = vector.shape_cast %78 : vector<8x1x32xf32> to vector<8x32xf32>
    %80 = vector.shape_cast %77 : vector<8x32xf32> to vector<8x1x32xf32>
    tpu.vector_store %arg9[%c0_31, %c0_32, %c0_33], %80 {strides = array<i32>} : memref<8x8x32xf32, #tpu.memory_space<vmem>>, vector<8x1x32xf32>,
    %c1_i32 = arith.constant 1 : i32
    %81 = vector.broadcast %c1_i32 : i32 to vector<8x1xi32>
    %82 = arith.cmpi sgt, %0, %81 : vector<8x1xi32>
    %83 = vector.extract_strided_slice %5 {offsets = [8, 0], sizes = [8, 128], strides = [1, 1]} : vector<64x128xf32> to vector<8x128xf32>
    %c0_34 = arith.constant 0 : index
    %c0_35 = arith.constant 0 : index
    %c0_36 = arith.constant 0 : index
    %84 = vector.load %arg4[%c0_34, %c0_35, %c0_36] : memref<2x32x128xf32, #tpu.memory_space<vmem>>, vector<1x32x128xf32>
    %85 = vector.shape_cast %84 : vector<1x32x128xf32> to vector<32x128xf32>
    %cst_37 = arith.constant dense<0.000000e+00> : vector<8x128xf32>
    %86 = tpu.matmul %38, %85, %cst_37 {dimension_numbers = #tpu.dot_dimension_numbers<[1], [0], [0], [1], [0, 0, 1, 1], [], []>} : vector<8x32xf32>, vector<32x128xf32>, vector<8x128xf32> -> vector<8x128xf32>
    %87 = arith.addf %83, %86 : vector<8x128xf32>
    %c0_38 = arith.constant 0 : index
    %c0_39 = arith.constant 0 : index
    %c0_40 = arith.constant 0 : index
    %88 = vector.load %arg5[%c0_38, %c0_39, %c0_40] : memref<2x1x128xf32, #tpu.memory_space<vmem>>, vector<1x1x128xf32>
    %89 = vector.shape_cast %88 : vector<1x1x128xf32> to vector<1x128xf32>
    %90 = vector.broadcast %89 : vector<1x128xf32> to vector<8x128xf32>
    %91 = arith.addf %87, %90 : vector<8x128xf32>
    %92 = arith.negf %91 : vector<8x128xf32>
    %93 = math.exp %92 : vector<8x128xf32>
    %cst_41 = arith.constant 1.000000e+00 : f32
    %94 = vector.broadcast %cst_41 : f32 to vector<8x128xf32>
    %95 = arith.addf %94, %93 : vector<8x128xf32>
    %96 = arith.divf %94, %95 : vector<8x128xf32>
    %97 = math.tanh %91 : vector<8x128xf32>
    %98 = vector.extract_strided_slice %96 {offsets = [0, 0], sizes = [8, 32], strides = [1, 1]} : vector<8x128xf32> to vector<8x32xf32>
    %99 = vector.extract_strided_slice %96 {offsets = [0, 32], sizes = [8, 32], strides = [1, 1]} : vector<8x128xf32> to vector<8x32xf32>
    %100 = vector.extract_strided_slice %97 {offsets = [0, 64], sizes = [8, 32], strides = [1, 1]} : vector<8x128xf32> to vector<8x32xf32>
    %101 = vector.extract_strided_slice %96 {offsets = [0, 96], sizes = [8, 32], strides = [1, 1]} : vector<8x128xf32> to vector<8x32xf32>
    %102 = arith.mulf %99, %41 : vector<8x32xf32>
    %103 = arith.mulf %98, %100 : vector<8x32xf32>
    %104 = arith.addf %102, %103 : vector<8x32xf32>
    %105 = math.tanh %104 : vector<8x32xf32>
    %106 = arith.mulf %101, %105 : vector<8x32xf32>
    %107 = vector.shape_cast %82 : vector<8x1xi1> to vector<8x1xi1>
    %108 = vector.broadcast %107 : vector<8x1xi1> to vector<8x32xi1>
    %109 = arith.select %108, %106, %38 : vector<8x32xi1>, vector<8x32xf32>
    %110 = vector.shape_cast %82 : vector<8x1xi1> to vector<8x1xi1>
    %111 = vector.broadcast %110 : vector<8x1xi1> to vector<8x32xi1>
    %112 = arith.select %111, %104, %41 : vector<8x32xi1>, vector<8x32xf32>
    %c1_42 = arith.constant 1 : index
    %c0_43 = arith.constant 0 : index
    %c0_44 = arith.constant 0 : index
    %113 = vector.load %arg3[%c1_42, %c0_43, %c0_44] : memref<2x32x128xf32, #tpu.memory_space<vmem>>, vector<1x32x128xf32>
    %114 = vector.shape_cast %113 : vector<1x32x128xf32> to vector<32x128xf32>
    %cst_45 = arith.constant dense<0.000000e+00> : vector<8x128xf32>
    %115 = tpu.matmul %106, %114, %cst_45 {dimension_numbers = #tpu.dot_dimension_numbers<[1], [0], [0], [1], [0, 0, 1, 1], [], []>} : vector<8x32xf32>, vector<32x128xf32>, vector<8x128xf32> -> vector<8x128xf32>
    %c1_46 = arith.constant 1 : index
    %c0_47 = arith.constant 0 : index
    %c0_48 = arith.constant 0 : index
    %116 = vector.load %arg4[%c1_46, %c0_47, %c0_48] : memref<2x32x128xf32, #tpu.memory_space<vmem>>, vector<1x32x128xf32>
    %117 = vector.shape_cast %116 : vector<1x32x128xf32> to vector<32x128xf32>
    %cst_49 = arith.constant dense<0.000000e+00> : vector<8x128xf32>
    %118 = tpu.matmul %70, %117, %cst_49 {dimension_numbers = #tpu.dot_dimension_numbers<[1], [0], [0], [1], [0, 0, 1, 1], [], []>} : vector<8x32xf32>, vector<32x128xf32>, vector<8x128xf32> -> vector<8x128xf32>
    %119 = arith.addf %115, %118 : vector<8x128xf32>
    %c1_50 = arith.constant 1 : index
    %c0_51 = arith.constant 0 : index
    %c0_52 = arith.constant 0 : index
    %120 = vector.load %arg5[%c1_50, %c0_51, %c0_52] : memref<2x1x128xf32, #tpu.memory_space<vmem>>, vector<1x1x128xf32>
    %121 = vector.shape_cast %120 : vector<1x1x128xf32> to vector<1x128xf32>
    %122 = vector.broadcast %121 : vector<1x128xf32> to vector<8x128xf32>
    %123 = arith.addf %119, %122 : vector<8x128xf32>
    %124 = arith.negf %123 : vector<8x128xf32>
    %125 = math.exp %124 : vector<8x128xf32>
    %cst_53 = arith.constant 1.000000e+00 : f32
    %126 = vector.broadcast %cst_53 : f32 to vector<8x128xf32>
    %127 = arith.addf %126, %125 : vector<8x128xf32>
    %128 = arith.divf %126, %127 : vector<8x128xf32>
    %129 = math.tanh %123 : vector<8x128xf32>
    %130 = vector.extract_strided_slice %128 {offsets = [0, 0], sizes = [8, 32], strides = [1, 1]} : vector<8x128xf32> to vector<8x32xf32>
    %131 = vector.extract_strided_slice %128 {offsets = [0, 32], sizes = [8, 32], strides = [1, 1]} : vector<8x128xf32> to vector<8x32xf32>
    %132 = vector.extract_strided_slice %129 {offsets = [0, 64], sizes = [8, 32], strides = [1, 1]} : vector<8x128xf32> to vector<8x32xf32>
    %133 = vector.extract_strided_slice %128 {offsets = [0, 96], sizes = [8, 32], strides = [1, 1]} : vector<8x128xf32> to vector<8x32xf32>
    %134 = arith.mulf %131, %73 : vector<8x32xf32>
    %135 = arith.mulf %130, %132 : vector<8x32xf32>
    %136 = arith.addf %134, %135 : vector<8x32xf32>
    %137 = math.tanh %136 : vector<8x32xf32>
    %138 = arith.mulf %133, %137 : vector<8x32xf32>
    %139 = vector.shape_cast %82 : vector<8x1xi1> to vector<8x1xi1>
    %140 = vector.broadcast %139 : vector<8x1xi1> to vector<8x32xi1>
    %141 = arith.select %140, %138, %70 : vector<8x32xi1>, vector<8x32xf32>
    %142 = vector.shape_cast %82 : vector<8x1xi1> to vector<8x1xi1>
    %143 = vector.broadcast %142 : vector<8x1xi1> to vector<8x32xi1>
    %144 = arith.select %143, %136, %73 : vector<8x32xi1>, vector<8x32xf32>
    %cst_54 = arith.constant 0.000000e+00 : f32
    %145 = vector.shape_cast %82 : vector<8x1xi1> to vector<8x1xi1>
    %146 = vector.broadcast %145 : vector<8x1xi1> to vector<8x32xi1>
    %147 = vector.broadcast %cst_54 : f32 to vector<8x32xf32>
    %148 = arith.select %146, %141, %147 : vector<8x32xi1>, vector<8x32xf32>
    %c0_55 = arith.constant 0 : index
    %c1_56 = arith.constant 1 : index
    %c0_57 = arith.constant 0 : index
    %149 = vector.load %arg9[%c0_55, %c1_56, %c0_57] : memref<8x8x32xf32, #tpu.memory_space<vmem>>, vector<8x1x32xf32>
    %150 = vector.shape_cast %149 : vector<8x1x32xf32> to vector<8x32xf32>
    %151 = vector.shape_cast %148 : vector<8x32xf32> to vector<8x1x32xf32>
    tpu.vector_store %arg9[%c0_55, %c1_56, %c0_57], %151 {strides = array<i32>} : memref<8x8x32xf32, #tpu.memory_space<vmem>>, vector<8x1x32xf32>,
    %c2_i32 = arith.constant 2 : i32
    %152 = vector.broadcast %c2_i32 : i32 to vector<8x1xi32>
    %153 = arith.cmpi sgt, %0, %152 : vector<8x1xi32>
    %154 = vector.extract_strided_slice %5 {offsets = [16, 0], sizes = [8, 128], strides = [1, 1]} : vector<64x128xf32> to vector<8x128xf32>
    %c0_58 = arith.constant 0 : index
    %c0_59 = arith.constant 0 : index
    %c0_60 = arith.constant 0 : index
    %155 = vector.load %arg4[%c0_58, %c0_59, %c0_60] : memref<2x32x128xf32, #tpu.memory_space<vmem>>, vector<1x32x128xf32>
    %156 = vector.shape_cast %155 : vector<1x32x128xf32> to vector<32x128xf32>
    %cst_61 = arith.constant dense<0.000000e+00> : vector<8x128xf32>
    %157 = tpu.matmul %109, %156, %cst_61 {dimension_numbers = #tpu.dot_dimension_numbers<[1], [0], [0], [1], [0, 0, 1, 1], [], []>} : vector<8x32xf32>, vector<32x128xf32>, vector<8x128xf32> -> vector<8x128xf32>
    %158 = arith.addf %154, %157 : vector<8x128xf32>
    %c0_62 = arith.constant 0 : index
    %c0_63 = arith.constant 0 : index
    %c0_64 = arith.constant 0 : index
    %159 = vector.load %arg5[%c0_62, %c0_63, %c0_64] : memref<2x1x128xf32, #tpu.memory_space<vmem>>, vector<1x1x128xf32>
    %160 = vector.shape_cast %159 : vector<1x1x128xf32> to vector<1x128xf32>
    %161 = vector.broadcast %160 : vector<1x128xf32> to vector<8x128xf32>
    %162 = arith.addf %158, %161 : vector<8x128xf32>
    %163 = arith.negf %162 : vector<8x128xf32>
    %164 = math.exp %163 : vector<8x128xf32>
    %cst_65 = arith.constant 1.000000e+00 : f32
    %165 = vector.broadcast %cst_65 : f32 to vector<8x128xf32>
    %166 = arith.addf %165, %164 : vector<8x128xf32>
    %167 = arith.divf %165, %166 : vector<8x128xf32>
    %168 = math.tanh %162 : vector<8x128xf32>
    %169 = vector.extract_strided_slice %167 {offsets = [0, 0], sizes = [8, 32], strides = [1, 1]} : vector<8x128xf32> to vector<8x32xf32>
    %170 = vector.extract_strided_slice %167 {offsets = [0, 32], sizes = [8, 32], strides = [1, 1]} : vector<8x128xf32> to vector<8x32xf32>
    %171 = vector.extract_strided_slice %168 {offsets = [0, 64], sizes = [8, 32], strides = [1, 1]} : vector<8x128xf32> to vector<8x32xf32>
    %172 = vector.extract_strided_slice %167 {offsets = [0, 96], sizes = [8, 32], strides = [1, 1]} : vector<8x128xf32> to vector<8x32xf32>
    %173 = arith.mulf %170, %112 : vector<8x32xf32>
    %174 = arith.mulf %169, %171 : vector<8x32xf32>
    %175 = arith.addf %173, %174 : vector<8x32xf32>
    %176 = math.tanh %175 : vector<8x32xf32>
    %177 = arith.mulf %172, %176 : vector<8x32xf32>
    %178 = vector.shape_cast %153 : vector<8x1xi1> to vector<8x1xi1>
    %179 = vector.broadcast %178 : vector<8x1xi1> to vector<8x32xi1>
    %180 = arith.select %179, %177, %109 : vector<8x32xi1>, vector<8x32xf32>
    %181 = vector.shape_cast %153 : vector<8x1xi1> to vector<8x1xi1>
    %182 = vector.broadcast %181 : vector<8x1xi1> to vector<8x32xi1>
    %183 = arith.select %182, %175, %112 : vector<8x32xi1>, vector<8x32xf32>
    %c1_66 = arith.constant 1 : index
    %c0_67 = arith.constant 0 : index
    %c0_68 = arith.constant 0 : index
    %184 = vector.load %arg3[%c1_66, %c0_67, %c0_68] : memref<2x32x128xf32, #tpu.memory_space<vmem>>, vector<1x32x128xf32>
    %185 = vector.shape_cast %184 : vector<1x32x128xf32> to vector<32x128xf32>
    %cst_69 = arith.constant dense<0.000000e+00> : vector<8x128xf32>
    %186 = tpu.matmul %177, %185, %cst_69 {dimension_numbers = #tpu.dot_dimension_numbers<[1], [0], [0], [1], [0, 0, 1, 1], [], []>} : vector<8x32xf32>, vector<32x128xf32>, vector<8x128xf32> -> vector<8x128xf32>
    %c1_70 = arith.constant 1 : index
    %c0_71 = arith.constant 0 : index
    %c0_72 = arith.constant 0 : index
    %187 = vector.load %arg4[%c1_70, %c0_71, %c0_72] : memref<2x32x128xf32, #tpu.memory_space<vmem>>, vector<1x32x128xf32>
    %188 = vector.shape_cast %187 : vector<1x32x128xf32> to vector<32x128xf32>
    %cst_73 = arith.constant dense<0.000000e+00> : vector<8x128xf32>
    %189 = tpu.matmul %141, %188, %cst_73 {dimension_numbers = #tpu.dot_dimension_numbers<[1], [0], [0], [1], [0, 0, 1, 1], [], []>} : vector<8x32xf32>, vector<32x128xf32>, vector<8x128xf32> -> vector<8x128xf32>
    %190 = arith.addf %186, %189 : vector<8x128xf32>
    %c1_74 = arith.constant 1 : index
    %c0_75 = arith.constant 0 : index
    %c0_76 = arith.constant 0 : index
    %191 = vector.load %arg5[%c1_74, %c0_75, %c0_76] : memref<2x1x128xf32, #tpu.memory_space<vmem>>, vector<1x1x128xf32>
    %192 = vector.shape_cast %191 : vector<1x1x128xf32> to vector<1x128xf32>
    %193 = vector.broadcast %192 : vector<1x128xf32> to vector<8x128xf32>
    %194 = arith.addf %190, %193 : vector<8x128xf32>
    %195 = arith.negf %194 : vector<8x128xf32>
    %196 = math.exp %195 : vector<8x128xf32>
    %cst_77 = arith.constant 1.000000e+00 : f32
    %197 = vector.broadcast %cst_77 : f32 to vector<8x128xf32>
    %198 = arith.addf %197, %196 : vector<8x128xf32>
    %199 = arith.divf %197, %198 : vector<8x128xf32>
    %200 = math.tanh %194 : vector<8x128xf32>
    %201 = vector.extract_strided_slice %199 {offsets = [0, 0], sizes = [8, 32], strides = [1, 1]} : vector<8x128xf32> to vector<8x32xf32>
    %202 = vector.extract_strided_slice %199 {offsets = [0, 32], sizes = [8, 32], strides = [1, 1]} : vector<8x128xf32> to vector<8x32xf32>
    %203 = vector.extract_strided_slice %200 {offsets = [0, 64], sizes = [8, 32], strides = [1, 1]} : vector<8x128xf32> to vector<8x32xf32>
    %204 = vector.extract_strided_slice %199 {offsets = [0, 96], sizes = [8, 32], strides = [1, 1]} : vector<8x128xf32> to vector<8x32xf32>
    %205 = arith.mulf %202, %144 : vector<8x32xf32>
    %206 = arith.mulf %201, %203 : vector<8x32xf32>
    %207 = arith.addf %205, %206 : vector<8x32xf32>
    %208 = math.tanh %207 : vector<8x32xf32>
    %209 = arith.mulf %204, %208 : vector<8x32xf32>
    %210 = vector.shape_cast %153 : vector<8x1xi1> to vector<8x1xi1>
    %211 = vector.broadcast %210 : vector<8x1xi1> to vector<8x32xi1>
    %212 = arith.select %211, %209, %141 : vector<8x32xi1>, vector<8x32xf32>
    %213 = vector.shape_cast %153 : vector<8x1xi1> to vector<8x1xi1>
    %214 = vector.broadcast %213 : vector<8x1xi1> to vector<8x32xi1>
    %215 = arith.select %214, %207, %144 : vector<8x32xi1>, vector<8x32xf32>
    %cst_78 = arith.constant 0.000000e+00 : f32
    %216 = vector.shape_cast %153 : vector<8x1xi1> to vector<8x1xi1>
    %217 = vector.broadcast %216 : vector<8x1xi1> to vector<8x32xi1>
    %218 = vector.broadcast %cst_78 : f32 to vector<8x32xf32>
    %219 = arith.select %217, %212, %218 : vector<8x32xi1>, vector<8x32xf32>
    %c0_79 = arith.constant 0 : index
    %c2 = arith.constant 2 : index
    %c0_80 = arith.constant 0 : index
    %220 = vector.load %arg9[%c0_79, %c2, %c0_80] : memref<8x8x32xf32, #tpu.memory_space<vmem>>, vector<8x1x32xf32>
    %221 = vector.shape_cast %220 : vector<8x1x32xf32> to vector<8x32xf32>
    %222 = vector.shape_cast %219 : vector<8x32xf32> to vector<8x1x32xf32>
    tpu.vector_store %arg9[%c0_79, %c2, %c0_80], %222 {strides = array<i32>} : memref<8x8x32xf32, #tpu.memory_space<vmem>>, vector<8x1x32xf32>,
    %c3_i32 = arith.constant 3 : i32
    %223 = vector.broadcast %c3_i32 : i32 to vector<8x1xi32>
    %224 = arith.cmpi sgt, %0, %223 : vector<8x1xi32>
    %225 = vector.extract_strided_slice %5 {offsets = [24, 0], sizes = [8, 128], strides = [1, 1]} : vector<64x128xf32> to vector<8x128xf32>
    %c0_81 = arith.constant 0 : index
    %c0_82 = arith.constant 0 : index
    %c0_83 = arith.constant 0 : index
    %226 = vector.load %arg4[%c0_81, %c0_82, %c0_83] : memref<2x32x128xf32, #tpu.memory_space<vmem>>, vector<1x32x128xf32>
    %227 = vector.shape_cast %226 : vector<1x32x128xf32> to vector<32x128xf32>
    %cst_84 = arith.constant dense<0.000000e+00> : vector<8x128xf32>
    %228 = tpu.matmul %180, %227, %cst_84 {dimension_numbers = #tpu.dot_dimension_numbers<[1], [0], [0], [1], [0, 0, 1, 1], [], []>} : vector<8x32xf32>, vector<32x128xf32>, vector<8x128xf32> -> vector<8x128xf32>
    %229 = arith.addf %225, %228 : vector<8x128xf32>
    %c0_85 = arith.constant 0 : index
    %c0_86 = arith.constant 0 : index
    %c0_87 = arith.constant 0 : index
    %230 = vector.load %arg5[%c0_85, %c0_86, %c0_87] : memref<2x1x128xf32, #tpu.memory_space<vmem>>, vector<1x1x128xf32>
    %231 = vector.shape_cast %230 : vector<1x1x128xf32> to vector<1x128xf32>
    %232 = vector.broadcast %231 : vector<1x128xf32> to vector<8x128xf32>
    %233 = arith.addf %229, %232 : vector<8x128xf32>
    %234 = arith.negf %233 : vector<8x128xf32>
    %235 = math.exp %234 : vector<8x128xf32>
    %cst_88 = arith.constant 1.000000e+00 : f32
    %236 = vector.broadcast %cst_88 : f32 to vector<8x128xf32>
    %237 = arith.addf %236, %235 : vector<8x128xf32>
    %238 = arith.divf %236, %237 : vector<8x128xf32>
    %239 = math.tanh %233 : vector<8x128xf32>
    %240 = vector.extract_strided_slice %238 {offsets = [0, 0], sizes = [8, 32], strides = [1, 1]} : vector<8x128xf32> to vector<8x32xf32>
    %241 = vector.extract_strided_slice %238 {offsets = [0, 32], sizes = [8, 32], strides = [1, 1]} : vector<8x128xf32> to vector<8x32xf32>
    %242 = vector.extract_strided_slice %239 {offsets = [0, 64], sizes = [8, 32], strides = [1, 1]} : vector<8x128xf32> to vector<8x32xf32>
    %243 = vector.extract_strided_slice %238 {offsets = [0, 96], sizes = [8, 32], strides = [1, 1]} : vector<8x128xf32> to vector<8x32xf32>
    %244 = arith.mulf %241, %183 : vector<8x32xf32>
    %245 = arith.mulf %240, %242 : vector<8x32xf32>
    %246 = arith.addf %244, %245 : vector<8x32xf32>
    %247 = math.tanh %246 : vector<8x32xf32>
    %248 = arith.mulf %243, %247 : vector<8x32xf32>
    %249 = vector.shape_cast %224 : vector<8x1xi1> to vector<8x1xi1>
    %250 = vector.broadcast %249 : vector<8x1xi1> to vector<8x32xi1>
    %251 = arith.select %250, %248, %180 : vector<8x32xi1>, vector<8x32xf32>
    %252 = vector.shape_cast %224 : vector<8x1xi1> to vector<8x1xi1>
    %253 = vector.broadcast %252 : vector<8x1xi1> to vector<8x32xi1>
    %254 = arith.select %253, %246, %183 : vector<8x32xi1>, vector<8x32xf32>
    %c1_89 = arith.constant 1 : index
    %c0_90 = arith.constant 0 : index
    %c0_91 = arith.constant 0 : index
    %255 = vector.load %arg3[%c1_89, %c0_90, %c0_91] : memref<2x32x128xf32, #tpu.memory_space<vmem>>, vector<1x32x128xf32>
    %256 = vector.shape_cast %255 : vector<1x32x128xf32> to vector<32x128xf32>
    %cst_92 = arith.constant dense<0.000000e+00> : vector<8x128xf32>
    %257 = tpu.matmul %248, %256, %cst_92 {dimension_numbers = #tpu.dot_dimension_numbers<[1], [0], [0], [1], [0, 0, 1, 1], [], []>} : vector<8x32xf32>, vector<32x128xf32>, vector<8x128xf32> -> vector<8x128xf32>
    %c1_93 = arith.constant 1 : index
    %c0_94 = arith.constant 0 : index
    %c0_95 = arith.constant 0 : index
    %258 = vector.load %arg4[%c1_93, %c0_94, %c0_95] : memref<2x32x128xf32, #tpu.memory_space<vmem>>, vector<1x32x128xf32>
    %259 = vector.shape_cast %258 : vector<1x32x128xf32> to vector<32x128xf32>
    %cst_96 = arith.constant dense<0.000000e+00> : vector<8x128xf32>
    %260 = tpu.matmul %212, %259, %cst_96 {dimension_numbers = #tpu.dot_dimension_numbers<[1], [0], [0], [1], [0, 0, 1, 1], [], []>} : vector<8x32xf32>, vector<32x128xf32>, vector<8x128xf32> -> vector<8x128xf32>
    %261 = arith.addf %257, %260 : vector<8x128xf32>
    %c1_97 = arith.constant 1 : index
    %c0_98 = arith.constant 0 : index
    %c0_99 = arith.constant 0 : index
    %262 = vector.load %arg5[%c1_97, %c0_98, %c0_99] : memref<2x1x128xf32, #tpu.memory_space<vmem>>, vector<1x1x128xf32>
    %263 = vector.shape_cast %262 : vector<1x1x128xf32> to vector<1x128xf32>
    %264 = vector.broadcast %263 : vector<1x128xf32> to vector<8x128xf32>
    %265 = arith.addf %261, %264 : vector<8x128xf32>
    %266 = arith.negf %265 : vector<8x128xf32>
    %267 = math.exp %266 : vector<8x128xf32>
    %cst_100 = arith.constant 1.000000e+00 : f32
    %268 = vector.broadcast %cst_100 : f32 to vector<8x128xf32>
    %269 = arith.addf %268, %267 : vector<8x128xf32>
    %270 = arith.divf %268, %269 : vector<8x128xf32>
    %271 = math.tanh %265 : vector<8x128xf32>
    %272 = vector.extract_strided_slice %270 {offsets = [0, 0], sizes = [8, 32], strides = [1, 1]} : vector<8x128xf32> to vector<8x32xf32>
    %273 = vector.extract_strided_slice %270 {offsets = [0, 32], sizes = [8, 32], strides = [1, 1]} : vector<8x128xf32> to vector<8x32xf32>
    %274 = vector.extract_strided_slice %271 {offsets = [0, 64], sizes = [8, 32], strides = [1, 1]} : vector<8x128xf32> to vector<8x32xf32>
    %275 = vector.extract_strided_slice %270 {offsets = [0, 96], sizes = [8, 32], strides = [1, 1]} : vector<8x128xf32> to vector<8x32xf32>
    %276 = arith.mulf %273, %215 : vector<8x32xf32>
    %277 = arith.mulf %272, %274 : vector<8x32xf32>
    %278 = arith.addf %276, %277 : vector<8x32xf32>
    %279 = math.tanh %278 : vector<8x32xf32>
    %280 = arith.mulf %275, %279 : vector<8x32xf32>
    %281 = vector.shape_cast %224 : vector<8x1xi1> to vector<8x1xi1>
    %282 = vector.broadcast %281 : vector<8x1xi1> to vector<8x32xi1>
    %283 = arith.select %282, %280, %212 : vector<8x32xi1>, vector<8x32xf32>
    %284 = vector.shape_cast %224 : vector<8x1xi1> to vector<8x1xi1>
    %285 = vector.broadcast %284 : vector<8x1xi1> to vector<8x32xi1>
    %286 = arith.select %285, %278, %215 : vector<8x32xi1>, vector<8x32xf32>
    %cst_101 = arith.constant 0.000000e+00 : f32
    %287 = vector.shape_cast %224 : vector<8x1xi1> to vector<8x1xi1>
    %288 = vector.broadcast %287 : vector<8x1xi1> to vector<8x32xi1>
    %289 = vector.broadcast %cst_101 : f32 to vector<8x32xf32>
    %290 = arith.select %288, %283, %289 : vector<8x32xi1>, vector<8x32xf32>
    %c0_102 = arith.constant 0 : index
    %c3 = arith.constant 3 : index
    %c0_103 = arith.constant 0 : index
    %291 = vector.load %arg9[%c0_102, %c3, %c0_103] : memref<8x8x32xf32, #tpu.memory_space<vmem>>, vector<8x1x32xf32>
    %292 = vector.shape_cast %291 : vector<8x1x32xf32> to vector<8x32xf32>
    %293 = vector.shape_cast %290 : vector<8x32xf32> to vector<8x1x32xf32>
    tpu.vector_store %arg9[%c0_102, %c3, %c0_103], %293 {strides = array<i32>} : memref<8x8x32xf32, #tpu.memory_space<vmem>>, vector<8x1x32xf32>,
    %c4_i32 = arith.constant 4 : i32
    %294 = vector.broadcast %c4_i32 : i32 to vector<8x1xi32>
    %295 = arith.cmpi sgt, %0, %294 : vector<8x1xi32>
    %296 = vector.extract_strided_slice %5 {offsets = [32, 0], sizes = [8, 128], strides = [1, 1]} : vector<64x128xf32> to vector<8x128xf32>
    %c0_104 = arith.constant 0 : index
    %c0_105 = arith.constant 0 : index
    %c0_106 = arith.constant 0 : index
    %297 = vector.load %arg4[%c0_104, %c0_105, %c0_106] : memref<2x32x128xf32, #tpu.memory_space<vmem>>, vector<1x32x128xf32>
    %298 = vector.shape_cast %297 : vector<1x32x128xf32> to vector<32x128xf32>
    %cst_107 = arith.constant dense<0.000000e+00> : vector<8x128xf32>
    %299 = tpu.matmul %251, %298, %cst_107 {dimension_numbers = #tpu.dot_dimension_numbers<[1], [0], [0], [1], [0, 0, 1, 1], [], []>} : vector<8x32xf32>, vector<32x128xf32>, vector<8x128xf32> -> vector<8x128xf32>
    %300 = arith.addf %296, %299 : vector<8x128xf32>
    %c0_108 = arith.constant 0 : index
    %c0_109 = arith.constant 0 : index
    %c0_110 = arith.constant 0 : index
    %301 = vector.load %arg5[%c0_108, %c0_109, %c0_110] : memref<2x1x128xf32, #tpu.memory_space<vmem>>, vector<1x1x128xf32>
    %302 = vector.shape_cast %301 : vector<1x1x128xf32> to vector<1x128xf32>
    %303 = vector.broadcast %302 : vector<1x128xf32> to vector<8x128xf32>
    %304 = arith.addf %300, %303 : vector<8x128xf32>
    %305 = arith.negf %304 : vector<8x128xf32>
    %306 = math.exp %305 : vector<8x128xf32>
    %cst_111 = arith.constant 1.000000e+00 : f32
    %307 = vector.broadcast %cst_111 : f32 to vector<8x128xf32>
    %308 = arith.addf %307, %306 : vector<8x128xf32>
    %309 = arith.divf %307, %308 : vector<8x128xf32>
    %310 = math.tanh %304 : vector<8x128xf32>
    %311 = vector.extract_strided_slice %309 {offsets = [0, 0], sizes = [8, 32], strides = [1, 1]} : vector<8x128xf32> to vector<8x32xf32>
    %312 = vector.extract_strided_slice %309 {offsets = [0, 32], sizes = [8, 32], strides = [1, 1]} : vector<8x128xf32> to vector<8x32xf32>
    %313 = vector.extract_strided_slice %310 {offsets = [0, 64], sizes = [8, 32], strides = [1, 1]} : vector<8x128xf32> to vector<8x32xf32>
    %314 = vector.extract_strided_slice %309 {offsets = [0, 96], sizes = [8, 32], strides = [1, 1]} : vector<8x128xf32> to vector<8x32xf32>
    %315 = arith.mulf %312, %254 : vector<8x32xf32>
    %316 = arith.mulf %311, %313 : vector<8x32xf32>
    %317 = arith.addf %315, %316 : vector<8x32xf32>
    %318 = math.tanh %317 : vector<8x32xf32>
    %319 = arith.mulf %314, %318 : vector<8x32xf32>
    %320 = vector.shape_cast %295 : vector<8x1xi1> to vector<8x1xi1>
    %321 = vector.broadcast %320 : vector<8x1xi1> to vector<8x32xi1>
    %322 = arith.select %321, %319, %251 : vector<8x32xi1>, vector<8x32xf32>
    %323 = vector.shape_cast %295 : vector<8x1xi1> to vector<8x1xi1>
    %324 = vector.broadcast %323 : vector<8x1xi1> to vector<8x32xi1>
    %325 = arith.select %324, %317, %254 : vector<8x32xi1>, vector<8x32xf32>
    %c1_112 = arith.constant 1 : index
    %c0_113 = arith.constant 0 : index
    %c0_114 = arith.constant 0 : index
    %326 = vector.load %arg3[%c1_112, %c0_113, %c0_114] : memref<2x32x128xf32, #tpu.memory_space<vmem>>, vector<1x32x128xf32>
    %327 = vector.shape_cast %326 : vector<1x32x128xf32> to vector<32x128xf32>
    %cst_115 = arith.constant dense<0.000000e+00> : vector<8x128xf32>
    %328 = tpu.matmul %319, %327, %cst_115 {dimension_numbers = #tpu.dot_dimension_numbers<[1], [0], [0], [1], [0, 0, 1, 1], [], []>} : vector<8x32xf32>, vector<32x128xf32>, vector<8x128xf32> -> vector<8x128xf32>
    %c1_116 = arith.constant 1 : index
    %c0_117 = arith.constant 0 : index
    %c0_118 = arith.constant 0 : index
    %329 = vector.load %arg4[%c1_116, %c0_117, %c0_118] : memref<2x32x128xf32, #tpu.memory_space<vmem>>, vector<1x32x128xf32>
    %330 = vector.shape_cast %329 : vector<1x32x128xf32> to vector<32x128xf32>
    %cst_119 = arith.constant dense<0.000000e+00> : vector<8x128xf32>
    %331 = tpu.matmul %283, %330, %cst_119 {dimension_numbers = #tpu.dot_dimension_numbers<[1], [0], [0], [1], [0, 0, 1, 1], [], []>} : vector<8x32xf32>, vector<32x128xf32>, vector<8x128xf32> -> vector<8x128xf32>
    %332 = arith.addf %328, %331 : vector<8x128xf32>
    %c1_120 = arith.constant 1 : index
    %c0_121 = arith.constant 0 : index
    %c0_122 = arith.constant 0 : index
    %333 = vector.load %arg5[%c1_120, %c0_121, %c0_122] : memref<2x1x128xf32, #tpu.memory_space<vmem>>, vector<1x1x128xf32>
    %334 = vector.shape_cast %333 : vector<1x1x128xf32> to vector<1x128xf32>
    %335 = vector.broadcast %334 : vector<1x128xf32> to vector<8x128xf32>
    %336 = arith.addf %332, %335 : vector<8x128xf32>
    %337 = arith.negf %336 : vector<8x128xf32>
    %338 = math.exp %337 : vector<8x128xf32>
    %cst_123 = arith.constant 1.000000e+00 : f32
    %339 = vector.broadcast %cst_123 : f32 to vector<8x128xf32>
    %340 = arith.addf %339, %338 : vector<8x128xf32>
    %341 = arith.divf %339, %340 : vector<8x128xf32>
    %342 = math.tanh %336 : vector<8x128xf32>
    %343 = vector.extract_strided_slice %341 {offsets = [0, 0], sizes = [8, 32], strides = [1, 1]} : vector<8x128xf32> to vector<8x32xf32>
    %344 = vector.extract_strided_slice %341 {offsets = [0, 32], sizes = [8, 32], strides = [1, 1]} : vector<8x128xf32> to vector<8x32xf32>
    %345 = vector.extract_strided_slice %342 {offsets = [0, 64], sizes = [8, 32], strides = [1, 1]} : vector<8x128xf32> to vector<8x32xf32>
    %346 = vector.extract_strided_slice %341 {offsets = [0, 96], sizes = [8, 32], strides = [1, 1]} : vector<8x128xf32> to vector<8x32xf32>
    %347 = arith.mulf %344, %286 : vector<8x32xf32>
    %348 = arith.mulf %343, %345 : vector<8x32xf32>
    %349 = arith.addf %347, %348 : vector<8x32xf32>
    %350 = math.tanh %349 : vector<8x32xf32>
    %351 = arith.mulf %346, %350 : vector<8x32xf32>
    %352 = vector.shape_cast %295 : vector<8x1xi1> to vector<8x1xi1>
    %353 = vector.broadcast %352 : vector<8x1xi1> to vector<8x32xi1>
    %354 = arith.select %353, %351, %283 : vector<8x32xi1>, vector<8x32xf32>
    %355 = vector.shape_cast %295 : vector<8x1xi1> to vector<8x1xi1>
    %356 = vector.broadcast %355 : vector<8x1xi1> to vector<8x32xi1>
    %357 = arith.select %356, %349, %286 : vector<8x32xi1>, vector<8x32xf32>
    %cst_124 = arith.constant 0.000000e+00 : f32
    %358 = vector.shape_cast %295 : vector<8x1xi1> to vector<8x1xi1>
    %359 = vector.broadcast %358 : vector<8x1xi1> to vector<8x32xi1>
    %360 = vector.broadcast %cst_124 : f32 to vector<8x32xf32>
    %361 = arith.select %359, %354, %360 : vector<8x32xi1>, vector<8x32xf32>
    %c0_125 = arith.constant 0 : index
    %c4 = arith.constant 4 : index
    %c0_126 = arith.constant 0 : index
    %362 = vector.load %arg9[%c0_125, %c4, %c0_126] : memref<8x8x32xf32, #tpu.memory_space<vmem>>, vector<8x1x32xf32>
    %363 = vector.shape_cast %362 : vector<8x1x32xf32> to vector<8x32xf32>
    %364 = vector.shape_cast %361 : vector<8x32xf32> to vector<8x1x32xf32>
    tpu.vector_store %arg9[%c0_125, %c4, %c0_126], %364 {strides = array<i32>} : memref<8x8x32xf32, #tpu.memory_space<vmem>>, vector<8x1x32xf32>,
    %c5_i32 = arith.constant 5 : i32
    %365 = vector.broadcast %c5_i32 : i32 to vector<8x1xi32>
    %366 = arith.cmpi sgt, %0, %365 : vector<8x1xi32>
    %367 = vector.extract_strided_slice %5 {offsets = [40, 0], sizes = [8, 128], strides = [1, 1]} : vector<64x128xf32> to vector<8x128xf32>
    %c0_127 = arith.constant 0 : index
    %c0_128 = arith.constant 0 : index
    %c0_129 = arith.constant 0 : index
    %368 = vector.load %arg4[%c0_127, %c0_128, %c0_129] : memref<2x32x128xf32, #tpu.memory_space<vmem>>, vector<1x32x128xf32>
    %369 = vector.shape_cast %368 : vector<1x32x128xf32> to vector<32x128xf32>
    %cst_130 = arith.constant dense<0.000000e+00> : vector<8x128xf32>
    %370 = tpu.matmul %322, %369, %cst_130 {dimension_numbers = #tpu.dot_dimension_numbers<[1], [0], [0], [1], [0, 0, 1, 1], [], []>} : vector<8x32xf32>, vector<32x128xf32>, vector<8x128xf32> -> vector<8x128xf32>
    %371 = arith.addf %367, %370 : vector<8x128xf32>
    %c0_131 = arith.constant 0 : index
    %c0_132 = arith.constant 0 : index
    %c0_133 = arith.constant 0 : index
    %372 = vector.load %arg5[%c0_131, %c0_132, %c0_133] : memref<2x1x128xf32, #tpu.memory_space<vmem>>, vector<1x1x128xf32>
    %373 = vector.shape_cast %372 : vector<1x1x128xf32> to vector<1x128xf32>
    %374 = vector.broadcast %373 : vector<1x128xf32> to vector<8x128xf32>
    %375 = arith.addf %371, %374 : vector<8x128xf32>
    %376 = arith.negf %375 : vector<8x128xf32>
    %377 = math.exp %376 : vector<8x128xf32>
    %cst_134 = arith.constant 1.000000e+00 : f32
    %378 = vector.broadcast %cst_134 : f32 to vector<8x128xf32>
    %379 = arith.addf %378, %377 : vector<8x128xf32>
    %380 = arith.divf %378, %379 : vector<8x128xf32>
    %381 = math.tanh %375 : vector<8x128xf32>
    %382 = vector.extract_strided_slice %380 {offsets = [0, 0], sizes = [8, 32], strides = [1, 1]} : vector<8x128xf32> to vector<8x32xf32>
    %383 = vector.extract_strided_slice %380 {offsets = [0, 32], sizes = [8, 32], strides = [1, 1]} : vector<8x128xf32> to vector<8x32xf32>
    %384 = vector.extract_strided_slice %381 {offsets = [0, 64], sizes = [8, 32], strides = [1, 1]} : vector<8x128xf32> to vector<8x32xf32>
    %385 = vector.extract_strided_slice %380 {offsets = [0, 96], sizes = [8, 32], strides = [1, 1]} : vector<8x128xf32> to vector<8x32xf32>
    %386 = arith.mulf %383, %325 : vector<8x32xf32>
    %387 = arith.mulf %382, %384 : vector<8x32xf32>
    %388 = arith.addf %386, %387 : vector<8x32xf32>
    %389 = math.tanh %388 : vector<8x32xf32>
    %390 = arith.mulf %385, %389 : vector<8x32xf32>
    %391 = vector.shape_cast %366 : vector<8x1xi1> to vector<8x1xi1>
    %392 = vector.broadcast %391 : vector<8x1xi1> to vector<8x32xi1>
    %393 = arith.select %392, %390, %322 : vector<8x32xi1>, vector<8x32xf32>
    %394 = vector.shape_cast %366 : vector<8x1xi1> to vector<8x1xi1>
    %395 = vector.broadcast %394 : vector<8x1xi1> to vector<8x32xi1>
    %396 = arith.select %395, %388, %325 : vector<8x32xi1>, vector<8x32xf32>
    %c1_135 = arith.constant 1 : index
    %c0_136 = arith.constant 0 : index
    %c0_137 = arith.constant 0 : index
    %397 = vector.load %arg3[%c1_135, %c0_136, %c0_137] : memref<2x32x128xf32, #tpu.memory_space<vmem>>, vector<1x32x128xf32>
    %398 = vector.shape_cast %397 : vector<1x32x128xf32> to vector<32x128xf32>
    %cst_138 = arith.constant dense<0.000000e+00> : vector<8x128xf32>
    %399 = tpu.matmul %390, %398, %cst_138 {dimension_numbers = #tpu.dot_dimension_numbers<[1], [0], [0], [1], [0, 0, 1, 1], [], []>} : vector<8x32xf32>, vector<32x128xf32>, vector<8x128xf32> -> vector<8x128xf32>
    %c1_139 = arith.constant 1 : index
    %c0_140 = arith.constant 0 : index
    %c0_141 = arith.constant 0 : index
    %400 = vector.load %arg4[%c1_139, %c0_140, %c0_141] : memref<2x32x128xf32, #tpu.memory_space<vmem>>, vector<1x32x128xf32>
    %401 = vector.shape_cast %400 : vector<1x32x128xf32> to vector<32x128xf32>
    %cst_142 = arith.constant dense<0.000000e+00> : vector<8x128xf32>
    %402 = tpu.matmul %354, %401, %cst_142 {dimension_numbers = #tpu.dot_dimension_numbers<[1], [0], [0], [1], [0, 0, 1, 1], [], []>} : vector<8x32xf32>, vector<32x128xf32>, vector<8x128xf32> -> vector<8x128xf32>
    %403 = arith.addf %399, %402 : vector<8x128xf32>
    %c1_143 = arith.constant 1 : index
    %c0_144 = arith.constant 0 : index
    %c0_145 = arith.constant 0 : index
    %404 = vector.load %arg5[%c1_143, %c0_144, %c0_145] : memref<2x1x128xf32, #tpu.memory_space<vmem>>, vector<1x1x128xf32>
    %405 = vector.shape_cast %404 : vector<1x1x128xf32> to vector<1x128xf32>
    %406 = vector.broadcast %405 : vector<1x128xf32> to vector<8x128xf32>
    %407 = arith.addf %403, %406 : vector<8x128xf32>
    %408 = arith.negf %407 : vector<8x128xf32>
    %409 = math.exp %408 : vector<8x128xf32>
    %cst_146 = arith.constant 1.000000e+00 : f32
    %410 = vector.broadcast %cst_146 : f32 to vector<8x128xf32>
    %411 = arith.addf %410, %409 : vector<8x128xf32>
    %412 = arith.divf %410, %411 : vector<8x128xf32>
    %413 = math.tanh %407 : vector<8x128xf32>
    %414 = vector.extract_strided_slice %412 {offsets = [0, 0], sizes = [8, 32], strides = [1, 1]} : vector<8x128xf32> to vector<8x32xf32>
    %415 = vector.extract_strided_slice %412 {offsets = [0, 32], sizes = [8, 32], strides = [1, 1]} : vector<8x128xf32> to vector<8x32xf32>
    %416 = vector.extract_strided_slice %413 {offsets = [0, 64], sizes = [8, 32], strides = [1, 1]} : vector<8x128xf32> to vector<8x32xf32>
    %417 = vector.extract_strided_slice %412 {offsets = [0, 96], sizes = [8, 32], strides = [1, 1]} : vector<8x128xf32> to vector<8x32xf32>
    %418 = arith.mulf %415, %357 : vector<8x32xf32>
    %419 = arith.mulf %414, %416 : vector<8x32xf32>
    %420 = arith.addf %418, %419 : vector<8x32xf32>
    %421 = math.tanh %420 : vector<8x32xf32>
    %422 = arith.mulf %417, %421 : vector<8x32xf32>
    %423 = vector.shape_cast %366 : vector<8x1xi1> to vector<8x1xi1>
    %424 = vector.broadcast %423 : vector<8x1xi1> to vector<8x32xi1>
    %425 = arith.select %424, %422, %354 : vector<8x32xi1>, vector<8x32xf32>
    %426 = vector.shape_cast %366 : vector<8x1xi1> to vector<8x1xi1>
    %427 = vector.broadcast %426 : vector<8x1xi1> to vector<8x32xi1>
    %428 = arith.select %427, %420, %357 : vector<8x32xi1>, vector<8x32xf32>
    %cst_147 = arith.constant 0.000000e+00 : f32
    %429 = vector.shape_cast %366 : vector<8x1xi1> to vector<8x1xi1>
    %430 = vector.broadcast %429 : vector<8x1xi1> to vector<8x32xi1>
    %431 = vector.broadcast %cst_147 : f32 to vector<8x32xf32>
    %432 = arith.select %430, %425, %431 : vector<8x32xi1>, vector<8x32xf32>
    %c0_148 = arith.constant 0 : index
    %c5 = arith.constant 5 : index
    %c0_149 = arith.constant 0 : index
    %433 = vector.load %arg9[%c0_148, %c5, %c0_149] : memref<8x8x32xf32, #tpu.memory_space<vmem>>, vector<8x1x32xf32>
    %434 = vector.shape_cast %433 : vector<8x1x32xf32> to vector<8x32xf32>
    %435 = vector.shape_cast %432 : vector<8x32xf32> to vector<8x1x32xf32>
    tpu.vector_store %arg9[%c0_148, %c5, %c0_149], %435 {strides = array<i32>} : memref<8x8x32xf32, #tpu.memory_space<vmem>>, vector<8x1x32xf32>,
    %c6_i32 = arith.constant 6 : i32
    %436 = vector.broadcast %c6_i32 : i32 to vector<8x1xi32>
    %437 = arith.cmpi sgt, %0, %436 : vector<8x1xi32>
    %438 = vector.extract_strided_slice %5 {offsets = [48, 0], sizes = [8, 128], strides = [1, 1]} : vector<64x128xf32> to vector<8x128xf32>
    %c0_150 = arith.constant 0 : index
    %c0_151 = arith.constant 0 : index
    %c0_152 = arith.constant 0 : index
    %439 = vector.load %arg4[%c0_150, %c0_151, %c0_152] : memref<2x32x128xf32, #tpu.memory_space<vmem>>, vector<1x32x128xf32>
    %440 = vector.shape_cast %439 : vector<1x32x128xf32> to vector<32x128xf32>
    %cst_153 = arith.constant dense<0.000000e+00> : vector<8x128xf32>
    %441 = tpu.matmul %393, %440, %cst_153 {dimension_numbers = #tpu.dot_dimension_numbers<[1], [0], [0], [1], [0, 0, 1, 1], [], []>} : vector<8x32xf32>, vector<32x128xf32>, vector<8x128xf32> -> vector<8x128xf32>
    %442 = arith.addf %438, %441 : vector<8x128xf32>
    %c0_154 = arith.constant 0 : index
    %c0_155 = arith.constant 0 : index
    %c0_156 = arith.constant 0 : index
    %443 = vector.load %arg5[%c0_154, %c0_155, %c0_156] : memref<2x1x128xf32, #tpu.memory_space<vmem>>, vector<1x1x128xf32>
    %444 = vector.shape_cast %443 : vector<1x1x128xf32> to vector<1x128xf32>
    %445 = vector.broadcast %444 : vector<1x128xf32> to vector<8x128xf32>
    %446 = arith.addf %442, %445 : vector<8x128xf32>
    %447 = arith.negf %446 : vector<8x128xf32>
    %448 = math.exp %447 : vector<8x128xf32>
    %cst_157 = arith.constant 1.000000e+00 : f32
    %449 = vector.broadcast %cst_157 : f32 to vector<8x128xf32>
    %450 = arith.addf %449, %448 : vector<8x128xf32>
    %451 = arith.divf %449, %450 : vector<8x128xf32>
    %452 = math.tanh %446 : vector<8x128xf32>
    %453 = vector.extract_strided_slice %451 {offsets = [0, 0], sizes = [8, 32], strides = [1, 1]} : vector<8x128xf32> to vector<8x32xf32>
    %454 = vector.extract_strided_slice %451 {offsets = [0, 32], sizes = [8, 32], strides = [1, 1]} : vector<8x128xf32> to vector<8x32xf32>
    %455 = vector.extract_strided_slice %452 {offsets = [0, 64], sizes = [8, 32], strides = [1, 1]} : vector<8x128xf32> to vector<8x32xf32>
    %456 = vector.extract_strided_slice %451 {offsets = [0, 96], sizes = [8, 32], strides = [1, 1]} : vector<8x128xf32> to vector<8x32xf32>
    %457 = arith.mulf %454, %396 : vector<8x32xf32>
    %458 = arith.mulf %453, %455 : vector<8x32xf32>
    %459 = arith.addf %457, %458 : vector<8x32xf32>
    %460 = math.tanh %459 : vector<8x32xf32>
    %461 = arith.mulf %456, %460 : vector<8x32xf32>
    %462 = vector.shape_cast %437 : vector<8x1xi1> to vector<8x1xi1>
    %463 = vector.broadcast %462 : vector<8x1xi1> to vector<8x32xi1>
    %464 = arith.select %463, %461, %393 : vector<8x32xi1>, vector<8x32xf32>
    %465 = vector.shape_cast %437 : vector<8x1xi1> to vector<8x1xi1>
    %466 = vector.broadcast %465 : vector<8x1xi1> to vector<8x32xi1>
    %467 = arith.select %466, %459, %396 : vector<8x32xi1>, vector<8x32xf32>
    %c1_158 = arith.constant 1 : index
    %c0_159 = arith.constant 0 : index
    %c0_160 = arith.constant 0 : index
    %468 = vector.load %arg3[%c1_158, %c0_159, %c0_160] : memref<2x32x128xf32, #tpu.memory_space<vmem>>, vector<1x32x128xf32>
    %469 = vector.shape_cast %468 : vector<1x32x128xf32> to vector<32x128xf32>
    %cst_161 = arith.constant dense<0.000000e+00> : vector<8x128xf32>
    %470 = tpu.matmul %461, %469, %cst_161 {dimension_numbers = #tpu.dot_dimension_numbers<[1], [0], [0], [1], [0, 0, 1, 1], [], []>} : vector<8x32xf32>, vector<32x128xf32>, vector<8x128xf32> -> vector<8x128xf32>
    %c1_162 = arith.constant 1 : index
    %c0_163 = arith.constant 0 : index
    %c0_164 = arith.constant 0 : index
    %471 = vector.load %arg4[%c1_162, %c0_163, %c0_164] : memref<2x32x128xf32, #tpu.memory_space<vmem>>, vector<1x32x128xf32>
    %472 = vector.shape_cast %471 : vector<1x32x128xf32> to vector<32x128xf32>
    %cst_165 = arith.constant dense<0.000000e+00> : vector<8x128xf32>
    %473 = tpu.matmul %425, %472, %cst_165 {dimension_numbers = #tpu.dot_dimension_numbers<[1], [0], [0], [1], [0, 0, 1, 1], [], []>} : vector<8x32xf32>, vector<32x128xf32>, vector<8x128xf32> -> vector<8x128xf32>
    %474 = arith.addf %470, %473 : vector<8x128xf32>
    %c1_166 = arith.constant 1 : index
    %c0_167 = arith.constant 0 : index
    %c0_168 = arith.constant 0 : index
    %475 = vector.load %arg5[%c1_166, %c0_167, %c0_168] : memref<2x1x128xf32, #tpu.memory_space<vmem>>, vector<1x1x128xf32>
    %476 = vector.shape_cast %475 : vector<1x1x128xf32> to vector<1x128xf32>
    %477 = vector.broadcast %476 : vector<1x128xf32> to vector<8x128xf32>
    %478 = arith.addf %474, %477 : vector<8x128xf32>
    %479 = arith.negf %478 : vector<8x128xf32>
    %480 = math.exp %479 : vector<8x128xf32>
    %cst_169 = arith.constant 1.000000e+00 : f32
    %481 = vector.broadcast %cst_169 : f32 to vector<8x128xf32>
    %482 = arith.addf %481, %480 : vector<8x128xf32>
    %483 = arith.divf %481, %482 : vector<8x128xf32>
    %484 = math.tanh %478 : vector<8x128xf32>
    %485 = vector.extract_strided_slice %483 {offsets = [0, 0], sizes = [8, 32], strides = [1, 1]} : vector<8x128xf32> to vector<8x32xf32>
    %486 = vector.extract_strided_slice %483 {offsets = [0, 32], sizes = [8, 32], strides = [1, 1]} : vector<8x128xf32> to vector<8x32xf32>
    %487 = vector.extract_strided_slice %484 {offsets = [0, 64], sizes = [8, 32], strides = [1, 1]} : vector<8x128xf32> to vector<8x32xf32>
    %488 = vector.extract_strided_slice %483 {offsets = [0, 96], sizes = [8, 32], strides = [1, 1]} : vector<8x128xf32> to vector<8x32xf32>
    %489 = arith.mulf %486, %428 : vector<8x32xf32>
    %490 = arith.mulf %485, %487 : vector<8x32xf32>
    %491 = arith.addf %489, %490 : vector<8x32xf32>
    %492 = math.tanh %491 : vector<8x32xf32>
    %493 = arith.mulf %488, %492 : vector<8x32xf32>
    %494 = vector.shape_cast %437 : vector<8x1xi1> to vector<8x1xi1>
    %495 = vector.broadcast %494 : vector<8x1xi1> to vector<8x32xi1>
    %496 = arith.select %495, %493, %425 : vector<8x32xi1>, vector<8x32xf32>
    %497 = vector.shape_cast %437 : vector<8x1xi1> to vector<8x1xi1>
    %498 = vector.broadcast %497 : vector<8x1xi1> to vector<8x32xi1>
    %499 = arith.select %498, %491, %428 : vector<8x32xi1>, vector<8x32xf32>
    %cst_170 = arith.constant 0.000000e+00 : f32
    %500 = vector.shape_cast %437 : vector<8x1xi1> to vector<8x1xi1>
    %501 = vector.broadcast %500 : vector<8x1xi1> to vector<8x32xi1>
    %502 = vector.broadcast %cst_170 : f32 to vector<8x32xf32>
    %503 = arith.select %501, %496, %502 : vector<8x32xi1>, vector<8x32xf32>
    %c0_171 = arith.constant 0 : index
    %c6 = arith.constant 6 : index
    %c0_172 = arith.constant 0 : index
    %504 = vector.load %arg9[%c0_171, %c6, %c0_172] : memref<8x8x32xf32, #tpu.memory_space<vmem>>, vector<8x1x32xf32>
    %505 = vector.shape_cast %504 : vector<8x1x32xf32> to vector<8x32xf32>
    %506 = vector.shape_cast %503 : vector<8x32xf32> to vector<8x1x32xf32>
    tpu.vector_store %arg9[%c0_171, %c6, %c0_172], %506 {strides = array<i32>} : memref<8x8x32xf32, #tpu.memory_space<vmem>>, vector<8x1x32xf32>,
    %c7_i32 = arith.constant 7 : i32
    %507 = vector.broadcast %c7_i32 : i32 to vector<8x1xi32>
    %508 = arith.cmpi sgt, %0, %507 : vector<8x1xi32>
    %509 = vector.extract_strided_slice %5 {offsets = [56, 0], sizes = [8, 128], strides = [1, 1]} : vector<64x128xf32> to vector<8x128xf32>
    %c0_173 = arith.constant 0 : index
    %c0_174 = arith.constant 0 : index
    %c0_175 = arith.constant 0 : index
    %510 = vector.load %arg4[%c0_173, %c0_174, %c0_175] : memref<2x32x128xf32, #tpu.memory_space<vmem>>, vector<1x32x128xf32>
    %511 = vector.shape_cast %510 : vector<1x32x128xf32> to vector<32x128xf32>
    %cst_176 = arith.constant dense<0.000000e+00> : vector<8x128xf32>
    %512 = tpu.matmul %464, %511, %cst_176 {dimension_numbers = #tpu.dot_dimension_numbers<[1], [0], [0], [1], [0, 0, 1, 1], [], []>} : vector<8x32xf32>, vector<32x128xf32>, vector<8x128xf32> -> vector<8x128xf32>
    %513 = arith.addf %509, %512 : vector<8x128xf32>
    %c0_177 = arith.constant 0 : index
    %c0_178 = arith.constant 0 : index
    %c0_179 = arith.constant 0 : index
    %514 = vector.load %arg5[%c0_177, %c0_178, %c0_179] : memref<2x1x128xf32, #tpu.memory_space<vmem>>, vector<1x1x128xf32>
    %515 = vector.shape_cast %514 : vector<1x1x128xf32> to vector<1x128xf32>
    %516 = vector.broadcast %515 : vector<1x128xf32> to vector<8x128xf32>
    %517 = arith.addf %513, %516 : vector<8x128xf32>
    %518 = arith.negf %517 : vector<8x128xf32>
    %519 = math.exp %518 : vector<8x128xf32>
    %cst_180 = arith.constant 1.000000e+00 : f32
    %520 = vector.broadcast %cst_180 : f32 to vector<8x128xf32>
    %521 = arith.addf %520, %519 : vector<8x128xf32>
    %522 = arith.divf %520, %521 : vector<8x128xf32>
    %523 = math.tanh %517 : vector<8x128xf32>
    %524 = vector.extract_strided_slice %522 {offsets = [0, 0], sizes = [8, 32], strides = [1, 1]} : vector<8x128xf32> to vector<8x32xf32>
    %525 = vector.extract_strided_slice %522 {offsets = [0, 32], sizes = [8, 32], strides = [1, 1]} : vector<8x128xf32> to vector<8x32xf32>
    %526 = vector.extract_strided_slice %523 {offsets = [0, 64], sizes = [8, 32], strides = [1, 1]} : vector<8x128xf32> to vector<8x32xf32>
    %527 = vector.extract_strided_slice %522 {offsets = [0, 96], sizes = [8, 32], strides = [1, 1]} : vector<8x128xf32> to vector<8x32xf32>
    %528 = arith.mulf %525, %467 : vector<8x32xf32>
    %529 = arith.mulf %524, %526 : vector<8x32xf32>
    %530 = arith.addf %528, %529 : vector<8x32xf32>
    %531 = math.tanh %530 : vector<8x32xf32>
    %532 = arith.mulf %527, %531 : vector<8x32xf32>
    %c1_181 = arith.constant 1 : index
    %c0_182 = arith.constant 0 : index
    %c0_183 = arith.constant 0 : index
    %533 = vector.load %arg3[%c1_181, %c0_182, %c0_183] : memref<2x32x128xf32, #tpu.memory_space<vmem>>, vector<1x32x128xf32>
    %534 = vector.shape_cast %533 : vector<1x32x128xf32> to vector<32x128xf32>
    %cst_184 = arith.constant dense<0.000000e+00> : vector<8x128xf32>
    %535 = tpu.matmul %532, %534, %cst_184 {dimension_numbers = #tpu.dot_dimension_numbers<[1], [0], [0], [1], [0, 0, 1, 1], [], []>} : vector<8x32xf32>, vector<32x128xf32>, vector<8x128xf32> -> vector<8x128xf32>
    %c1_185 = arith.constant 1 : index
    %c0_186 = arith.constant 0 : index
    %c0_187 = arith.constant 0 : index
    %536 = vector.load %arg4[%c1_185, %c0_186, %c0_187] : memref<2x32x128xf32, #tpu.memory_space<vmem>>, vector<1x32x128xf32>
    %537 = vector.shape_cast %536 : vector<1x32x128xf32> to vector<32x128xf32>
    %cst_188 = arith.constant dense<0.000000e+00> : vector<8x128xf32>
    %538 = tpu.matmul %496, %537, %cst_188 {dimension_numbers = #tpu.dot_dimension_numbers<[1], [0], [0], [1], [0, 0, 1, 1], [], []>} : vector<8x32xf32>, vector<32x128xf32>, vector<8x128xf32> -> vector<8x128xf32>
    %539 = arith.addf %535, %538 : vector<8x128xf32>
    %c1_189 = arith.constant 1 : index
    %c0_190 = arith.constant 0 : index
    %c0_191 = arith.constant 0 : index
    %540 = vector.load %arg5[%c1_189, %c0_190, %c0_191] : memref<2x1x128xf32, #tpu.memory_space<vmem>>, vector<1x1x128xf32>
    %541 = vector.shape_cast %540 : vector<1x1x128xf32> to vector<1x128xf32>
    %542 = vector.broadcast %541 : vector<1x128xf32> to vector<8x128xf32>
    %543 = arith.addf %539, %542 : vector<8x128xf32>
    %544 = arith.negf %543 : vector<8x128xf32>
    %545 = math.exp %544 : vector<8x128xf32>
    %cst_192 = arith.constant 1.000000e+00 : f32
    %546 = vector.broadcast %cst_192 : f32 to vector<8x128xf32>
    %547 = arith.addf %546, %545 : vector<8x128xf32>
    %548 = arith.divf %546, %547 : vector<8x128xf32>
    %549 = math.tanh %543 : vector<8x128xf32>
    %550 = vector.extract_strided_slice %548 {offsets = [0, 0], sizes = [8, 32], strides = [1, 1]} : vector<8x128xf32> to vector<8x32xf32>
    %551 = vector.extract_strided_slice %548 {offsets = [0, 32], sizes = [8, 32], strides = [1, 1]} : vector<8x128xf32> to vector<8x32xf32>
    %552 = vector.extract_strided_slice %549 {offsets = [0, 64], sizes = [8, 32], strides = [1, 1]} : vector<8x128xf32> to vector<8x32xf32>
    %553 = vector.extract_strided_slice %548 {offsets = [0, 96], sizes = [8, 32], strides = [1, 1]} : vector<8x128xf32> to vector<8x32xf32>
    %554 = arith.mulf %551, %499 : vector<8x32xf32>
    %555 = arith.mulf %550, %552 : vector<8x32xf32>
    %556 = arith.addf %554, %555 : vector<8x32xf32>
    %557 = math.tanh %556 : vector<8x32xf32>
    %558 = arith.mulf %553, %557 : vector<8x32xf32>
    %559 = vector.shape_cast %508 : vector<8x1xi1> to vector<8x1xi1>
    %560 = vector.broadcast %559 : vector<8x1xi1> to vector<8x32xi1>
    %561 = arith.select %560, %558, %496 : vector<8x32xi1>, vector<8x32xf32>
    %cst_193 = arith.constant 0.000000e+00 : f32
    %562 = vector.shape_cast %508 : vector<8x1xi1> to vector<8x1xi1>
    %563 = vector.broadcast %562 : vector<8x1xi1> to vector<8x32xi1>
    %564 = vector.broadcast %cst_193 : f32 to vector<8x32xf32>
    %565 = arith.select %563, %561, %564 : vector<8x32xi1>, vector<8x32xf32>
    %c0_194 = arith.constant 0 : index
    %c7 = arith.constant 7 : index
    %c0_195 = arith.constant 0 : index
    %566 = vector.load %arg9[%c0_194, %c7, %c0_195] : memref<8x8x32xf32, #tpu.memory_space<vmem>>, vector<8x1x32xf32>
    %567 = vector.shape_cast %566 : vector<8x1x32xf32> to vector<8x32xf32>
    %568 = vector.shape_cast %565 : vector<8x32xf32> to vector<8x1x32xf32>
    tpu.vector_store %arg9[%c0_194, %c7, %c0_195], %568 {strides = array<i32>} : memref<8x8x32xf32, #tpu.memory_space<vmem>>, vector<8x1x32xf32>,
    %c0_196 = arith.constant 0 : index
    %c0_197 = arith.constant 0 : index
    %c0_198 = arith.constant 0 : index
    %569 = vector.load %arg9[%c0_196, %c0_197, %c0_198] : memref<8x8x32xf32, #tpu.memory_space<vmem>>, vector<8x8x32xf32>
    %570 = vector.shape_cast %569 : vector<8x8x32xf32> to vector<64x32xf32>
    %c0_199 = arith.constant 0 : index
    %c0_200 = arith.constant 0 : index
    %571 = vector.load %arg6[%c0_199, %c0_200] : memref<32x128xf32, #tpu.memory_space<vmem>>, vector<32x128xf32>
    %cst_201 = arith.constant dense<0.000000e+00> : vector<64x128xf32>
    %572 = tpu.matmul %570, %571, %cst_201 {dimension_numbers = #tpu.dot_dimension_numbers<[1], [0], [0], [1], [0, 0, 1, 1], [], []>} : vector<64x32xf32>, vector<32x128xf32>, vector<64x128xf32> -> vector<64x128xf32>
    %c0_202 = arith.constant 0 : index
    %c0_203 = arith.constant 0 : index
    %573 = vector.load %arg7[%c0_202, %c0_203] : memref<1x128xf32, #tpu.memory_space<vmem>>, vector<1x128xf32>
    %574 = vector.broadcast %573 : vector<1x128xf32> to vector<64x128xf32>
    %575 = arith.addf %572, %574 : vector<64x128xf32>
    %c0_204 = arith.constant 0 : index
    %c0_205 = arith.constant 0 : index
    %576 = vector.load %arg8[%c0_204, %c0_205] : memref<64x128xf32, #tpu.memory_space<vmem>>, vector<64x128xf32>
    tpu.vector_store %arg8[%c0_204, %c0_205], %575 {strides = array<i32>} : memref<64x128xf32, #tpu.memory_space<vmem>>, vector<64x128xf32>,
    return
  }
  func.func @transform_0(%arg0: i32) -> (i32, i32) {
    %c0_i32 = arith.constant 0 : i32
    %c0_i32_0 = arith.constant 0 : i32
    %c0_i32_1 = arith.constant 0 : i32
    return %c0_i32, %c0_i32_0 : i32, i32
  }
  func.func @transform_1(%arg0: i32) -> (i32, i32, i32) {
    %c0_i32 = arith.constant 0 : i32
    %c0_i32_0 = arith.constant 0 : i32
    %c0_i32_1 = arith.constant 0 : i32
    %c0_i32_2 = arith.constant 0 : i32
    return %c0_i32, %c0_i32_0, %c0_i32_1 : i32, i32, i32
  }
  func.func @transform_2(%arg0: i32) -> (i32, i32, i32) {
    %c0_i32 = arith.constant 0 : i32
    %c0_i32_0 = arith.constant 0 : i32
    %c0_i32_1 = arith.constant 0 : i32
    %c0_i32_2 = arith.constant 0 : i32
    return %c0_i32, %c0_i32_0, %c0_i32_1 : i32, i32, i32
  }
  func.func @transform_3(%arg0: i32) -> (i32, i32, i32) {
    %c0_i32 = arith.constant 0 : i32
    %c0_i32_0 = arith.constant 0 : i32
    %c0_i32_1 = arith.constant 0 : i32
    %c0_i32_2 = arith.constant 0 : i32
    return %c0_i32, %c0_i32_0, %c0_i32_1 : i32, i32, i32
  }
  func.func @transform_4(%arg0: i32) -> (i32, i32, i32) {
    %c0_i32 = arith.constant 0 : i32
    %c0_i32_0 = arith.constant 0 : i32
    %c0_i32_1 = arith.constant 0 : i32
    %c0_i32_2 = arith.constant 0 : i32
    return %c0_i32, %c0_i32_0, %c0_i32_1 : i32, i32, i32
  }
  func.func @transform_5(%arg0: i32) -> (i32, i32) {
    %c0_i32 = arith.constant 0 : i32
    %c0_i32_0 = arith.constant 0 : i32
    %c0_i32_1 = arith.constant 0 : i32
    return %c0_i32, %c0_i32_0 : i32, i32
  }
  func.func @transform_6(%arg0: i32) -> (i32, i32) {
    %c0_i32 = arith.constant 0 : i32
    %c0_i32_0 = arith.constant 0 : i32
    %c0_i32_1 = arith.constant 0 : i32
    return %c0_i32, %c0_i32_0 : i32, i32
  }
  func.func @transform_7(%arg0: i32) -> (i32, i32) {
    %c0_i32 = arith.constant 0 : i32
    %c0_i32_0 = arith.constant 0 : i32
    %c0_i32_1 = arith.constant 0 : i32
    return %c0_i32, %c0_i32_0 : i32, i32
  }
}

</mosaic_0001>

<bundles_post_ra>
// kernel: rnn_model_forward.1
= control target key start
LH: loop header
LB: loop body
LE: loop exit
PB: predicated region body
PF: predicated region fallthrough
CT: control target
= control target key end

     0   :  { %vm40_vm0 = vcmask 261120   ;;  %s5768_s0 = inlined_call_operand.vmem [shape: s32[8,1], index: 0, kind: input, shape index: {}]   ;;  %s5769_s1 = inlined_call_operand.vmem [shape: f32[8,8,32], index: 1, kind: input, shape index: {}]   ;;  %s5770_s2 = inlined_call_operand.vmem [shape: f32[2,32,128], index: 2, kind: input, shape index: {}]   ;;  %s5771_s3 = inlined_call_operand.vmem [shape: f32[2,32,128], index: 3, kind: input, shape index: {}]   ;;  %s5772_s4 = inlined_call_operand.vmem [shape: f32[2,1,128], index: 4, kind: input, shape index: {}]   ;;  %s5773_s5 = inlined_call_operand.vmem [shape: f32[32,128], index: 5, kind: input, shape index: {}]   ;;  %s5774_s6 = inlined_call_operand.vmem [shape: f32[1,128], index: 6, kind: input, shape index: {}]   ;;  %s5775_s7 = inlined_call_operand.hbm [shape: f32[64,128], index: 7, kind: output, shape index: {}]  }
   0x1   :  { %v36_v0 = vld [vmem:[%s5770_s2] sm:$0xff]  ;;  %v37_v1 = vld [vmem:[%s5770_s2 + $0x8] sm:$0xff]  ;;  %v38_v2 = vld [vmem:[%s5770_s2 + $0x10] sm:$0xff] }
   0x2   :  { %v4340_v3 = vpack.c.bf16 %v37_v1, %v36_v0  ;;  %v39_v4 = vld [vmem:[%s5770_s2 + $0x18] sm:$0xff]  ;;  %v32_v5 = vld [vmem:[%s5769_s1 + $0x20] sm:$0xff] }
   0x3   :  { %v4344_v6 = vpack.c.bf16 %v39_v4, %v38_v2  ;;  %4050 = vmatprep.mubr.msk.f32.mxu1 %vm40_vm0, %v32_v5  ;;  %v28_v7 = vld [vmem:[%s5769_s1] sm:$0xff] }
   0x4   :  { %4500 = vmatprep.subr.bf16.mxu1 %v4340_v3  ;;  %4341 = vmatprep.subr.bf16.mxu0 %v4340_v3 }
   0x5   :  { %4502 = vmatpush3.bf16.msra.mxu1 %v4340_v3  ;;  %4343 = vmatpush3.bf16.msra.mxu0 %v4340_v3 }
   0x6   :  { %12 = vsyncpa [#allocation4], 0  ;;  %4501 = vmatprep.subr.bf16.mxu1 %v4344_v6  ;;  %v171_v8 = vld [vmem:[%s5771_s3] sm:$0xff]  ;;  %v172_v9 = vld [vmem:[%s5771_s3 + $0x8] sm:$0xff]  ;;  %4345 = vmatprep.subr.bf16.mxu0 %v4344_v6  ;;  %v4669_v13 = vmov 0.0|0.0   ;;  %vm4670_vm1 = vmmov 0  }
   0x7   :  { %4044 = vmatprep.mubr.msk.f32.mxu0 %vm40_vm0, %v28_v7  ;;  %v33_v10 = vld [vmem:[%s5769_s1 + $0x28] sm:$0xff]  ;;  %v4748_v11 = vpack.c.bf16 %v172_v9, %v171_v8  ;;  %v34_v14 = vld [vmem:[%s5769_s1 + $0x30] sm:$0xff]  ;;  %v174_v16 = vld [vmem:[%s5771_s3 + $0x18] sm:$0xff]  ;;  %v4671_v19 = vmov 0.0   ;;  %v4672_v21 = vmov 0   ;;  %s4673_s10 = smov 64  }
   0x8   :  { %v29_v12 = vld [vmem:[%s5769_s1 + $0x8] sm:$0xff]  ;;  %v173_v15 = vld [vmem:[%s5771_s3 + $0x10] sm:$0xff]  ;;  %v35_v17 = vld [vmem:[%s5769_s1 + $0x38] sm:$0xff]  ;;  %4514 = vset.pattern.permute.xlu1 %v4672_v21  ;;  %4515 = vset.pattern.permute.xlu0 %v4672_v21  ;;  %s4674_s11 = smov 32   ;;  %s4676_s23 = smov [#allocation3]  }
   0x9   :  { %4503 = vmatpush3.bf16.msra.mxu1 %v4344_v6  ;;  %4347 = vmatpush3.bf16.msra.mxu0 %v4344_v6  ;;  %v4771_v18 = vpack.c.bf16 %v174_v16, %v173_v15  ;;  %v4785_v20 = vld [vmem:[%s5768_s0] sm:$0xff]  ;;  %v3764_v45 = vld [vmem:[%s5771_s3 + $0x28] sm:$0xff]  ;;  %v3765_v46 = vld [vmem:[%s5771_s3 + $0x30] sm:$0xff] }
   0xa   :  { %4348 = vmatprep.subr.bf16.mxu1 %v4669_v13  ;;  %4360 = vmatprep.subr.bf16.mxu0 %v4669_v13  ;;  %vm170_vm2 = vcmp.gt.s32.totalorder %v4785_v20, 0  ;;  %v4804_v30 = vld [vmem:[%s5772_s4] ss:$0 sm:$0xff]  ;;  %v3766_v48 = vld [vmem:[%s5771_s3 + $0x38] sm:$0xff]  ;;  %v3760_v50 = vld [vmem:[%s5770_s2 + $0x28] sm:$0xff]  ;;  %vm593_vm4 = vcmp.gt.s32.totalorder %v4785_v20, 1 }
   0xb   :  { %v281_v22 = vsel %vm170_vm2, 1, %v4672_v21  ;;  %v3763_v44 = vld [vmem:[%s5771_s3 + $0x20] sm:$0xff]  ;;  %v30_v52 = vld [vmem:[%s5769_s1 + $0x10] sm:$0xff]  ;;  %v31_v53 = vld [vmem:[%s5769_s1 + $0x18] sm:$0xff]  ;;  %v4844_v55 = vpack.c.bf16 %v3766_v48, %v3765_v46  ;;  %vm1019_vm6 = vcmp.gt.s32.totalorder %v4785_v20, 2  ;;  %vm1446_vm8 = vcmp.gt.s32.totalorder %v4785_v20, 3 }
   0xc   :  { %4051 = vmatmul.mubr.msk.f32.vlgmr.msra.gmra.mrb[0].mxu1 %vm40_vm0, %v33_v10  ;;  %4045 = vmatmul.mubr.msk.f32.vlgmr.msra.gmra.mrb[0].mxu0 %vm40_vm0, %v29_v12  ;;  %v4821_v47 = vpack.c.bf16 %v3764_v45, %v3763_v44  ;;  %v3759_v49 = vld [vmem:[%s5770_s2 + $0x20] sm:$0xff]  ;;  %v3761_v54 = vld [vmem:[%s5770_s2 + $0x30] sm:$0xff]  ;;  %v3762_v56 = vld [vmem:[%s5770_s2 + $0x38] sm:$0xff]  ;;  %vm1873_vm10 = vcmp.gt.s32.totalorder %v4785_v20, 4  ;;  %vm2300_vm12 = vcmp.gt.s32.totalorder %v4785_v20, 5  ;;  %vm584_vm2 = vcmask 253952  }
   0xd   :  { %4350 = vmatpush3.bf16.msra.mxu1 %v4748_v11  ;;  %4053 = vmatprep.mubr.msk.f32.mxu1 %vm40_vm0, %v34_v14  ;;  %v4832_v51 = vpack.c.bf16 %v3760_v50, %v3759_v49  ;;  %v4852_v57 = vpack.c.bf16 %v3762_v56, %v3761_v54  ;;  %v4901_v6 = vld [vmem:[%s5772_s4 + $0x1] ss:$0 sm:$0xff] }
   0xe   :  { %4351 = vmatprep.subr.bf16.mxu1 %v4669_v13  ;;  %283 = vperm.xlu1 %4514, %v281_v22   ;;  %v3838_v20 = vld [vmem:[%s5770_s2 + $0x20] sm:$0xff] }
   0xf   :  { %4047 = vmatprep.mubr.msk.f32.mxu0 %vm40_vm0, %v30_v52  ;;  %4362 = vmatpush3.bf16.msra.mxu0 %v4832_v51 }
  0x10   :  { %4054 = vmatmul.mubr.msk.f32.gmra.mrb[2].mxu1 %vm40_vm0, %v35_v17  ;;  %4048 = vmatmul.mubr.msk.f32.gmra.mrb[2].mxu0 %vm40_vm0, %v31_v53 }
  0x11   :  { %4353 = vmatpush3.bf16.msra.mxu1 %v4771_v18  ;;  %4064 = vmatprep.mubr.msk.f32.mxu1 %vm4670_vm1, %v4671_v19 }
  0x12   :  { %4354 = vmatprep.subr.bf16.mxu1 %v4669_v13  ;;  %4363 = vmatprep.subr.bf16.mxu0 %v4669_v13 }
  0x13   :  { %4086 = vmatprep.mubr.msk.f32.mxu0 %vm4670_vm1, %v4671_v19  ;;  %4365 = vmatpush3.bf16.msra.mxu0 %v4852_v57 }
  0x14   :  { %4065 = vmatmul.mubr.f32.vlgmr.msra.gmra.mrb[4].mxu1 %v4671_v19  ;;  %4372 = vmatprep.subr.bf16.mxu0 %v4669_v13 }
  0x15   :  { %4075 = vmatprep.mubr.msk.f32.mxu1 %vm4670_vm1, %v4671_v19  ;;  %4356 = vmatpush3.bf16.msra.mxu1 %v4821_v47 }
  0x16   :  { %4357 = vmatprep.subr.bf16.mxu1 %v4669_v13 }
  0x19   :  { %4359 = vmatpush3.bf16.msra.mxu1 %v4844_v55 }
  0x1a   :  { %4366 = vmatprep.subr.bf16.mxu1 %v4669_v13 }
  0x1c   :  { %4076 = vmatmul.mubr.f32.vlgmr.msra.gmra.mrb[6].mxu1 %v4671_v19 }
  0x1d   :  { %4368 = vmatpush3.bf16.msra.mxu1 %v4748_v11  ;;  %4097 = vmatprep.mubr.msk.f32.mxu1 %vm4670_vm1, %v4671_v19 }
  0x1e   :  { %4369 = vmatprep.subr.bf16.mxu1 %v4669_v13 }
  0x21   :  { %4371 = vmatpush3.bf16.msra.mxu1 %v4771_v18 }
  0x22   :  { %4378 = vmatprep.subr.bf16.mxu1 %v4669_v13 }
  0x8d   :  { %v4870_v59 = vpop.permute.xlu1 %283 }
  0x8e   :  { %vm285_vm3 = vcmp.eq.s32.totalorder %v4870_v59, 1 }
  0xdf   :  { %v4791_v23 = vpop.f32.mrb[0].mxu1  ;;  %v4793_v24 = vpop.f32.mrb[0].mxu0 }
  0xe0   :  { %v4795_v25 = vpop.f32.mrb[1].mxu1  ;;  %v131_v26 = vpop.f32.mrb[1].mxu0 }
  0xe3   :  { %v4797_v27 = vpop.f32.mrb[2].mxu1  ;;  %v4880_v63 = vpop.f32.mrb[2].mxu0 }
  0xe4   :  { %v4799_v28 = vpop.f32.mrb[3].mxu1  ;;  %v4882_v0 = vpop.f32.mrb[3].mxu0 }
  0xe7   :  { %v244_v29 = vpop.f32.mrb[4].mxu1 }
  0xe8   :  { %v248_v31 = vadd.f32 %v244_v29, %v131_v26  ;;  %v4066_v32 = vpop.f32.mrb[5].mxu1 }
  0xea   :  { %v256_v33 = vadd.f32 %v4804_v30, %v248_v31 }
  0xec   :  { %4516 = vtanh.f32 %v256_v33  ;;  %v3758_v35 = vmul.f32 -1.442695, %v256_v33 }
  0xee   :  { %4518 = vpow2.f32 %v3758_v35 }
  0xef   :  { %v364_v1 = vpop.f32.mrb[6].mxu1 }
  0xf0   :  { %v4077_v2 = vpop.f32.mrb[7].mxu1 }
  0xf6   :  { %v4517_v34 = vpop.eup %4516 }
  0xf7   :  { %266 = vrot.lane.b32.xlu0 %v4517_v34, %s4673_s10 }
  0xf8   :  { %v4519_v36 = vpop.eup %4518 }
  0xf9   :  { %v260_v37 = vadd.f32 1.0, %v4519_v36 }
  0xfb   :  { %4520 = vrcp.f32 %v260_v37 }
 0x105   :  { %v4521_v38 = vpop.eup %4520 }
 0x106   :  { %v264_v41 = vmul.f32 0.0, %v4521_v38 }
 0x169   :  { %v267_v39 = vpop.permute.xlu0 %266 }
 0x16a   :  { %v269_v40 = vmul.f32 %v4521_v38, %v267_v39 }
 0x16c   :  { %271 = vrot.lane.b32.xlu0 %v269_v40, %s4674_s11 }
 0x1de   :  { %v272_v42 = vpop.permute.xlu0 %271 }
 0x1df   :  { %v4809_v43 = vadd.f32 %v272_v42, %v264_v41 }
 0x1e1   :  { %4522 = vtanh.f32 %v4809_v43  ;;  %v4913_v40 = vsel %vm285_vm3, %v4809_v43, 0.0  ;;  %v706_v43 = vsel %vm593_vm4, 1, %v4672_v21 }
 0x1eb   :  { %v4523_v58 = vpop.eup %4522 }
 0x1ec   :  { %277 = vrot.lane.b32.xlu1 %v4523_v58, %s4673_s10 }
 0x25e   :  { %v278_v60 = vpop.permute.xlu1 %277 }
 0x25f   :  { %v280_v61 = vmul.f32 %v4521_v38, %v278_v60 }
 0x261   :  { %369 = vrot.lane.b32.xlu0 %v280_v61, %s4674_s11  ;;  %v4876_v62 = vsel %vm285_vm3, %v280_v61, 0.0 }
 0x262   :  { %599 = vrot.lane.b32.xlu1 %v4876_v62, %s4674_s11 }
 0x2d3   :  { %v370_v3 = vpop.permute.xlu0 %369 }
 0x2d4   :  { %4087 = vmatmul.mubr.msk.f32.vlgmr.msra.gmra.mrb[4].mxu0 %vm40_vm0, %v370_v3  ;;  %v600_v4 = vpop.permute.xlu1 %599 }
 0x2d5   :  { %4098 = vmatmul.mubr.msk.f32.vlgmr.msra.gmra.mrb[8].mxu1 %vm40_vm0, %v600_v4  ;;  %4374 = vmatpush3.bf16.msra.mxu0 %v4821_v47 }
 0x2d6   :  { %4375 = vmatprep.subr.bf16.mxu0 %v4669_v13  ;;  %4380 = vmatpush3.bf16.msra.mxu1 %v4832_v51 }
 0x2d7   :  { %4108 = vmatprep.mubr.msk.f32.mxu0 %vm4670_vm1, %v4671_v19  ;;  %4381 = vmatprep.subr.bf16.mxu1 %v4669_v13 }
 0x2d8   :  { %4119 = vmatprep.mubr.msk.f32.mxu1 %vm4670_vm1, %v4671_v19 }
 0x2d9   :  { %4377 = vmatpush3.bf16.msra.mxu0 %v4844_v55 }
 0x2da   :  { %4383 = vmatpush3.bf16.msra.mxu1 %v4852_v57  ;;  %4384 = vmatprep.subr.bf16.mxu0 %v4669_v13 }
 0x2db   :  { %4390 = vmatprep.subr.bf16.mxu1 %v4669_v13 }
 0x3a7   :  { %v439_v5 = vpop.f32.mrb[4].mxu0 }
 0x3a8   :  { %v440_v7 = vadd.f32 %v439_v5, %v364_v1  ;;  %v4088_v8 = vpop.f32.mrb[5].mxu0  ;;  %v669_v9 = vpop.f32.mrb[8].mxu1 }
 0x3a9   :  { %v673_v10 = vadd.f32 %v4793_v24, %v669_v9  ;;  %v4099_v12 = vpop.f32.mrb[9].mxu1 }
 0x3aa   :  { %v451_v14 = vadd.f32 %v4901_v6, %v440_v7 }
 0x3ab   :  { %v681_v15 = vadd.f32 %v4804_v30, %v673_v10 }
 0x3ac   :  { %4524 = vtanh.f32 %v451_v14  ;;  %v3770_v22 = vmul.f32 -1.442695, %v451_v14 }
 0x3ad   :  { %4526 = vtanh.f32 %v681_v15  ;;  %v3773_v26 = vmul.f32 -1.442695, %v681_v15 }
 0x3ae   :  { %4528 = vpow2.f32 %v3770_v22 }
 0x3af   :  { %4530 = vpow2.f32 %v3773_v26 }
 0x3b6   :  { %v4525_v16 = vpop.eup %4524 }
 0x3b7   :  { %v4527_v17 = vpop.eup %4526  ;;  %461 = vrot.lane.b32.xlu0 %v4525_v16, %s4673_s10 }
 0x3b8   :  { %691 = vrot.lane.b32.xlu1 %v4527_v17, %s4673_s10  ;;  %v4529_v29 = vpop.eup %4528 }
 0x3b9   :  { %v4531_v31 = vpop.eup %4530  ;;  %v455_v24 = vadd.f32 1.0, %v4529_v29 }
 0x3ba   :  { %v685_v32 = vadd.f32 1.0, %v4531_v31 }
 0x3bb   :  { %4532 = vrcp.f32 %v455_v24 }
 0x3bc   :  { %4534 = vrcp.f32 %v685_v32 }
 0x3c5   :  { %v4533_v33 = vpop.eup %4532 }
 0x3c6   :  { %v4535_v35 = vpop.eup %4534  ;;  %v459_v39 = vmul.f32 0.0, %v4533_v33 }
 0x3c7   :  { %v689_v42 = vmul.f32 %v4535_v35, %v4913_v40 }
 0x429   :  { %v462_v34 = vpop.permute.xlu0 %461 }
 0x42a   :  { %v464_v36 = vmul.f32 %v4533_v33, %v462_v34  ;;  %v692_v37 = vpop.permute.xlu1 %691 }
 0x42b   :  { %v694_v38 = vmul.f32 %v4535_v35, %v692_v37  ;;  %v1132_v37 = vsel %vm1019_vm6, 1, %v4672_v21 }
 0x42c   :  { %466 = vrot.lane.b32.xlu0 %v464_v36, %s4674_s11 }
 0x42d   :  { %696 = vrot.lane.b32.xlu1 %v694_v38, %s4674_s11 }
 0x49e   :  { %v467_v41 = vpop.permute.xlu0 %466 }
 0x49f   :  { %v4916_v44 = vadd.f32 %v467_v41, %v459_v39  ;;  %v697_v45 = vpop.permute.xlu1 %696 }
 0x4a0   :  { %v4918_v46 = vadd.f32 %v697_v45, %v689_v42 }
 0x4a1   :  { %4536 = vtanh.f32 %v4916_v44  ;;  %v4976_v38 = vsel %vm285_vm3, %v4916_v44, 0.0 }
 0x4a2   :  { %4538 = vtanh.f32 %v4918_v46 }
 0x4ab   :  { %v4537_v48 = vpop.eup %4536 }
 0x4ac   :  { %v4539_v49 = vpop.eup %4538  ;;  %472 = vrot.lane.b32.xlu0 %v4537_v48, %s4673_s10 }
 0x4ad   :  { %702 = vrot.lane.b32.xlu1 %v4539_v49, %s4673_s10 }
 0x4b0   :  { %708 = vperm.xlu0 %4515, %v706_v43  }
 0x51e   :  { %v473_v50 = vpop.permute.xlu0 %472 }
 0x51f   :  { %v475_v52 = vmul.f32 %v4533_v33, %v473_v50  ;;  %v703_v53 = vpop.permute.xlu1 %702 }
 0x520   :  { %v705_v56 = vmul.f32 %v4535_v35, %v703_v53 }
 0x521   :  { %v4928_v54 = vsel %vm285_vm3, %v475_v52, 0.0 }
 0x522   :  { %721 = vrot.lane.b32.xlu1 %v4928_v54, %s4674_s11 }
 0x526   :  { %796 = vrot.lane.b32.xlu1 %v705_v56, %s4674_s11 }
 0x52f   :  { %v4933_v58 = vpop.permute.xlu0 %708 }
 0x530   :  { %vm710_vm5 = vcmp.eq.s32.totalorder %v4933_v58, 1 }
 0x531   :  { %v4939_v60 = vsel %vm710_vm5, %v705_v56, %v4876_v62  ;;  %v4986_v45 = vsel %vm710_vm5, %v4918_v46, %v4913_v40 }
 0x532   :  { %1025 = vrot.lane.b32.xlu0 %v4939_v60, %s4674_s11 }
 0x594   :  { %v722_v61 = vpop.permute.xlu1 %721 }
 0x595   :  { %4109 = vmatmul.mubr.msk.f32.vlgmr.msra.gmra.mrb[6].mxu0 %vm40_vm0, %v722_v61 }
 0x596   :  { %4386 = vmatpush3.bf16.msra.mxu0 %v4748_v11  ;;  %4130 = vmatprep.mubr.msk.f32.mxu0 %vm4670_vm1, %v4671_v19 }
 0x597   :  { %4387 = vmatprep.subr.bf16.mxu0 %v4669_v13 }
 0x598   :  { %v797_v1 = vpop.permute.xlu1 %796 }
 0x599   :  { %4120 = vmatmul.mubr.msk.f32.vlgmr.msra.gmra.mrb[10].mxu1 %vm40_vm0, %v797_v1 }
 0x59a   :  { %4389 = vmatpush3.bf16.msra.mxu0 %v4771_v18  ;;  %4392 = vmatpush3.bf16.msra.mxu1 %v4821_v47 }
 0x59b   :  { %4393 = vmatprep.subr.bf16.mxu1 %v4669_v13  ;;  %4141 = vmatprep.mubr.msk.f32.mxu1 %vm4670_vm1, %v4671_v19 }
 0x59c   :  { %4396 = vmatprep.subr.bf16.mxu0 %v4669_v13 }
 0x59e   :  { %4395 = vmatpush3.bf16.msra.mxu1 %v4844_v55 }
 0x59f   :  { %4402 = vmatprep.subr.bf16.mxu1 %v4669_v13 }
 0x5a4   :  { %v1026_v62 = vpop.permute.xlu0 %1025 }
 0x5a5   :  { %4131 = vmatmul.mubr.msk.f32.vlgmr.msra.gmra.mrb[8].mxu0 %vm40_vm0, %v1026_v62 }
 0x5a6   :  { %4398 = vmatpush3.bf16.msra.mxu0 %v4832_v51  ;;  %4152 = vmatprep.mubr.msk.f32.mxu0 %vm4670_vm1, %v4671_v19 }
 0x5a7   :  { %4399 = vmatprep.subr.bf16.mxu0 %v4669_v13 }
 0x5aa   :  { %4401 = vmatpush3.bf16.msra.mxu0 %v4852_v57 }
 0x5ab   :  { %4408 = vmatprep.subr.bf16.mxu0 %v4669_v13 }
 0x668   :  { %v791_v2 = vpop.f32.mrb[6].mxu0 }
 0x669   :  { %v4110_v3 = vpop.f32.mrb[7].mxu0 }
 0x66c   :  { %v866_v4 = vpop.f32.mrb[10].mxu1 }
 0x66d   :  { %v867_v5 = vadd.f32 %v866_v4, %v791_v2  ;;  %v4121_v7 = vpop.f32.mrb[11].mxu1 }
 0x66f   :  { %v877_v8 = vadd.f32 %v4901_v6, %v867_v5 }
 0x671   :  { %4540 = vtanh.f32 %v877_v8  ;;  %v3786_v17 = vmul.f32 -1.442695, %v877_v8 }
 0x678   :  { %v1095_v9 = vpop.f32.mrb[8].mxu0 }
 0x679   :  { %v1099_v10 = vadd.f32 %v1095_v9, %v4882_v0  ;;  %v4132_v12 = vpop.f32.mrb[9].mxu0 }
 0x67b   :  { %v4541_v14 = vpop.eup %4540  ;;  %v1107_v15 = vadd.f32 %v4804_v30, %v1099_v10 }
 0x67c   :  { %887 = vrot.lane.b32.xlu1 %v4541_v14, %s4673_s10 }
 0x67d   :  { %4542 = vtanh.f32 %v1107_v15  ;;  %v3789_v22 = vmul.f32 -1.442695, %v1107_v15 }
 0x67e   :  { %4544 = vpow2.f32 %v3786_v17 }
 0x67f   :  { %4546 = vpow2.f32 %v3789_v22 }
 0x687   :  { %v4543_v16 = vpop.eup %4542 }
 0x688   :  { %1117 = vrot.lane.b32.xlu0 %v4543_v16, %s4673_s10  ;;  %v4545_v26 = vpop.eup %4544 }
 0x689   :  { %v881_v29 = vadd.f32 1.0, %v4545_v26  ;;  %v4547_v31 = vpop.eup %4546 }
 0x68a   :  { %v1111_v24 = vadd.f32 1.0, %v4547_v31 }
 0x68b   :  { %4548 = vrcp.f32 %v881_v29 }
 0x68c   :  { %4550 = vrcp.f32 %v1111_v24 }
 0x695   :  { %v4549_v0 = vpop.eup %4548 }
 0x696   :  { %v4551_v34 = vpop.eup %4550  ;;  %v885_v39 = vmul.f32 %v4549_v0, %v4976_v38 }
 0x697   :  { %v1115_v48 = vmul.f32 %v4551_v34, %v4986_v45 }
 0x6ee   :  { %v888_v32 = vpop.permute.xlu1 %887 }
 0x6ef   :  { %v890_v33 = vmul.f32 %v4549_v0, %v888_v32 }
 0x6f1   :  { %892 = vrot.lane.b32.xlu1 %v890_v33, %s4674_s11 }
 0x6fa   :  { %v1118_v35 = vpop.permute.xlu0 %1117 }
 0x6fb   :  { %v1120_v36 = vmul.f32 %v4551_v34, %v1118_v35 }
 0x6fd   :  { %1122 = vrot.lane.b32.xlu0 %v1120_v36, %s4674_s11 }
 0x701   :  { %1134 = vperm.xlu0 %4515, %v1132_v37  }
 0x763   :  { %v893_v41 = vpop.permute.xlu1 %892 }
 0x764   :  { %v4979_v42 = vadd.f32 %v893_v41, %v885_v39 }
 0x766   :  { %4552 = vtanh.f32 %v4979_v42  ;;  %v5047_v36 = vsel %vm710_vm5, %v4979_v42, %v4976_v38 }
 0x76f   :  { %v1123_v49 = vpop.permute.xlu0 %1122 }
 0x770   :  { %v4553_v43 = vpop.eup %4552  ;;  %v4989_v59 = vadd.f32 %v1123_v49, %v1115_v48 }
 0x771   :  { %898 = vrot.lane.b32.xlu1 %v4553_v43, %s4673_s10 }
 0x772   :  { %4554 = vtanh.f32 %v4989_v59 }
 0x77c   :  { %v4555_v44 = vpop.eup %4554 }
 0x77d   :  { %1128 = vrot.lane.b32.xlu1 %v4555_v44, %s4673_s10 }
 0x780   :  { %v5004_v46 = vpop.permute.xlu0 %1134 }
 0x781   :  { %vm1136_vm7 = vcmp.eq.s32.totalorder %v5004_v46, 1 }
 0x782   :  { %v5054_v39 = vsel %vm1136_vm7, %v4989_v59, %v4986_v45  ;;  %v1559_v45 = vsel %vm1446_vm8, 1, %v4672_v21 }
 0x7e3   :  { %v899_v50 = vpop.permute.xlu1 %898 }
 0x7e4   :  { %v4994_v52 = vmul.f32 %v4549_v0, %v899_v50 }
 0x7e6   :  { %v5000_v40 = vsel %vm710_vm5, %v4994_v52, %v4928_v54 }
 0x7e7   :  { %1148 = vrot.lane.b32.xlu0 %v5000_v40, %s4674_s11 }
 0x7ef   :  { %v1129_v53 = vpop.permute.xlu1 %1128 }
 0x7f0   :  { %v1131_v56 = vmul.f32 %v4551_v34, %v1129_v53 }
 0x7f2   :  { %1223 = vrot.lane.b32.xlu1 %v1131_v56, %s4674_s11  ;;  %v5011_v61 = vsel %vm1136_vm7, %v1131_v56, %v4939_v60 }
 0x7f3   :  { %1452 = vrot.lane.b32.xlu0 %v5011_v61, %s4674_s11 }
 0x859   :  { %v1149_v1 = vpop.permute.xlu0 %1148 }
 0x85a   :  { %4142 = vmatmul.mubr.msk.f32.vlgmr.msra.gmra.mrb[12].mxu1 %vm40_vm0, %v1149_v1 }
 0x85b   :  { %4404 = vmatpush3.bf16.msra.mxu1 %v4748_v11  ;;  %4163 = vmatprep.mubr.msk.f32.mxu1 %vm4670_vm1, %v4671_v19 }
 0x85c   :  { %4405 = vmatprep.subr.bf16.mxu1 %v4669_v13 }
 0x85f   :  { %4407 = vmatpush3.bf16.msra.mxu1 %v4771_v18 }
 0x860   :  { %4414 = vmatprep.subr.bf16.mxu1 %v4669_v13 }
 0x864   :  { %v1224_v62 = vpop.permute.xlu1 %1223 }
 0x865   :  { %4153 = vmatmul.mubr.msk.f32.vlgmr.msra.gmra.mrb[10].mxu0 %vm40_vm0, %v1224_v62  ;;  %v1453_v60 = vpop.permute.xlu0 %1452 }
 0x866   :  { %4164 = vmatmul.mubr.msk.f32.vlgmr.msra.gmra.mrb[14].mxu1 %vm40_vm0, %v1453_v60  ;;  %4410 = vmatpush3.bf16.msra.mxu0 %v4821_v47 }
 0x867   :  { %4416 = vmatpush3.bf16.msra.mxu1 %v4832_v51  ;;  %4411 = vmatprep.subr.bf16.mxu0 %v4669_v13 }
 0x868   :  { %4417 = vmatprep.subr.bf16.mxu1 %v4669_v13  ;;  %4174 = vmatprep.mubr.msk.f32.mxu0 %vm4670_vm1, %v4671_v19 }
 0x869   :  { %4185 = vmatprep.mubr.msk.f32.mxu1 %vm4670_vm1, %v4671_v19 }
 0x86a   :  { %4413 = vmatpush3.bf16.msra.mxu0 %v4844_v55 }
 0x86b   :  { %4419 = vmatpush3.bf16.msra.mxu1 %v4852_v57  ;;  %4420 = vmatprep.subr.bf16.mxu0 %v4669_v13 }
 0x86c   :  { %4426 = vmatprep.subr.bf16.mxu1 %v4669_v13 }
 0x92d   :  { %v1218_v2 = vpop.f32.mrb[12].mxu1 }
 0x92e   :  { %v4143_v3 = vpop.f32.mrb[13].mxu1 }
 0x938   :  { %v1293_v4 = vpop.f32.mrb[10].mxu0 }
 0x939   :  { %v1294_v5 = vadd.f32 %v1293_v4, %v1218_v2  ;;  %v4154_v7 = vpop.f32.mrb[11].mxu0  ;;  %v1522_v8 = vpop.f32.mrb[14].mxu1 }
 0x93a   :  { %v1526_v9 = vadd.f32 %v4880_v63, %v1522_v8  ;;  %v4165_v10 = vpop.f32.mrb[15].mxu1 }
 0x93b   :  { %v1304_v12 = vadd.f32 %v4901_v6, %v1294_v5 }
 0x93c   :  { %v1534_v14 = vadd.f32 %v4804_v30, %v1526_v9 }
 0x93d   :  { %4556 = vtanh.f32 %v1304_v12  ;;  %v3802_v17 = vmul.f32 -1.442695, %v1304_v12 }
 0x93e   :  { %4558 = vtanh.f32 %v1534_v14  ;;  %v3805_v22 = vmul.f32 -1.442695, %v1534_v14 }
 0x93f   :  { %4560 = vpow2.f32 %v3802_v17 }
 0x940   :  { %4562 = vpow2.f32 %v3805_v22 }
 0x947   :  { %v4557_v15 = vpop.eup %4556 }
 0x948   :  { %v4559_v16 = vpop.eup %4558  ;;  %1314 = vrot.lane.b32.xlu1 %v4557_v15, %s4673_s10 }
 0x949   :  { %1544 = vrot.lane.b32.xlu0 %v4559_v16, %s4673_s10  ;;  %v4561_v26 = vpop.eup %4560 }
 0x94a   :  { %v4563_v29 = vpop.eup %4562  ;;  %v1308_v63 = vadd.f32 1.0, %v4561_v26 }
 0x94b   :  { %v1538_v31 = vadd.f32 1.0, %v4563_v29 }
 0x94c   :  { %4564 = vrcp.f32 %v1308_v63 }
 0x94d   :  { %4566 = vrcp.f32 %v1538_v31 }
 0x956   :  { %v4565_v24 = vpop.eup %4564 }
 0x957   :  { %v4567_v32 = vpop.eup %4566  ;;  %v1312_v37 = vmul.f32 %v4565_v24, %v5047_v36 }
 0x958   :  { %v1542_v48 = vmul.f32 %v4567_v32, %v5054_v39 }
 0x9ba   :  { %v1315_v0 = vpop.permute.xlu1 %1314 }
 0x9bb   :  { %v1317_v33 = vmul.f32 %v4565_v24, %v1315_v0  ;;  %v1545_v34 = vpop.permute.xlu0 %1544 }
 0x9bc   :  { %v1547_v35 = vmul.f32 %v4567_v32, %v1545_v34 }
 0x9bd   :  { %1319 = vrot.lane.b32.xlu1 %v1317_v33, %s4674_s11  ;;  %v1986_v33 = vsel %vm1873_vm10, 1, %v4672_v21 }
 0x9be   :  { %1549 = vrot.lane.b32.xlu0 %v1547_v35, %s4674_s11 }
 0xa2f   :  { %v1320_v41 = vpop.permute.xlu1 %1319 }
 0xa30   :  { %v5057_v49 = vadd.f32 %v1320_v41, %v1312_v37  ;;  %v1550_v43 = vpop.permute.xlu0 %1549 }
 0xa31   :  { %v5059_v44 = vadd.f32 %v1550_v43, %v1542_v48 }
 0xa32   :  { %4568 = vtanh.f32 %v5057_v49  ;;  %v5122_v34 = vsel %vm1136_vm7, %v5057_v49, %v5047_v36 }
 0xa33   :  { %4570 = vtanh.f32 %v5059_v44 }
 0xa3c   :  { %v4569_v38 = vpop.eup %4568 }
 0xa3d   :  { %v4571_v42 = vpop.eup %4570  ;;  %1325 = vrot.lane.b32.xlu1 %v4569_v38, %s4673_s10 }
 0xa3e   :  { %1555 = vrot.lane.b32.xlu0 %v4571_v42, %s4673_s10 }
 0xa41   :  { %1561 = vperm.xlu1 %4514, %v1559_v45  }
 0xaaf   :  { %v1326_v59 = vpop.permute.xlu1 %1325 }
 0xab0   :  { %v5067_v50 = vmul.f32 %v4565_v24, %v1326_v59  ;;  %v1556_v53 = vpop.permute.xlu0 %1555 }
 0xab1   :  { %v1558_v56 = vmul.f32 %v4567_v32, %v1556_v53 }
 0xab2   :  { %v5073_v1 = vsel %vm1136_vm7, %v5067_v50, %v5000_v40 }
 0xab3   :  { %1575 = vrot.lane.b32.xlu0 %v5073_v1, %s4674_s11  ;;  %1650 = vrot.lane.b32.xlu1 %v1558_v56, %s4674_s11 }
 0xac0   :  { %v5078_v62 = vpop.permute.xlu1 %1561 }
 0xac1   :  { %vm1563_vm9 = vcmp.eq.s32.totalorder %v5078_v62, 1 }
 0xac2   :  { %v5084_v60 = vsel %vm1563_vm9, %v1558_v56, %v5011_v61  ;;  %v5133_v43 = vsel %vm1563_vm9, %v5059_v44, %v5054_v39 }
 0xac3   :  { %1879 = vrot.lane.b32.xlu0 %v5084_v60, %s4674_s11 }
 0xb25   :  { %v1651_v2 = vpop.permute.xlu1 %1650  ;;  %v1576_v40 = vpop.permute.xlu0 %1575 }
 0xb26   :  { %4175 = vmatmul.mubr.msk.f32.vlgmr.msra.gmra.mrb[12].mxu0 %vm40_vm0, %v1576_v40  ;;  %4186 = vmatmul.mubr.msk.f32.vlgmr.msra.gmra.mrb[16].mxu1 %vm40_vm0, %v1651_v2 }
 0xb27   :  { %4422 = vmatpush3.bf16.msra.mxu0 %v4748_v11  ;;  %4196 = vmatprep.mubr.msk.f32.mxu0 %vm4670_vm1, %v4671_v19 }
 0xb28   :  { %4423 = vmatprep.subr.bf16.mxu0 %v4669_v13  ;;  %4428 = vmatpush3.bf16.msra.mxu1 %v4821_v47 }
 0xb29   :  { %4429 = vmatprep.subr.bf16.mxu1 %v4669_v13  ;;  %4207 = vmatprep.mubr.msk.f32.mxu1 %vm4670_vm1, %v4671_v19 }
 0xb2b   :  { %4425 = vmatpush3.bf16.msra.mxu0 %v4771_v18 }
 0xb2c   :  { %4431 = vmatpush3.bf16.msra.mxu1 %v4844_v55  ;;  %4432 = vmatprep.subr.bf16.mxu0 %v4669_v13 }
 0xb2d   :  { %4438 = vmatprep.subr.bf16.mxu1 %v4669_v13 }
 0xb35   :  { %v1880_v61 = vpop.permute.xlu0 %1879 }
 0xb36   :  { %4197 = vmatmul.mubr.msk.f32.vlgmr.msra.gmra.mrb[14].mxu0 %vm40_vm0, %v1880_v61 }
 0xb37   :  { %4434 = vmatpush3.bf16.msra.mxu0 %v4832_v51  ;;  %4218 = vmatprep.mubr.msk.f32.mxu0 %vm4670_vm1, %v4671_v19 }
 0xb38   :  { %4435 = vmatprep.subr.bf16.mxu0 %v4669_v13 }
 0xb3b   :  { %4437 = vmatpush3.bf16.msra.mxu0 %v4852_v57 }
 0xb3c   :  { %4444 = vmatprep.subr.bf16.mxu0 %v4669_v13 }
 0xbf9   :  { %v1645_v47 = vpop.f32.mrb[12].mxu0  ;;  %v1720_v55 = vpop.f32.mrb[16].mxu1 }
 0xbfa   :  { %v1721_v3 = vadd.f32 %v1720_v55, %v1645_v47  ;;  %v4176_v4 = vpop.f32.mrb[13].mxu0  ;;  %v4187_v5 = vpop.f32.mrb[17].mxu1 }
 0xbfc   :  { %v1731_v7 = vadd.f32 %v4901_v6, %v1721_v3 }
 0xbfe   :  { %4572 = vtanh.f32 %v1731_v7  ;;  %v3818_v15 = vmul.f32 -1.442695, %v1731_v7 }
 0xc08   :  { %v4573_v8 = vpop.eup %4572 }
 0xc09   :  { %v1949_v9 = vpop.f32.mrb[14].mxu0  ;;  %1741 = vrot.lane.b32.xlu1 %v4573_v8, %s4673_s10 }
 0xc0a   :  { %v1953_v51 = vadd.f32 %v1949_v9, %v4795_v25  ;;  %v4198_v10 = vpop.f32.mrb[15].mxu0 }
 0xc0c   :  { %v1961_v12 = vadd.f32 %v4804_v30, %v1953_v51 }
 0xc0e   :  { %4574 = vtanh.f32 %v1961_v12  ;;  %v3821_v17 = vmul.f32 -1.442695, %v1961_v12 }
 0xc0f   :  { %4576 = vpow2.f32 %v3818_v15 }
 0xc10   :  { %4578 = vpow2.f32 %v3821_v17 }
 0xc18   :  { %v4575_v14 = vpop.eup %4574 }
 0xc19   :  { %1971 = vrot.lane.b32.xlu0 %v4575_v14, %s4673_s10  ;;  %v4577_v16 = vpop.eup %4576 }
 0xc1a   :  { %v1735_v22 = vadd.f32 1.0, %v4577_v16  ;;  %v4579_v26 = vpop.eup %4578 }
 0xc1b   :  { %v1965_v24 = vadd.f32 1.0, %v4579_v26 }
 0xc1c   :  { %4580 = vrcp.f32 %v1735_v22 }
 0xc1d   :  { %4582 = vrcp.f32 %v1965_v24 }
 0xc26   :  { %v4581_v29 = vpop.eup %4580 }
 0xc27   :  { %v4583_v25 = vpop.eup %4582  ;;  %v1739_v35 = vmul.f32 %v4581_v29, %v5122_v34 }
 0xc28   :  { %v1969_v38 = vmul.f32 %v4583_v25, %v5133_v43 }
 0xc7b   :  { %v1742_v63 = vpop.permute.xlu1 %1741 }
 0xc7c   :  { %v1744_v31 = vmul.f32 %v4581_v29, %v1742_v63 }
 0xc7e   :  { %1746 = vrot.lane.b32.xlu1 %v1744_v31, %s4674_s11 }
 0xc8b   :  { %v1972_v0 = vpop.permute.xlu0 %1971 }
 0xc8c   :  { %v1974_v32 = vmul.f32 %v4583_v25, %v1972_v0 }
 0xc8e   :  { %1976 = vrot.lane.b32.xlu0 %v1974_v32, %s4674_s11 }
 0xc92   :  { %1988 = vperm.xlu0 %4515, %v1986_v33  }
 0xcf0   :  { %v1747_v37 = vpop.permute.xlu1 %1746 }
 0xcf1   :  { %v5125_v41 = vadd.f32 %v1747_v37, %v1739_v35 }
 0xcf3   :  { %4584 = vtanh.f32 %v5125_v41  ;;  %v5185_v63 = vsel %vm1563_vm9, %v5125_v41, %v5122_v34  ;;  %v2413_v41 = vsel %vm2300_vm12, 1, %v4672_v21 }
 0xcfd   :  { %v4585_v48 = vpop.eup %4584 }
 0xcfe   :  { %1752 = vrot.lane.b32.xlu1 %v4585_v48, %s4673_s10  ;;  %v3842_v48 = vld [vmem:[%s5771_s3 + $0x20] sm:$0xff] }
 0xd00   :  { %v1977_v36 = vpop.permute.xlu0 %1976 }
 0xd01   :  { %v5136_v49 = vadd.f32 %v1977_v36, %v1969_v38  ;;  %v3839_v36 = vld [vmem:[%s5770_s2 + $0x28] sm:$0xff] }
 0xd03   :  { %4586 = vtanh.f32 %v5136_v49 }
 0xd0d   :  { %v4587_v42 = vpop.eup %4586 }
 0xd0e   :  { %1982 = vrot.lane.b32.xlu1 %v4587_v42, %s4673_s10  ;;  %v3845_v42 = vld [vmem:[%s5771_s3 + $0x38] sm:$0xff] }
 0xd11   :  { %v5150_v39 = vpop.permute.xlu0 %1988 }
 0xd12   :  { %vm1990_vm11 = vcmp.eq.s32.totalorder %v5150_v39, 1 }
 0xd13   :  { %v5192_v24 = vsel %vm1990_vm11, %v5136_v49, %v5133_v43  ;;  %v3843_v43 = vld [vmem:[%s5771_s3 + $0x28] sm:$0xff]  ;;  %v3844_v49 = vld [vmem:[%s5771_s3 + $0x30] sm:$0xff] }
 0xd14   :  { %v5214_v38 = vpack.c.bf16 %v3843_v43, %v3842_v48 }
 0xd70   :  { %v1753_v45 = vpop.permute.xlu1 %1752 }
 0xd71   :  { %v5140_v59 = vmul.f32 %v4581_v29, %v1753_v45  ;;  %v5225_v45 = vpack.c.bf16 %v3839_v36, %v3838_v20  ;;  %v5312_v36 = vld [vmem:[%s5768_s0] sm:$0xff] }
 0xd72   :  { %vm2727_vm14 = vcmp.gt.s32.totalorder %v5312_v36, 6 }
 0xd73   :  { %v5146_v53 = vsel %vm1563_vm9, %v5140_v59, %v5073_v1 }
 0xd74   :  { %2002 = vrot.lane.b32.xlu0 %v5146_v53, %s4674_s11 }
 0xd80   :  { %v1983_v44 = vpop.permute.xlu1 %1982 }
 0xd81   :  { %v1985_v56 = vmul.f32 %v4583_v25, %v1983_v44  ;;  %v5228_v44 = vpack.c.bf16 %v3845_v42, %v3844_v49  ;;  %v2840_v49 = vsel %vm2727_vm14, 1, %v4672_v21 }
 0xd83   :  { %2077 = vrot.lane.b32.xlu1 %v1985_v56, %s4674_s11  ;;  %v5157_v2 = vsel %vm1990_vm11, %v1985_v56, %v5084_v60 }
 0xd84   :  { %2306 = vrot.lane.b32.xlu0 %v5157_v2, %s4674_s11 }
 0xde6   :  { %v2003_v1 = vpop.permute.xlu0 %2002 }
 0xde7   :  { %4208 = vmatmul.mubr.msk.f32.vlgmr.msra.gmra.mrb[18].mxu1 %vm40_vm0, %v2003_v1 }
 0xde8   :  { %4440 = vmatpush3.bf16.msra.mxu1 %v4748_v11  ;;  %4229 = vmatprep.mubr.msk.f32.mxu1 %vm4670_vm1, %v4671_v19 }
 0xde9   :  { %4441 = vmatprep.subr.bf16.mxu1 %v4669_v13 }
 0xdec   :  { %4443 = vmatpush3.bf16.msra.mxu1 %v4771_v18 }
 0xded   :  { %4450 = vmatprep.subr.bf16.mxu1 %v4669_v13 }
 0xdf5   :  { %v2078_v40 = vpop.permute.xlu1 %2077 }
 0xdf6   :  { %4219 = vmatmul.mubr.msk.f32.vlgmr.msra.gmra.mrb[16].mxu0 %vm40_vm0, %v2078_v40  ;;  %v2307_v60 = vpop.permute.xlu0 %2306 }
 0xdf7   :  { %4230 = vmatmul.mubr.msk.f32.vlgmr.msra.gmra.mrb[20].mxu1 %vm40_vm0, %v2307_v60  ;;  %4240 = vmatprep.mubr.msk.f32.mxu0 %vm4670_vm1, %v4671_v19 }
 0xdf8   :  { %4251 = vmatprep.mubr.msk.f32.mxu1 %vm4670_vm1, %v4671_v19  ;;  %4446 = vmatpush3.bf16.msra.mxu0 %v5214_v38 }
 0xdf9   :  { %4452 = vmatpush3.bf16.msra.mxu1 %v5225_v45  ;;  %4447 = vmatprep.subr.bf16.mxu0 %v4669_v13 }
 0xdfa   :  { %4453 = vmatprep.subr.bf16.mxu1 %v4669_v13 }
 0xdfc   :  { %4449 = vmatpush3.bf16.msra.mxu0 %v5228_v44 }
 0xdfd   :  { %4455 = vmatpush3.bf16.msra.mxu1 %v4852_v57  ;;  %4456 = vmatprep.subr.bf16.mxu0 %v4669_v13 }
 0xdfe   :  { %4462 = vmatprep.subr.bf16.mxu1 %v4669_v13 }
 0xeba   :  { %v2072_v11 = vpop.f32.mrb[18].mxu1 }
 0xebb   :  { %v4209_v61 = vpop.f32.mrb[19].mxu1 }
 0xec9   :  { %v2147_v47 = vpop.f32.mrb[16].mxu0 }
 0xeca   :  { %v2148_v55 = vadd.f32 %v2147_v47, %v2072_v11  ;;  %v4220_v3 = vpop.f32.mrb[17].mxu0  ;;  %v2376_v18 = vpop.f32.mrb[20].mxu1  ;;  %v2729_v47 = vld [vmem:[%s5771_s3 + $0x8] sm:$0xff] }
 0xecb   :  { %v2380_v4 = vadd.f32 %v4791_v23, %v2376_v18  ;;  %v4231_v5 = vpop.f32.mrb[21].mxu1  ;;  %v2730_v3 = vld [vmem:[%s5771_s3 + $0x10] sm:$0xff] }
 0xecc   :  { %v2158_v7 = vadd.f32 %v4901_v6, %v2148_v55 }
 0xecd   :  { %v2388_v8 = vadd.f32 %v4804_v30, %v2380_v4 }
 0xece   :  { %4588 = vtanh.f32 %v2158_v7  ;;  %v3834_v10 = vmul.f32 -1.442695, %v2158_v7 }
 0xecf   :  { %4590 = vtanh.f32 %v2388_v8  ;;  %v3837_v12 = vmul.f32 -1.442695, %v2388_v8 }
 0xed0   :  { %4592 = vpow2.f32 %v3834_v10 }
 0xed1   :  { %4594 = vpow2.f32 %v3837_v12 }
 0xed8   :  { %v4589_v9 = vpop.eup %4588 }
 0xed9   :  { %v4591_v51 = vpop.eup %4590  ;;  %2168 = vrot.lane.b32.xlu1 %v4589_v9, %s4673_s10 }
 0xeda   :  { %2398 = vrot.lane.b32.xlu0 %v4591_v51, %s4673_s10  ;;  %v4593_v14 = vpop.eup %4592  ;;  %v5296_v51 = vld [vmem:[%s5772_s4 + $0x1] ss:$0 sm:$0xff] }
 0xedb   :  { %v4595_v15 = vpop.eup %4594  ;;  %v2162_v23 = vadd.f32 1.0, %v4593_v14 }
 0xedc   :  { %v2392_v16 = vadd.f32 1.0, %v4595_v15 }
 0xedd   :  { %4596 = vrcp.f32 %v2162_v23 }
 0xede   :  { %4598 = vrcp.f32 %v2392_v16 }
 0xee7   :  { %v4597_v6 = vpop.eup %4596 }
 0xee8   :  { %v4599_v17 = vpop.eup %4598  ;;  %v2166_v31 = vmul.f32 %v4597_v6, %v5185_v63 }
 0xee9   :  { %v2396_v0 = vmul.f32 %v4599_v17, %v5192_v24 }
 0xf4b   :  { %v2169_v30 = vpop.permute.xlu1 %2168 }
 0xf4c   :  { %v2171_v22 = vmul.f32 %v4597_v6, %v2169_v30  ;;  %v2399_v26 = vpop.permute.xlu0 %2398 }
 0xf4d   :  { %v2401_v29 = vmul.f32 %v4599_v17, %v2399_v26 }
 0xf4e   :  { %2173 = vrot.lane.b32.xlu1 %v2171_v22, %s4674_s11 }
 0xf4f   :  { %2403 = vrot.lane.b32.xlu0 %v2401_v29, %s4674_s11 }
 0xfc0   :  { %v2174_v25 = vpop.permute.xlu1 %2173 }
 0xfc1   :  { %v5195_v32 = vadd.f32 %v2174_v25, %v2166_v31  ;;  %v2404_v33 = vpop.permute.xlu0 %2403 }
 0xfc2   :  { %v5197_v35 = vadd.f32 %v2404_v33, %v2396_v0 }
 0xfc3   :  { %4600 = vtanh.f32 %v5195_v32  ;;  %v5321_v42 = vsel %vm1990_vm11, %v5195_v32, %v5185_v63 }
 0xfc4   :  { %4602 = vtanh.f32 %v5197_v35 }
 0xfcd   :  { %v4601_v34 = vpop.eup %4600 }
 0xfce   :  { %v4603_v37 = vpop.eup %4602  ;;  %2179 = vrot.lane.b32.xlu1 %v4601_v34, %s4673_s10 }
 0xfcf   :  { %2409 = vrot.lane.b32.xlu0 %v4603_v37, %s4673_s10 }
 0xfd2   :  { %2415 = vperm.xlu1 %4514, %v2413_v41  }
0x1040   :  { %v2180_v56 = vpop.permute.xlu1 %2179 }
0x1041   :  { %v5237_v1 = vmul.f32 %v4597_v6, %v2180_v56  ;;  %v2410_v40 = vpop.permute.xlu0 %2409  ;;  %v5302_v6 = vld [vmem:[%s5772_s4] ss:$0 sm:$0xff] }
0x1042   :  { %v2412_v60 = vmul.f32 %v4599_v17, %v2410_v40 }
0x1043   :  { %v5243_v11 = vsel %vm1990_vm11, %v5237_v1, %v5146_v53  ;;  %v2728_v53 = vld [vmem:[%s5771_s3] sm:$0xff] }
0x1044   :  { %2429 = vrot.lane.b32.xlu0 %v5243_v11, %s4674_s11  ;;  %2504 = vrot.lane.b32.xlu1 %v2412_v60, %s4674_s11  ;;  %v5264_v55 = vpack.c.bf16 %v2729_v47, %v2728_v53 }
0x1051   :  { %v5248_v57 = vpop.permute.xlu1 %2415 }
0x1052   :  { %vm2417_vm13 = vcmp.eq.s32.totalorder %v5248_v57, 1 }
0x1053   :  { %v5254_v61 = vsel %vm2417_vm13, %v2412_v60, %v5157_v2  ;;  %v2731_v2 = vld [vmem:[%s5771_s3 + $0x18] sm:$0xff]  ;;  %v5332_v47 = vsel %vm2417_vm13, %v5197_v35, %v5192_v24 }
0x1054   :  { %2733 = vrot.lane.b32.xlu0 %v5254_v61, %s4674_s11  ;;  %v5275_v5 = vpack.c.bf16 %v2731_v2, %v2730_v3 }
0x10b6   :  { %v2505_v18 = vpop.permute.xlu1 %2504  ;;  %v2430_v4 = vpop.permute.xlu0 %2429 }
0x10b7   :  { %4241 = vmatmul.mubr.msk.f32.vlgmr.msra.gmra.mrb[18].mxu0 %vm40_vm0, %v2430_v4  ;;  %4252 = vmatmul.mubr.msk.f32.vlgmr.msra.gmra.mrb[22].mxu1 %vm40_vm0, %v2505_v18  ;;  %v3856_v18 = vld [vmem:[%s5770_s2 + $0x30] sm:$0xff]  ;;  %v3857_v4 = vld [vmem:[%s5770_s2 + $0x38] sm:$0xff] }
0x10b8   :  { %4458 = vmatpush3.bf16.msra.mxu0 %v5264_v55  ;;  %4262 = vmatprep.mubr.msk.f32.mxu0 %vm4670_vm1, %v4671_v19  ;;  %v4472_v24 = vpack.c.bf16 %v3857_v4, %v3856_v18 }
0x10b9   :  { %4459 = vmatprep.subr.bf16.mxu0 %v4669_v13  ;;  %4464 = vmatpush3.bf16.msra.mxu1 %v5214_v38 }
0x10ba   :  { %4465 = vmatprep.subr.bf16.mxu1 %v4669_v13  ;;  %4273 = vmatprep.mubr.msk.f32.mxu1 %vm4670_vm1, %v4671_v19 }
0x10bc   :  { %4461 = vmatpush3.bf16.msra.mxu0 %v5275_v5 }
0x10bd   :  { %4467 = vmatpush3.bf16.msra.mxu1 %v5228_v44  ;;  %4468 = vmatprep.subr.bf16.mxu0 %v4669_v13 }
0x10be   :  { %4474 = vmatprep.subr.bf16.mxu1 %v4669_v13 }
0x10c6   :  { %v2734_v7 = vpop.permute.xlu0 %2733 }
0x10c7   :  { %4263 = vmatmul.mubr.msk.f32.vlgmr.msra.gmra.mrb[20].mxu0 %vm40_vm0, %v2734_v7 }
0x10c8   :  { %4470 = vmatpush3.bf16.msra.mxu0 %v5225_v45  ;;  %4284 = vmatprep.mubr.msk.f32.mxu0 %vm4670_vm1, %v4671_v19 }
0x10c9   :  { %4471 = vmatprep.subr.bf16.mxu0 %v4669_v13 }
0x10cc   :  { %4473 = vmatpush3.bf16.msra.mxu0 %v4472_v24 }
0x10cd   :  { %4480 = vmatprep.subr.bf16.mxu0 %v4669_v13 }
0x118a   :  { %v2499_v8 = vpop.f32.mrb[18].mxu0  ;;  %v2574_v9 = vpop.f32.mrb[22].mxu1 }
0x118b   :  { %v2575_v10 = vadd.f32 %v2574_v9, %v2499_v8  ;;  %v4242_v12 = vpop.f32.mrb[19].mxu0  ;;  %v4253_v14 = vpop.f32.mrb[23].mxu1 }
0x118d   :  { %v2585_v15 = vadd.f32 %v5296_v51, %v2575_v10 }
0x118f   :  { %4604 = vtanh.f32 %v2585_v15  ;;  %v3850_v29 = vmul.f32 -1.442695, %v2585_v15 }
0x1199   :  { %v4605_v23 = vpop.eup %4604 }
0x119a   :  { %v2803_v16 = vpop.f32.mrb[20].mxu0  ;;  %2595 = vrot.lane.b32.xlu1 %v4605_v23, %s4673_s10 }
0x119b   :  { %v2807_v30 = vadd.f32 %v2803_v16, %v4799_v28  ;;  %v4264_v17 = vpop.f32.mrb[21].mxu0 }
0x119d   :  { %v2815_v22 = vadd.f32 %v5302_v6, %v2807_v30 }
0x119f   :  { %4606 = vtanh.f32 %v2815_v22  ;;  %v3853_v25 = vmul.f32 -1.442695, %v2815_v22 }
0x11a0   :  { %4608 = vpow2.f32 %v3850_v29 }
0x11a1   :  { %4610 = vpow2.f32 %v3853_v25 }
0x11a9   :  { %v4607_v26 = vpop.eup %4606 }
0x11aa   :  { %2825 = vrot.lane.b32.xlu0 %v4607_v26, %s4673_s10  ;;  %v4609_v31 = vpop.eup %4608 }
0x11ab   :  { %v2589_v0 = vadd.f32 1.0, %v4609_v31  ;;  %v4611_v33 = vpop.eup %4610 }
0x11ac   :  { %v2819_v48 = vadd.f32 1.0, %v4611_v33 }
0x11ad   :  { %4612 = vrcp.f32 %v2589_v0 }
0x11ae   :  { %4614 = vrcp.f32 %v2819_v48 }
0x11b7   :  { %v4613_v34 = vpop.eup %4612 }
0x11b8   :  { %v4615_v28 = vpop.eup %4614  ;;  %v2593_v56 = vmul.f32 %v4613_v34, %v5321_v42 }
0x11b9   :  { %v2823_v3 = vmul.f32 %v4615_v28, %v5332_v47 }
0x120c   :  { %v2596_v37 = vpop.permute.xlu1 %2595 }
0x120d   :  { %v2598_v41 = vmul.f32 %v4613_v34, %v2596_v37 }
0x120f   :  { %2600 = vrot.lane.b32.xlu1 %v2598_v41, %s4674_s11 }
0x121c   :  { %v2826_v43 = vpop.permute.xlu0 %2825 }
0x121d   :  { %v2828_v20 = vmul.f32 %v4615_v28, %v2826_v43 }
0x121f   :  { %2830 = vrot.lane.b32.xlu0 %v2828_v20, %s4674_s11 }
0x1223   :  { %2842 = vperm.xlu0 %4515, %v2840_v49  }
0x1281   :  { %v2601_v40 = vpop.permute.xlu1 %2600 }
0x1282   :  { %v5324_v60 = vadd.f32 %v2601_v40, %v2593_v56 }
0x1284   :  { %4616 = vtanh.f32 %v5324_v60 }
0x128e   :  { %v4617_v53 = vpop.eup %4616 }
0x128f   :  { %2606 = vrot.lane.b32.xlu1 %v4617_v53, %s4673_s10 }
0x1291   :  { %v2831_v63 = vpop.permute.xlu0 %2830 }
0x1292   :  { %v5335_v32 = vadd.f32 %v2831_v63, %v2823_v3 }
0x1294   :  { %4618 = vtanh.f32 %v5335_v32 }
0x129e   :  { %v4619_v2 = vpop.eup %4618 }
0x129f   :  { %2836 = vrot.lane.b32.xlu1 %v4619_v2, %s4673_s10 }
0x12a2   :  { %v5356_v9 = vpop.permute.xlu0 %2842 }
0x12a3   :  { %vm2844_vm15 = vcmp.eq.s32.totalorder %v5356_v9, 1 }
0x12a4   :  { %v2846_v20 = vsel %vm2844_vm15, %v5335_v32, %v5332_v47 }
0x1301   :  { %v2607_v35 = vpop.permute.xlu1 %2606 }
0x1302   :  { %v5346_v7 = vmul.f32 %v4613_v34, %v2607_v35 }
0x1304   :  { %v5352_v8 = vsel %vm2417_vm13, %v5346_v7, %v5243_v11  ;;  %v5550_v62 = vsel %vm2417_vm13, %v5346_v7, 0.0 }
0x1305   :  { %2856 = vrot.lane.b32.xlu0 %v5352_v8, %s4674_s11 }
0x1311   :  { %v2837_v10 = vpop.permute.xlu1 %2836 }
0x1312   :  { %v2839_v12 = vmul.f32 %v4615_v28, %v2837_v10  ;;  %v5393_v28 = vsel %vm2417_vm13, %v5324_v60, %v5321_v42 }
0x1314   :  { %2931 = vrot.lane.b32.xlu1 %v2839_v12, %s4674_s11  ;;  %v2845_v14 = vsel %vm2844_vm15, %v2839_v12, %v5254_v61 }
0x1315   :  { %3160 = vrot.lane.b32.xlu0 %v2845_v14, %s4674_s11 }
0x1377   :  { %v2857_v15 = vpop.permute.xlu0 %2856 }
0x1378   :  { %4274 = vmatmul.mubr.msk.f32.vlgmr.msra.gmra.mrb[24].mxu1 %vm40_vm0, %v2857_v15 }
0x1379   :  { %4476 = vmatpush3.bf16.msra.mxu1 %v5264_v55  ;;  %4295 = vmatprep.mubr.msk.f32.mxu1 %vm4670_vm1, %v4671_v19 }
0x137a   :  { %4477 = vmatprep.subr.bf16.mxu1 %v4669_v13 }
0x137d   :  { %4479 = vmatpush3.bf16.msra.mxu1 %v5275_v5 }
0x137e   :  { %4486 = vmatprep.subr.bf16.mxu1 %v4669_v13 }
0x1386   :  { %v2932_v11 = vpop.permute.xlu1 %2931 }
0x1387   :  { %4285 = vmatmul.mubr.msk.f32.vlgmr.msra.gmra.mrb[22].mxu0 %vm40_vm0, %v2932_v11  ;;  %v3161_v61 = vpop.permute.xlu0 %3160  ;;  %v4675_v11 = vmov 1966171168  }
0x1388   :  { %4296 = vmatmul.mubr.msk.f32.vlgmr.msra.gmra.mrb[26].mxu1 %vm40_vm0, %v3161_v61  ;;  %4482 = vmatpush3.bf16.msra.mxu0 %v5214_v38  ;;  %v481_v61 = vunpack.c.l.s4 %v4675_v11 }
0x1389   :  { %4488 = vmatpush3.bf16.msra.mxu1 %v5225_v45  ;;  %4483 = vmatprep.subr.bf16.mxu0 %v4669_v13 }
0x138a   :  { %4489 = vmatprep.subr.bf16.mxu1 %v4669_v13  ;;  %4306 = vmatprep.mubr.msk.f32.mxu0 %vm4670_vm1, %v4671_v19 }
0x138b   :  { %4317 = vmatprep.mubr.msk.f32.mxu1 %vm4670_vm1, %v4671_v19  ;;  %vm3154_vm1 = vcmp.gt.s32.totalorder %v5312_v36, 7  ;;  %v5436_v36 = vsel %vm1990_vm11, %v5237_v1, 0.0 }
0x138c   :  { %4485 = vmatpush3.bf16.msra.mxu0 %v5228_v44 }
0x138d   :  { %4491 = vmatpush3.bf16.msra.mxu1 %v4472_v24 }
0x144b   :  { %v2926_v55 = vpop.f32.mrb[24].mxu1 }
0x144c   :  { %v4275_v5 = vpop.f32.mrb[25].mxu1 }
0x144d   :  { %v482_v5 = vunpack.c.0.s8 %v481_v61 }
0x145a   :  { %v3001_v23 = vpop.f32.mrb[22].mxu0 }
0x145b   :  { %v3002_v16 = vadd.f32 %v3001_v23, %v2926_v55  ;;  %v4286_v38 = vpop.f32.mrb[23].mxu0  ;;  %v3230_v30 = vpop.f32.mrb[26].mxu1  ;;  %v483_v55 = vlaneseq }
0x145c   :  { %v3234_v45 = vadd.f32 %v4797_v27, %v3230_v30  ;;  %v4297_v17 = vpop.f32.mrb[27].mxu1 }
0x145d   :  { %v3012_v13 = vadd.f32 %v5296_v51, %v3002_v16  ;;  %v484_v23 = vshrl.u32 %v483_v55, 7 }
0x145e   :  { %v3242_v22 = vadd.f32 %v5302_v6, %v3234_v45  ;;  %v5424_v45 = vsel %vm1136_vm7, %v5067_v50, 0.0 }
0x145f   :  { %4620 = vtanh.f32 %v3012_v13  ;;  %v3866_v44 = vmul.f32 -1.442695, %v3012_v13  ;;  %v5416_v16 = vsub.s32 %v482_v5, %v484_v23 }
0x1460   :  { %4622 = vtanh.f32 %v3242_v22  ;;  %v3869_v29 = vmul.f32 -1.442695, %v3242_v22  ;;  %v5431_v22 = vsub.s32 0, %v484_v23 }
0x1461   :  { %4624 = vpow2.f32 %v3866_v44  ;;  %v486_v38 = vrot.slane %v4928_v54, %v5416_v16  ;;  %v1340_v17 = vrot.slane %v5424_v45, %v5416_v16  ;;  %v2194_v46 = vrot.slane %v5436_v36, %v5416_v16 }
0x1462   :  { %4626 = vpow2.f32 %v3869_v29 }
0x1463   :  { %v502_v13 = vrot.slane %v486_v38, %v5416_v16 }
0x1465   :  { %v531_v50 = vrot.slane %v502_v13, %v5431_v22 }
0x1469   :  { %v4621_v26 = vpop.eup %4620 }
0x146a   :  { %v4623_v19 = vpop.eup %4622  ;;  %3022 = vrot.lane.b32.xlu1 %v4621_v26, %s4673_s10 }
0x146b   :  { %3252 = vrot.lane.b32.xlu0 %v4623_v19, %s4673_s10  ;;  %v4625_v31 = vpop.eup %4624  ;;  %v2210_v19 = vrot.slane %v2194_v46, %v5416_v16 }
0x146c   :  { %v4627_v25 = vpop.eup %4626  ;;  %v3016_v27 = vadd.f32 1.0, %v4625_v31  ;;  %v494_v31 = vcombine.high %v486_v38, %v486_v38 }
0x146d   :  { %v3246_v0 = vadd.f32 1.0, %v4627_v25  ;;  %v2239_v29 = vrot.slane %v2210_v19, %v5431_v22  ;;  %v1348_v25 = vcombine.high %v1340_v17, %v1340_v17 }
0x146e   :  { %4628 = vrcp.f32 %v3016_v27 }
0x146f   :  { %4630 = vrcp.f32 %v3246_v0  ;;  %v516_v0 = vrot.slane %v494_v31, %v5416_v16 }
0x1478   :  { %v4629_v33 = vpop.eup %4628 }
0x1479   :  { %v4631_v34 = vpop.eup %4630  ;;  %v3020_v43 = vmul.f32 %v4629_v33, %v5393_v28 }
0x147a   :  { %v3250_v56 = vmul.f32 %v4631_v34, %v2846_v20 }
0x14dc   :  { %v3023_v6 = vpop.permute.xlu1 %3022 }
0x14dd   :  { %v3025_v37 = vmul.f32 %v4629_v33, %v3023_v6  ;;  %v3253_v41 = vpop.permute.xlu0 %3252  ;;  %v535_v6 = vrot.slane %v516_v0, %v5431_v22 }
0x14de   :  { %v3255_v48 = vmul.f32 %v4631_v34, %v3253_v41 }
0x14df   :  { %3027 = vrot.lane.b32.xlu1 %v3025_v37, %s4674_s11 }
0x14e0   :  { %3257 = vrot.lane.b32.xlu0 %v3255_v48, %s4674_s11 }
0x1551   :  { %v3028_v49 = vpop.permute.xlu1 %3027 }
0x1552   :  { %v5400_v40 = vadd.f32 %v3028_v49, %v3020_v43  ;;  %v3258_v53 = vpop.permute.xlu0 %3257 }
0x1553   :  { %v3260_v3 = vadd.f32 %v3258_v53, %v3250_v56  ;;  %v524_v56 = vcombine.high %v502_v13, %v502_v13 }
0x1554   :  { %4632 = vtanh.f32 %v5400_v40 }
0x1555   :  { %4634 = vtanh.f32 %v3260_v3  ;;  %v539_v53 = vrot.slane %v524_v56, %v5431_v22 }
0x155e   :  { %v4633_v63 = vpop.eup %4632 }
0x155f   :  { %v4635_v2 = vpop.eup %4634  ;;  %3033 = vrot.lane.b32.xlu1 %v4633_v63, %s4673_s10  ;;  %v2232_v63 = vcombine.high %v2210_v19, %v2210_v19 }
0x1560   :  { %3263 = vrot.lane.b32.xlu0 %v4635_v2, %s4673_s10 }
0x15d1   :  { %v3034_v42 = vpop.permute.xlu1 %3033 }
0x15d2   :  { %v3036_v60 = vmul.f32 %v4629_v33, %v3034_v42  ;;  %v3264_v18 = vpop.permute.xlu0 %3263  ;;  %v2202_v33 = vcombine.high %v2194_v46, %v2194_v46 }
0x15d3   :  { %v3266_v4 = vmul.f32 %v4631_v34, %v3264_v18  ;;  %v1370_v34 = vrot.slane %v1348_v25, %v5416_v16  ;;  %v526_v18 = vcombine.high %v516_v0, %v516_v0 }
0x15d4   :  { %v3037_v47 = vsel %vm2844_vm15, %v3036_v60, %v5352_v8  ;;  %v5444_v26 = vsel %vm2844_vm15, %v3036_v60, 0.0  ;;  %v2224_v48 = vrot.slane %v2202_v33, %v5416_v16  ;;  %v2247_v60 = vrot.slane %v2232_v63, %v5431_v22 }
0x15d5   :  { %3276 = vrot.lane.b32.xlu1 %v3037_v47, %s4674_s11  ;;  %3351 = vrot.lane.b32.xlu0 %v3266_v4, %s4674_s11  ;;  %v3048_v39 = vrot.slane %v5444_v26, %v5416_v16  ;;  %v1389_v41 = vrot.slane %v1370_v34, %v5431_v22  ;;  %v1380_v47 = vcombine.high %v1370_v34, %v1370_v34  ;;  %v5537_v63 = vsel %vm1563_vm9, %v5140_v59, 0.0 }
0x15d6   :  { %v2243_v43 = vrot.slane %v2224_v48, %v5431_v22 }
0x15d7   :  { %v3064_v44 = vrot.slane %v3048_v39, %v5416_v16  ;;  %v3056_v37 = vcombine.high %v3048_v39, %v3048_v39 }
0x15d9   :  { %v3093_v27 = vrot.slane %v3064_v44, %v5431_v22  ;;  %v3078_v20 = vrot.slane %v3056_v37, %v5416_v16  ;;  %v3086_v42 = vcombine.high %v3064_v44, %v3064_v44 }
0x15db   :  { %v3097_v49 = vrot.slane %v3078_v20, %v5431_v22  ;;  %v3101_v4 = vrot.slane %v3086_v42, %v5431_v22 }
0x1647   :  { %v3277_v32 = vpop.permute.xlu1 %3276  ;;  %v3352_v24 = vpop.permute.xlu0 %3351 }
0x1648   :  { %4307 = vmatmul.mubr.msk.f32.vlgmr.msra.gmra.mrb[24].mxu0 %vm40_vm0, %v3277_v32  ;;  %4318 = vmatmul.mubr.msk.f32.vlgmr.msra.gmra.mrb[28].mxu1 %vm40_vm0, %v3352_v24  ;;  %v543_v32 = vrot.slane %v526_v18, %v5431_v22  ;;  %v479_v24 = vcombine.high %v4928_v54, %v4928_v54  ;;  %v2187_v54 = vcombine.high %v5436_v36, %v5436_v36 }
0x164a   :  { %v2201_v38 = vrot.slane %v2187_v54, %v5416_v16 }
0x171b   :  { %v3346_v35 = vpop.f32.mrb[24].mxu0  ;;  %v3421_v10 = vpop.f32.mrb[28].mxu1 }
0x171c   :  { %v3422_v12 = vadd.f32 %v3421_v10, %v3346_v35  ;;  %v4308_v14 = vpop.f32.mrb[25].mxu0  ;;  %v4319_v15 = vpop.f32.mrb[29].mxu1  ;;  %v2234_v35 = vcombine.high %v2224_v48, %v2224_v48  ;;  %v1397_v10 = vrot.slane %v1380_v47, %v5431_v22 }
0x171d   :  { %v1333_v14 = vcombine.high %v5424_v45, %v5424_v45  ;;  %v3088_v15 = vcombine.high %v3078_v20, %v3078_v20 }
0x171e   :  { %v5413_v8 = vadd.f32 %v5296_v51, %v3422_v12  ;;  %v3457_v51 = vsel %vm3154_vm1, 1, %v4672_v21  ;;  %v1356_v21 = vrot.slane %v1340_v17, %v5416_v16  ;;  %v493_v12 = vrot.slane %v479_v24, %v5416_v16 }
0x171f   :  { %v2251_v11 = vrot.slane %v2234_v35, %v5431_v22  ;;  %v1347_v61 = vrot.slane %v1333_v14, %v5416_v16  ;;  %v3105_v55 = vrot.slane %v3088_v15, %v5431_v22 }
0x1720   :  { %4636 = vtanh.f32 %v5413_v8  ;;  %v1385_v1 = vrot.slane %v1356_v21, %v5431_v22  ;;  %v1378_v3 = vcombine.high %v1356_v21, %v1356_v21  ;;  %v509_v5 = vrot.slane %v493_v12, %v5416_v16 }
0x1721   :  { %v1363_v23 = vrot.slane %v1347_v61, %v5416_v16  ;;  %v1349_v21 = vcombine.high %v1347_v61, %v1347_v61  ;;  %v3882_v39 = vmul.f32 -1.442695, %v5413_v8 }
0x1722   :  { %v1393_v2 = vrot.slane %v1378_v3, %v5431_v22  ;;  %v547_v45 = vrot.slane %v509_v5, %v5431_v22  ;;  %v525_v34 = vcombine.high %v509_v5, %v509_v5 }
0x1723   :  { %v1401_v13 = vrot.slane %v1363_v23, %v5431_v22  ;;  %4638 = vpow2.f32 %v3882_v39  ;;  %v1379_v48 = vcombine.high %v1363_v23, %v1363_v23 }
0x172a   :  { %v4637_v30 = vpop.eup %4636 }
0x172b   :  { %3442 = vrot.lane.b32.xlu1 %v4637_v30, %s4673_s10  ;;  %v3041_v30 = vcombine.high %v5444_v26, %v5444_v26 }
0x172d   :  { %v3055_v17 = vrot.slane %v3041_v30, %v5416_v16  ;;  %v4639_v33 = vpop.eup %4638 }
0x172e   :  { %v3436_v37 = vadd.f32 1.0, %v4639_v33 }
0x172f   :  { %3459 = vperm.xlu1 %4514, %v3457_v51   ;;  %v2217_v51 = vrot.slane %v2201_v38, %v5416_v16  ;;  %v3071_v36 = vrot.slane %v3055_v17, %v5416_v16  ;;  %v3057_v31 = vcombine.high %v3055_v17, %v3055_v17 }
0x1730   :  { %4640 = vrcp.f32 %v3436_v37 }
0x1731   :  { %v2255_v46 = vrot.slane %v2217_v51, %v5431_v22  ;;  %v3109_v26 = vrot.slane %v3071_v36, %v5431_v22  ;;  %v3085_v8 = vrot.slane %v3057_v31, %v5416_v16  ;;  %v2233_v20 = vcombine.high %v2217_v51, %v2217_v51 }
0x1733   :  { %560 = vrot.lane.b32.xlu1 %v531_v50, %s4674_s11  ;;  %v495_v50 = vcombine.high %v493_v12, %v493_v12  ;;  %v2263_v56 = vrot.slane %v2233_v20, %v5431_v22 }
0x1735   :  { %v523_v19 = vrot.slane %v495_v50, %v5416_v16 }
0x1737   :  { %1414 = vrot.lane.b32.xlu1 %v1385_v1, %s4674_s11  ;;  %v2203_v1 = vcombine.high %v2201_v38, %v2201_v38  ;;  %v551_v44 = vrot.slane %v523_v19, %v5431_v22  ;;  %v527_v42 = vcombine.high %v523_v19, %v523_v19 }
0x1739   :  { %v559_v59 = vrot.slane %v527_v42, %v5431_v22 }
0x173b   :  { %2268 = vrot.lane.b32.xlu1 %v2239_v29, %s4674_s11  ;;  %v1377_v29 = vrot.slane %v1349_v21, %v5416_v16 }
0x173d   :  { %v1405_v25 = vrot.slane %v1377_v29, %v5431_v22  ;;  %v1381_v47 = vcombine.high %v1377_v29, %v1377_v29 }
0x173f   :  { %3122 = vrot.lane.b32.xlu1 %v3093_v27, %s4674_s11  ;;  %v2231_v27 = vrot.slane %v2203_v1, %v5416_v16  ;;  %v1413_v57 = vrot.slane %v1381_v47, %v5431_v22 }
0x1741   :  { %v2259_v0 = vrot.slane %v2231_v27, %v5431_v22  ;;  %v2235_v7 = vcombine.high %v2231_v27, %v2231_v27 }
0x1743   :  { %562 = vrot.lane.b32.xlu1 %v535_v6, %s4674_s11  ;;  %v3113_v6 = vrot.slane %v3085_v8, %v5431_v22  ;;  %v2267_v15 = vrot.slane %v2235_v7, %v5431_v22 }
0x1747   :  { %1416 = vrot.lane.b32.xlu1 %v1389_v41, %s4674_s11  ;;  %v555_v41 = vrot.slane %v525_v34, %v5431_v22 }
0x174b   :  { %2270 = vrot.lane.b32.xlu1 %v2243_v43, %s4674_s11  ;;  %v1409_v43 = vrot.slane %v1379_v48, %v5431_v22 }
0x174f   :  { %3124 = vrot.lane.b32.xlu1 %v3097_v49, %s4674_s11  ;;  %v5528_v49 = vsel %vm710_vm5, %v4994_v52, 0.0 }
0x1750   :  { %v913_v3 = vrot.slane %v5528_v49, %v5416_v16 }
0x1753   :  { %564 = vrot.lane.b32.xlu1 %v539_v53, %s4674_s11  ;;  %v3087_v53 = vcombine.high %v3071_v36, %v3071_v36 }
0x1755   :  { %v3117_v52 = vrot.slane %v3087_v53, %v5431_v22 }
0x1757   :  { %1418 = vrot.lane.b32.xlu1 %v1393_v2, %s4674_s11  ;;  %v5540_v2 = vpop.eup %4640 }
0x175b   :  { %2272 = vrot.lane.b32.xlu1 %v2247_v60, %s4674_s11  ;;  %v1767_v60 = vrot.slane %v5537_v63, %v5416_v16 }
0x175d   :  { %v1783_v35 = vrot.slane %v1767_v60, %v5416_v16  ;;  %v1775_v61 = vcombine.high %v1767_v60, %v1767_v60 }
0x175f   :  { %3126 = vrot.lane.b32.xlu1 %v3101_v4, %s4674_s11  ;;  %v929_v4 = vrot.slane %v913_v3, %v5416_v16  ;;  %v1812_v14 = vrot.slane %v1783_v35, %v5431_v22  ;;  %v1805_v19 = vcombine.high %v1783_v35, %v1783_v35 }
0x1761   :  { %v958_v24 = vrot.slane %v929_v4, %v5431_v22  ;;  %v951_v50 = vcombine.high %v929_v4, %v929_v4  ;;  %v1820_v1 = vrot.slane %v1805_v19, %v5431_v22 }
0x1763   :  { %566 = vrot.lane.b32.xlu1 %v543_v32, %s4674_s11  ;;  %v2621_v32 = vrot.slane %v5550_v62, %v5416_v16 }
0x1765   :  { %v2637_v12 = vrot.slane %v2621_v32, %v5416_v16  ;;  %v2629_v23 = vcombine.high %v2621_v32, %v2621_v32  ;;  %v3038_v32 = vsel %vm2844_vm15, %v5400_v40, %v5393_v28  ;;  %v1760_v40 = vcombine.high %v5537_v63, %v5537_v63 }
0x1767   :  { %1420 = vrot.lane.b32.xlu1 %v1397_v10, %s4674_s11  ;;  %v921_v10 = vcombine.high %v913_v3, %v913_v3  ;;  %v2666_v54 = vrot.slane %v2637_v12, %v5431_v22 }
0x176b   :  { %2274 = vrot.lane.b32.xlu1 %v2251_v11, %s4674_s11  ;;  %v3089_v11 = vcombine.high %v3085_v8, %v3085_v8 }
0x176d   :  { %v3121_v5 = vrot.slane %v3089_v11, %v5431_v22 }
0x176f   :  { %3128 = vrot.lane.b32.xlu1 %v3105_v55, %s4674_s11  ;;  %v943_v55 = vrot.slane %v921_v10, %v5416_v16 }
0x1771   :  { %v962_v30 = vrot.slane %v943_v55, %v5431_v22 }
0x1773   :  { %568 = vrot.lane.b32.xlu1 %v547_v45, %s4674_s11  ;;  %v1797_v45 = vrot.slane %v1775_v61, %v5416_v16 }
0x1775   :  { %v1816_v17 = vrot.slane %v1797_v45, %v5431_v22  ;;  %v1807_v8 = vcombine.high %v1797_v45, %v1797_v45 }
0x1777   :  { %1422 = vrot.lane.b32.xlu1 %v1401_v13, %s4674_s11  ;;  %v5580_v13 = vrot.slane %v2629_v23, %v5416_v16  ;;  %v2614_v23 = vcombine.high %v5550_v62, %v5550_v62 }
0x1779   :  { %v2661_v11 = vcombine.high %v5580_v13, %v5580_v13 }
0x177b   :  { %2276 = vrot.lane.b32.xlu1 %v2255_v46, %s4674_s11  ;;  %v2670_v46 = vrot.slane %v5580_v13, %v5431_v22  ;;  %v2678_v45 = vrot.slane %v2661_v11, %v5431_v22 }
0x177f   :  { %3130 = vrot.lane.b32.xlu1 %v3109_v26, %s4674_s11  ;;  %v966_v26 = vrot.slane %v951_v50, %v5431_v22 }
0x1783   :  { %570 = vrot.lane.b32.xlu1 %v551_v44, %s4674_s11  ;;  %v2659_v44 = vcombine.high %v2637_v12, %v2637_v12 }
0x1785   :  { %v2674_v31 = vrot.slane %v2659_v44, %v5431_v22 }
0x1787   :  { %1424 = vrot.lane.b32.xlu1 %v1405_v25, %s4674_s11  ;;  %v953_v25 = vcombine.high %v943_v55, %v943_v55 }
0x178b   :  { %2278 = vrot.lane.b32.xlu1 %v2259_v0, %s4674_s11  ;;  %v970_v0 = vrot.slane %v953_v25, %v5431_v22 }
0x178f   :  { %3132 = vrot.lane.b32.xlu1 %v3113_v6, %s4674_s11  ;;  %v1824_v6 = vrot.slane %v1807_v8, %v5431_v22 }
0x1793   :  { %572 = vrot.lane.b32.xlu1 %v555_v41, %s4674_s11 }
0x1797   :  { %1426 = vrot.lane.b32.xlu1 %v1409_v43, %s4674_s11 }
0x179b   :  { %2280 = vrot.lane.b32.xlu1 %v2263_v56, %s4674_s11 }
0x179d   :  { %v3443_v58 = vpop.permute.xlu1 %3442 }
0x179e   :  { %v3445_v18 = vmul.f32 %v5540_v2, %v3443_v58 }
0x179f   :  { %3134 = vrot.lane.b32.xlu1 %v3117_v52, %s4674_s11 }
0x17a0   :  { %3447 = vrot.lane.b32.xlu0 %v3445_v18, %s4674_s11 }
0x17a3   :  { %574 = vrot.lane.b32.xlu1 %v559_v59, %s4674_s11 }
0x17a4   :  { %987 = vrot.lane.b32.xlu0 %v958_v24, %s4674_s11  ;;  %v3440_v24 = vmul.f32 %v5540_v2, %v3038_v32  ;;  %v3586_v32 = vld [vmem:[%s5773_s5 + $0x8] sm:$0xff] }
0x17a7   :  { %1428 = vrot.lane.b32.xlu1 %v1413_v57, %s4674_s11 }
0x17a8   :  { %1841 = vrot.lane.b32.xlu0 %v1812_v14, %s4674_s11  ;;  %v906_v14 = vcombine.high %v5528_v49, %v5528_v49 }
0x17aa   :  { %v920_v28 = vrot.slane %v906_v14, %v5416_v16 }
0x17ab   :  { %2282 = vrot.lane.b32.xlu1 %v2267_v15, %s4674_s11 }
0x17ac   :  { %2695 = vrot.lane.b32.xlu0 %v2666_v54, %s4674_s11  ;;  %v936_v49 = vrot.slane %v920_v28, %v5416_v16  ;;  %v922_v62 = vcombine.high %v920_v28, %v920_v28 }
0x17ae   :  { %v5572_v38 = vpop.permute.xlu1 %3459 }
0x17af   :  { %3136 = vrot.lane.b32.xlu1 %v3121_v5, %s4674_s11  ;;  %v1774_v5 = vrot.slane %v1760_v40, %v5416_v16  ;;  %vm3461_vm3 = vcmp.eq.s32.totalorder %v5572_v38, 1 }
0x17b0   :  { %989 = vrot.lane.b32.xlu0 %v962_v30, %s4674_s11 }
0x17b2   :  { %v561_v51 = vpop.permute.xlu1 %560 }
0x17b3   :  { %585 = vst.msk [vmem:[#allocation2] sm:$0x1] %vm584_vm2, %v561_v51  ;;  %v1790_v51 = vrot.slane %v1774_v5, %v5416_v16 }
0x17b4   :  { %1843 = vrot.lane.b32.xlu0 %v1816_v17, %s4674_s11  ;;  %v2628_v17 = vrot.slane %v2614_v23, %v5416_v16 }
0x17b5   :  { %v1828_v19 = vrot.slane %v1790_v51, %v5431_v22 }
0x17b6   :  { %v1415_v36 = vpop.permute.xlu1 %1414  ;;  %v2644_v50 = vrot.slane %v2628_v17, %v5416_v16  ;;  %v2630_v25 = vcombine.high %v2628_v17, %v2628_v17 }
0x17b7   :  { %1438 = vst.msk [vmem:[#allocation2 + $0x2] sm:$0x1] %vm584_vm2, %v1415_v36 }
0x17b8   :  { %2697 = vrot.lane.b32.xlu0 %v2670_v46, %s4674_s11  ;;  %v974_v46 = vrot.slane %v936_v49, %v5431_v22 }
0x17ba   :  { %v2269_v21 = vpop.permute.xlu1 %2268 }
0x17bb   :  { %2292 = vst.msk [vmem:[#allocation2 + $0x4] sm:$0x1] %vm584_vm2, %v2269_v21 }
0x17bc   :  { %991 = vrot.lane.b32.xlu0 %v966_v26, %s4674_s11 }
0x17be   :  { %v3123_v39 = vpop.permute.xlu1 %3122 }
0x17bf   :  { %3146 = vst.msk [vmem:[#allocation2 + $0x6] sm:$0x1] %vm584_vm2, %v3123_v39  ;;  %v1776_v39 = vcombine.high %v1774_v5, %v1774_v5 }
0x17c0   :  { %1845 = vrot.lane.b32.xlu0 %v1820_v1, %s4674_s11 }
0x17c1   :  { %v1804_v8 = vrot.slane %v1776_v39, %v5416_v16 }
0x17c2   :  { %v563_v29 = vpop.permute.xlu1 %562 }
0x17c3   :  { %586 = vst.msk [vmem:[#allocation2 + $0x8] sm:$0x1] %vm584_vm2, %v563_v29  ;;  %v2682_v29 = vrot.slane %v2644_v50, %v5431_v22 }
0x17c4   :  { %2699 = vrot.lane.b32.xlu0 %v2674_v31, %s4674_s11  ;;  %v950_v31 = vrot.slane %v922_v62, %v5416_v16 }
0x17c6   :  { %v1417_v27 = vpop.permute.xlu1 %1416 }
0x17c7   :  { %1439 = vst.msk [vmem:[#allocation2 + $0xa] sm:$0x1] %vm584_vm2, %v1417_v27 }
0x17c8   :  { %993 = vrot.lane.b32.xlu0 %v970_v0, %s4674_s11  ;;  %v978_v0 = vrot.slane %v950_v31, %v5431_v22 }
0x17ca   :  { %v2271_v33 = vpop.permute.xlu1 %2270 }
0x17cb   :  { %2293 = vst.msk [vmem:[#allocation2 + $0xc] sm:$0x1] %vm584_vm2, %v2271_v33 }
0x17cc   :  { %1847 = vrot.lane.b32.xlu0 %v1824_v6, %s4674_s11  ;;  %v1832_v6 = vrot.slane %v1804_v8, %v5431_v22 }
0x17ce   :  { %v3125_v34 = vpop.permute.xlu1 %3124 }
0x17cf   :  { %3147 = vst.msk [vmem:[#allocation2 + $0xe] sm:$0x1] %vm584_vm2, %v3125_v34  ;;  %v2658_v34 = vrot.slane %v2630_v25, %v5416_v16 }
0x17d2   :  { %v565_v37 = vpop.permute.xlu1 %564 }
0x17d3   :  { %587 = vst.msk [vmem:[#allocation2 + $0x10] sm:$0x1] %vm584_vm2, %v565_v37 }
0x17d6   :  { %v1419_v41 = vpop.permute.xlu1 %1418 }
0x17d7   :  { %1440 = vst.msk [vmem:[#allocation2 + $0x12] sm:$0x1] %vm584_vm2, %v1419_v41  ;;  %v2686_v41 = vrot.slane %v2658_v34, %v5431_v22 }
0x17da   :  { %v2273_v48 = vpop.permute.xlu1 %2272 }
0x17db   :  { %2294 = vst.msk [vmem:[#allocation2 + $0x14] sm:$0x1] %vm584_vm2, %v2273_v48  ;;  %v952_v48 = vcombine.high %v936_v49, %v936_v49 }
0x17de   :  { %v3127_v43 = vpop.permute.xlu1 %3126 }
0x17df   :  { %3148 = vst.msk [vmem:[#allocation2 + $0x16] sm:$0x1] %vm584_vm2, %v3127_v43 }
0x17e2   :  { %v567_v20 = vpop.permute.xlu1 %566 }
0x17e3   :  { %588 = vst.msk [vmem:[#allocation2 + $0x18] sm:$0x1] %vm584_vm2, %v567_v20  ;;  %v982_v20 = vrot.slane %v952_v48, %v5431_v22 }
0x17e6   :  { %v1421_v56 = vpop.permute.xlu1 %1420 }
0x17e7   :  { %1441 = vst.msk [vmem:[#allocation2 + $0x1a] sm:$0x1] %vm584_vm2, %v1421_v56  ;;  %v1806_v56 = vcombine.high %v1790_v51, %v1790_v51 }
0x17ea   :  { %v2275_v53 = vpop.permute.xlu1 %2274 }
0x17eb   :  { %2295 = vst.msk [vmem:[#allocation2 + $0x1c] sm:$0x1] %vm584_vm2, %v2275_v53  ;;  %v1836_v53 = vrot.slane %v1806_v56, %v5431_v22 }
0x17ee   :  { %v3129_v3 = vpop.permute.xlu1 %3128 }
0x17ef   :  { %3149 = vst.msk [vmem:[#allocation2 + $0x1e] sm:$0x1] %vm584_vm2, %v3129_v3  ;;  %v2660_v3 = vcombine.high %v2644_v50, %v2644_v50 }
0x17f2   :  { %v569_v58 = vpop.permute.xlu1 %568 }
0x17f3   :  { %589 = vst.msk [vmem:[#allocation2 + $0x20] sm:$0x1] %vm584_vm2, %v569_v58  ;;  %v2690_v58 = vrot.slane %v2660_v3, %v5431_v22 }
0x17f6   :  { %v1423_v52 = vpop.permute.xlu1 %1422 }
0x17f7   :  { %1442 = vst.msk [vmem:[#allocation2 + $0x22] sm:$0x1] %vm584_vm2, %v1423_v52  ;;  %v954_v52 = vcombine.high %v950_v31, %v950_v31 }
0x17fa   :  { %v2277_v42 = vpop.permute.xlu1 %2276 }
0x17fb   :  { %2296 = vst.msk [vmem:[#allocation2 + $0x24] sm:$0x1] %vm584_vm2, %v2277_v42  ;;  %v986_v42 = vrot.slane %v954_v52, %v5431_v22 }
0x17fe   :  { %v3131_v60 = vpop.permute.xlu1 %3130 }
0x17ff   :  { %3150 = vst.msk [vmem:[#allocation2 + $0x26] sm:$0x1] %vm584_vm2, %v3131_v60  ;;  %v1808_v60 = vcombine.high %v1804_v8, %v1804_v8 }
0x1802   :  { %v571_v18 = vpop.permute.xlu1 %570 }
0x1803   :  { %590 = vst.msk [vmem:[#allocation2 + $0x28] sm:$0x1] %vm584_vm2, %v571_v18  ;;  %v1840_v18 = vrot.slane %v1808_v60, %v5431_v22 }
0x1806   :  { %v1425_v4 = vpop.permute.xlu1 %1424 }
0x1807   :  { %1443 = vst.msk [vmem:[#allocation2 + $0x2a] sm:$0x1] %vm584_vm2, %v1425_v4  ;;  %v2662_v4 = vcombine.high %v2658_v34, %v2658_v34 }
0x180a   :  { %v2279_v59 = vpop.permute.xlu1 %2278 }
0x180b   :  { %2297 = vst.msk [vmem:[#allocation2 + $0x2c] sm:$0x1] %vm584_vm2, %v2279_v59  ;;  %v2694_v59 = vrot.slane %v2662_v4, %v5431_v22 }
0x180e   :  { %v3133_v47 = vpop.permute.xlu1 %3132 }
0x180f   :  { %3151 = vst.msk [vmem:[#allocation2 + $0x2e] sm:$0x1] %vm584_vm2, %v3133_v47  ;;  %v3585_v47 = vld [vmem:[%s5773_s5] sm:$0xff] }
0x1812   :  { %v573_v35 = vpop.permute.xlu1 %572  ;;  %v3448_v57 = vpop.permute.xlu0 %3447 }
0x1813   :  { %591 = vst.msk [vmem:[#allocation2 + $0x30] sm:$0x1] %vm584_vm2, %v573_v35  ;;  %v3450_v7 = vadd.f32 %v3448_v57, %v3440_v24  ;;  %v4492_v35 = vpack.c.bf16 %v3586_v32, %v3585_v47 }
0x1815   :  { %4642 = vtanh.f32 %v3450_v7  ;;  %4493 = vmatprep.subr.bf16.mxu0 %v4492_v35 }
0x1816   :  { %v1427_v10 = vpop.permute.xlu1 %1426  ;;  %v988_v12 = vpop.permute.xlu0 %987  ;;  %4495 = vmatpush3.bf16.msra.mxu0 %v4492_v35 }
0x1817   :  { %1444 = vst.msk [vmem:[#allocation2 + $0x32] sm:$0x1] %vm584_vm2, %v1427_v10  ;;  %1011 = vst.msk [vmem:[#allocation2 + $0x1] sm:$0x1] %vm584_vm2, %v988_v12  ;;  %v3587_v10 = vld [vmem:[%s5773_s5 + $0x10] sm:$0xff]  ;;  %v3588_v12 = vld [vmem:[%s5773_s5 + $0x18] sm:$0xff] }
0x181a   :  { %v2281_v15 = vpop.permute.xlu1 %2280  ;;  %v1842_v9 = vpop.permute.xlu0 %1841 }
0x181b   :  { %2298 = vst.msk [vmem:[#allocation2 + $0x34] sm:$0x1] %vm584_vm2, %v2281_v15  ;;  %1865 = vst.msk [vmem:[#allocation2 + $0x3] sm:$0x1] %vm584_vm2, %v1842_v9  ;;  %v4496_v9 = vpack.c.bf16 %v3588_v12, %v3587_v10 }
0x181d   :  { %4497 = vmatprep.subr.bf16.mxu0 %v4496_v9 }
0x181e   :  { %v3135_v61 = vpop.permute.xlu1 %3134  ;;  %v2696_v54 = vpop.permute.xlu0 %2695  ;;  %4499 = vmatpush3.bf16.msra.mxu0 %v4496_v9 }
0x181f   :  { %v4643_v55 = vpop.eup %4642  ;;  %3152 = vst.msk [vmem:[#allocation2 + $0x36] sm:$0x1] %vm584_vm2, %v3135_v61  ;;  %2719 = vst.msk [vmem:[#allocation2 + $0x5] sm:$0x1] %vm584_vm2, %v2696_v54 }
0x1820   :  { %3453 = vrot.lane.b32.xlu0 %v4643_v55, %s4673_s10 }
0x1822   :  { %v575_v63 = vpop.permute.xlu1 %574  ;;  %v990_v30 = vpop.permute.xlu0 %989 }
0x1823   :  { %592 = vst.msk [vmem:[#allocation2 + $0x38] sm:$0x1] %vm584_vm2, %v575_v63  ;;  %1012 = vst.msk [vmem:[#allocation2 + $0x9] sm:$0x1] %vm584_vm2, %v990_v30 }
0x1824   :  { %2701 = vrot.lane.b32.xlu0 %v2678_v45, %s4674_s11 }
0x1826   :  { %v1429_v13 = vpop.permute.xlu1 %1428  ;;  %v1844_v36 = vpop.permute.xlu0 %1843 }
0x1827   :  { %1445 = vst.msk [vmem:[#allocation2 + $0x3a] sm:$0x1] %vm584_vm2, %v1429_v13  ;;  %1866 = vst.msk [vmem:[#allocation2 + $0xb] sm:$0x1] %vm584_vm2, %v1844_v36 }
0x1828   :  { %995 = vrot.lane.b32.xlu0 %v974_v46, %s4674_s11 }
0x182a   :  { %v2283_v21 = vpop.permute.xlu1 %2282  ;;  %v2698_v26 = vpop.permute.xlu0 %2697 }
0x182b   :  { %2299 = vst.msk [vmem:[#allocation2 + $0x3c] sm:$0x1] %vm584_vm2, %v2283_v21  ;;  %2720 = vst.msk [vmem:[#allocation2 + $0xd] sm:$0x1] %vm584_vm2, %v2698_v26 }
0x182c   :  { %1849 = vrot.lane.b32.xlu0 %v1828_v19, %s4674_s11 }
0x182e   :  { %v3137_v1 = vpop.permute.xlu1 %3136  ;;  %v992_v44 = vpop.permute.xlu0 %991 }
0x182f   :  { %3153 = vst.msk [vmem:[#allocation2 + $0x3e] sm:$0x1] %vm584_vm2, %v3137_v1  ;;  %1013 = vst.msk [vmem:[#allocation2 + $0x11] sm:$0x1] %vm584_vm2, %v992_v44 }
0x1830   :  { %2703 = vrot.lane.b32.xlu0 %v2682_v29, %s4674_s11 }
0x1832   :  { %v1846_v27 = vpop.permute.xlu0 %1845 }
0x1833   :  { %1867 = vst.msk [vmem:[#allocation2 + $0x13] sm:$0x1] %vm584_vm2, %v1846_v27 }
0x1834   :  { %997 = vrot.lane.b32.xlu0 %v978_v0, %s4674_s11 }
0x1836   :  { %v2700_v33 = vpop.permute.xlu0 %2699 }
0x1837   :  { %2721 = vst.msk [vmem:[#allocation2 + $0x15] sm:$0x1] %vm584_vm2, %v2700_v33 }
0x1838   :  { %1851 = vrot.lane.b32.xlu0 %v1832_v6, %s4674_s11 }
0x183a   :  { %v994_v37 = vpop.permute.xlu0 %993 }
0x183b   :  { %1014 = vst.msk [vmem:[#allocation2 + $0x19] sm:$0x1] %vm584_vm2, %v994_v37 }
0x183c   :  { %2705 = vrot.lane.b32.xlu0 %v2686_v41, %s4674_s11 }
0x183e   :  { %v1848_v43 = vpop.permute.xlu0 %1847 }
0x183f   :  { %1868 = vst.msk [vmem:[#allocation2 + $0x1b] sm:$0x1] %vm584_vm2, %v1848_v43 }
0x1840   :  { %999 = vrot.lane.b32.xlu0 %v982_v20, %s4674_s11 }
0x1844   :  { %1853 = vrot.lane.b32.xlu0 %v1836_v53, %s4674_s11 }
0x1848   :  { %2707 = vrot.lane.b32.xlu0 %v2690_v58, %s4674_s11 }
0x184c   :  { %1001 = vrot.lane.b32.xlu0 %v986_v42, %s4674_s11  ;;  %v3883_v42 = vld [vmem:[%s5774_s6] ss:$0 sm:$0xff]  ;;  %s3738_s6 = sshll.u32 %s4676_s23, 4  ;;  %s3739_s6 = int_to_ptr.vmem [resolvable:$true] %s3738_s6 }
0x184d   :  { %s4645_s24 = scalar_lea.vmem %s3739_s6, 1024  ;;  %p4650_p1 = scmp.lt.s32.totalorder %s3739_s6, %s3739_s6 }
0x184e   :  { %p4646_p0 = scmp.ne.s32.totalorder %s3739_s6, %s4645_s24  ;;  %p4651_p2 = scmp.lt.s32.totalorder %s4645_s24, %s4645_s24 }
0x1850   :  { %1855 = vrot.lane.b32.xlu0 %v1840_v18, %s4674_s11  ;;  %p4652_p3 = por %p4651_p2, %p4650_p1 }
0x1852   :  { %p4653_p4 = pnand %p4652_p3, %p4646_p0 }
0x1854   :  { %2709 = vrot.lane.b32.xlu0 %v2694_v59, %s4674_s11 }
0x1892   :  { %v3454_v24 = vpop.permute.xlu0 %3453 }
0x1893   :  { %v3456_v57 = vmul.f32 %v5540_v2, %v3454_v24 }
0x1895   :  { %v3462_v7 = vsel %vm3461_vm3, %v3456_v57, 0.0 }
0x1896   :  { %v3471_v14 = vrot.slane %v3462_v7, %v5416_v16  ;;  %v2702_v15 = vpop.permute.xlu0 %2701  ;;  %v3464_v40 = vcombine.high %v3462_v7, %v3462_v7 }
0x1897   :  { %2722 = vst.msk [vmem:[#allocation2 + $0x1d] sm:$0x1] %vm584_vm2, %v2702_v15 }
0x1898   :  { %v3479_v2 = vcombine.high %v3471_v14, %v3471_v14  ;;  %v3487_v38 = vrot.slane %v3471_v14, %v5416_v16  ;;  %v3478_v55 = vrot.slane %v3464_v40, %v5416_v16 }
0x189a   :  { %v996_v28 = vpop.permute.xlu0 %995  ;;  %v3501_v11 = vrot.slane %v3479_v2, %v5416_v16  ;;  %v3516_v61 = vrot.slane %v3487_v38, %v5431_v22  ;;  %v3509_v49 = vcombine.high %v3487_v38, %v3487_v38  ;;  %v3494_v63 = vrot.slane %v3478_v55, %v5416_v16 }
0x189b   :  { %1015 = vst.msk [vmem:[#allocation2 + $0x21] sm:$0x1] %vm584_vm2, %v996_v28  ;;  %v3480_v51 = vcombine.high %v3478_v55, %v3478_v55 }
0x189c   :  { %3545 = vrot.lane.b32.xlu0 %v3516_v61, %s4674_s11  ;;  %v3520_v5 = vrot.slane %v3501_v11, %v5431_v22  ;;  %v3524_v30 = vrot.slane %v3509_v49, %v5431_v22  ;;  %v3532_v17 = vrot.slane %v3494_v63, %v5431_v22  ;;  %v3511_v13 = vcombine.high %v3501_v11, %v3501_v11 }
0x189d   :  { %v3508_v62 = vrot.slane %v3480_v51, %v5416_v16  ;;  %v3510_v26 = vcombine.high %v3494_v63, %v3494_v63 }
0x189e   :  { %v1850_v54 = vpop.permute.xlu0 %1849  ;;  %v3528_v46 = vrot.slane %v3511_v13, %v5431_v22 }
0x189f   :  { %1869 = vst.msk [vmem:[#allocation2 + $0x23] sm:$0x1] %vm584_vm2, %v1850_v54  ;;  %v3536_v21 = vrot.slane %v3508_v62, %v5431_v22  ;;  %v3540_v39 = vrot.slane %v3510_v26, %v5431_v22  ;;  %v3512_v1 = vcombine.high %v3508_v62, %v3508_v62 }
0x18a0   :  { %3547 = vrot.lane.b32.xlu0 %v3520_v5, %s4674_s11 }
0x18a1   :  { %v3544_v16 = vrot.slane %v3512_v1, %v5431_v22 }
0x18a2   :  { %v2704_v23 = vpop.permute.xlu0 %2703 }
0x18a3   :  { %2723 = vst.msk [vmem:[#allocation2 + $0x25] sm:$0x1] %vm584_vm2, %v2704_v23 }
0x18a4   :  { %3549 = vrot.lane.b32.xlu0 %v3524_v30, %s4674_s11 }
0x18a6   :  { %v998_v45 = vpop.permute.xlu0 %997 }
0x18a7   :  { %1016 = vst.msk [vmem:[#allocation2 + $0x29] sm:$0x1] %vm584_vm2, %v998_v45 }
0x18a8   :  { %3553 = vrot.lane.b32.xlu0 %v3532_v17, %s4674_s11 }
0x18aa   :  { %v1852_v36 = vpop.permute.xlu0 %1851 }
0x18ab   :  { %1870 = vst.msk [vmem:[#allocation2 + $0x2b] sm:$0x1] %vm584_vm2, %v1852_v36 }
0x18ac   :  { %3551 = vrot.lane.b32.xlu0 %v3528_v46, %s4674_s11 }
0x18ae   :  { %v2706_v50 = vpop.permute.xlu0 %2705 }
0x18af   :  { %2724 = vst.msk [vmem:[#allocation2 + $0x2d] sm:$0x1] %vm584_vm2, %v2706_v50 }
0x18b0   :  { %3555 = vrot.lane.b32.xlu0 %v3536_v21, %s4674_s11 }
0x18b2   :  { %v1000_v19 = vpop.permute.xlu0 %999 }
0x18b3   :  { %1017 = vst.msk [vmem:[#allocation2 + $0x31] sm:$0x1] %vm584_vm2, %v1000_v19 }
0x18b4   :  { %3557 = vrot.lane.b32.xlu0 %v3540_v39, %s4674_s11 }
0x18b6   :  { %v1854_v44 = vpop.permute.xlu0 %1853 }
0x18b7   :  { %1871 = vst.msk [vmem:[#allocation2 + $0x33] sm:$0x1] %vm584_vm2, %v1854_v44 }
0x18b8   :  { %3559 = vrot.lane.b32.xlu0 %v3544_v16, %s4674_s11 }
0x18ba   :  { %v2708_v29 = vpop.permute.xlu0 %2707 }
0x18bb   :  { %2725 = vst.msk [vmem:[#allocation2 + $0x35] sm:$0x1] %vm584_vm2, %v2708_v29 }
0x18be   :  { %v1002_v31 = vpop.permute.xlu0 %1001 }
0x18bf   :  { %1018 = vst.msk [vmem:[#allocation2 + $0x39] sm:$0x1] %vm584_vm2, %v1002_v31 }
0x18c2   :  { %v1856_v25 = vpop.permute.xlu0 %1855 }
0x18c3   :  { %1872 = vst.msk [vmem:[#allocation2 + $0x3b] sm:$0x1] %vm584_vm2, %v1856_v25 }
0x18c6   :  { %v2710_v27 = vpop.permute.xlu0 %2709 }
0x18c7   :  { %2726 = vst.msk [vmem:[#allocation2 + $0x3d] sm:$0x1] %vm584_vm2, %v2710_v27 }
0x190e   :  { %v3546_v0 = vpop.permute.xlu0 %3545 }
0x190f   :  { %3569 = vst.msk [vmem:[#allocation2 + $0x7] sm:$0x1] %vm584_vm2, %v3546_v0 }
0x1912   :  { %v3548_v8 = vpop.permute.xlu0 %3547 }
0x1913   :  { %3570 = vst.msk [vmem:[#allocation2 + $0xf] sm:$0x1] %vm584_vm2, %v3548_v8 }
0x1916   :  { %v3550_v22 = vpop.permute.xlu0 %3549  ;;  %v3577_v33 = vld [vmem:[#allocation2] sm:$0xff] }
0x1917   :  { %3571 = vst.msk [vmem:[#allocation2 + $0x17] sm:$0x1] %vm584_vm2, %v3550_v22  ;;  %4328 = vmatprep.mubr.msk.f32.mxu0 %vm40_vm0, %v3577_v33 }
0x191a   :  { %v3554_v6 = vpop.permute.xlu0 %3553  ;;  %v3578_v34 = vld [vmem:[#allocation2 + $0x8] sm:$0xff] }
0x191b   :  { %3573 = vst.msk [vmem:[#allocation2 + $0x27] sm:$0x1] %vm584_vm2, %v3554_v6  ;;  %4329 = vmatmul.mubr.msk.f32.vlgmr.msra.gmra.mrb[26].mxu0 %vm40_vm0, %v3578_v34 }
0x191e   :  { %v3552_v37 = vpop.permute.xlu0 %3551  ;;  %v3579_v41 = vld [vmem:[#allocation2 + $0x10] sm:$0xff] }
0x191f   :  { %3572 = vst.msk [vmem:[#allocation2 + $0x1f] sm:$0x1] %vm584_vm2, %v3552_v37  ;;  %4331 = vmatprep.mubr.msk.f32.mxu0 %vm40_vm0, %v3579_v41 }
0x1922   :  { %v3556_v48 = vpop.permute.xlu0 %3555  ;;  %v3581_v56 = vld [vmem:[#allocation2 + $0x20] sm:$0xff] }
0x1923   :  { %3574 = vst.msk [vmem:[#allocation2 + $0x2f] sm:$0x1] %vm584_vm2, %v3556_v48 }
0x1926   :  { %v3558_v43 = vpop.permute.xlu0 %3557  ;;  %v3580_v20 = vld [vmem:[#allocation2 + $0x18] sm:$0xff] }
0x1927   :  { %3575 = vst.msk [vmem:[#allocation2 + $0x37] sm:$0x1] %vm584_vm2, %v3558_v43  ;;  %4332 = vmatmul.mubr.msk.f32.gmra.mrb[28].mxu0 %vm40_vm0, %v3580_v20 }
0x1928   :  { %4334 = vmatprep.mubr.msk.f32.mxu0 %vm40_vm0, %v3581_v56 }
0x192a   :  { %v3560_v53 = vpop.permute.xlu0 %3559  ;;  %v3582_v3 = vld [vmem:[#allocation2 + $0x28] sm:$0xff] }
0x192b   :  { %3576 = vst.msk [vmem:[#allocation2 + $0x3f] sm:$0x1] %vm584_vm2, %v3560_v53  ;;  %4335 = vmatmul.mubr.msk.f32.gmra.mrb[30].mxu0 %vm40_vm0, %v3582_v3 }
0x192e   :  { %v3583_v58 = vld [vmem:[#allocation2 + $0x30] sm:$0xff] }
0x192f   :  { %4337 = vmatprep.mubr.msk.f32.mxu0 %vm40_vm0, %v3583_v58 }
0x1932   :  { %v3584_v52 = vld [vmem:[#allocation2 + $0x38] sm:$0xff] }
0x1933   :  { %4338 = vmatmul.mubr.msk.f32.gmra.mrb[32].mxu0 %vm40_vm0, %v3584_v52 }
0x19ee   :  { %v4330_v60 = vpop.f32.mrb[26].mxu0 }
0x19ef   :  { %v3692_v18 = vadd.f32 %v4330_v60, %v3883_v42  ;;  %v3686_v4 = vpop.f32.mrb[27].mxu0 }
0x19f0   :  { %v3687_v59 = vadd.f32 %v3883_v42, %v3686_v4 }
0x19f1   :  { %3726 = vst [vmem:[#allocation3 + $0x8] sm:$0xff] %v3692_v18 }
0x19f2   :  { %3725 = vst [vmem:[#allocation3] sm:$0xff] %v3687_v59 }
0x19fa   :  { %v4333_v47 = vpop.f32.mrb[28].mxu0 }
0x19fb   :  { %v3702_v32 = vadd.f32 %v4333_v47, %v3883_v42  ;;  %v3696_v24 = vpop.f32.mrb[29].mxu0 }
0x19fc   :  { %v3697_v35 = vadd.f32 %v3883_v42, %v3696_v24 }
0x19fd   :  { %3728 = vst [vmem:[#allocation3 + $0x18] sm:$0xff] %v3702_v32 }
0x19fe   :  { %3727 = vst [vmem:[#allocation3 + $0x10] sm:$0xff] %v3697_v35  ;;  %v4336_v57 = vpop.f32.mrb[30].mxu0 }
0x19ff   :  { %v3712_v7 = vadd.f32 %v4336_v57, %v3883_v42  ;;  %v3706_v10 = vpop.f32.mrb[31].mxu0 }
0x1a00   :  { %v3707_v12 = vadd.f32 %v3883_v42, %v3706_v10 }
0x1a01   :  { %3730 = vst [vmem:[#allocation3 + $0x28] sm:$0xff] %v3712_v7 }
0x1a02   :  { %3729 = vst [vmem:[#allocation3 + $0x20] sm:$0xff] %v3707_v12 }
0x1a06   :  { %v4339_v14 = vpop.f32.mrb[32].mxu0 }
0x1a07   :  { %v3722_v15 = vadd.f32 %v4339_v14, %v3883_v42  ;;  %v3716_v9 = vpop.f32.mrb[33].mxu0 }
0x1a08   :  { %v3717_v2 = vadd.f32 %v3883_v42, %v3716_v9 }
0x1a09   :  { %3732 = vst [vmem:[#allocation3 + $0x38] sm:$0xff] %v3722_v15 }
0x1a0a   :  { %3731 = vst [vmem:[#allocation3 + $0x30] sm:$0xff] %v3717_v2 }
0x1a0b   :  { %4656 = shalt.err (!%p4653_p4)
}
0x1a0c   :  { %s4657_s27 = scalar_lea.hbm %s5775_s7, 1024 }
0x1a0d   :  { %p4658_p5 = scmp.ne.s32.totalorder %s5775_s7, %s4657_s27  ;;  %p4661_p6 = scmp.lt.u32.totalorder %s4657_s27, %s5775_s7 }
0x1a0f   :  { %p4663_p7 = pnand %p4661_p6, %p4658_p5 }
0x1a11   :  { %4666 = shalt.err (!%p4663_p7)
}
0x1a12   :  { %s4677_s3 = smov 128   ;;  %s4678_s1 = smov 8  }
0x1a13   :  { %3744 = dma.vmem_to_hbm [thread:$0]  %s3739_s6, 1024, %s5775_s7, [#allocation4], %s4677_s3, %s4677_s3, %s4678_s1  }
0x1a14   :  { %4667 = dma.done.wait [#allocation4], 1024  }
0x1a15   :  { %4668 = vsyncadd [#allocation4], 4294966272 }
0x1a16   :  { %3748 = vsyncpa [#allocation4], 1 }

</bundles_post_ra>
